<compile_context>
chip_gen: v7x
topology: tpu7x:2x2x1
jax: 0.10.0
libtpu: 0.0.40
codegen_flags: <defaults>
</compile_context>

<pallas_src>
import math
from functools import partial

import numpy as np

import jax
import jax.numpy as jnp
from jax import lax
from jax.experimental import pallas as pl
from jax.experimental.pallas import tpu as pltpu


# ---------------------------------------------------------------------------
# In-kernel LSTM recurrence. Gate column order: (i, f, o, g).
# ---------------------------------------------------------------------------
def _lstm_scan(seq_len, hdim, read_zx, whh, out_ref=None):
    """Run the sequential LSTM recurrence for `seq_len` steps.

    read_zx(t) -> (1, 4*hdim) precomputed input projection (+ bias) for step t.
    whh        -> (hdim, 4*hdim) recurrent weight (value, already loaded).
    out_ref    -> optional VMEM scratch (seq_len, hdim) to store h_t into.
    Returns h_last (1, hdim).
    """
    # Full unroll for short sequences (LLO scheduler visibility); bounded
    # unroll otherwise to keep compile time in check.
    unroll = True if seq_len <= 32 else 8

    def step(t, carry):
        h, c = carry
        z = read_zx(t) + jnp.dot(h, whh, preferred_element_type=jnp.float32)
        sg = jax.nn.sigmoid(z[:, : 3 * hdim])     # i | f | o  in one EUP pass
        g = jnp.tanh(z[:, 3 * hdim:])             # g
        i = sg[:, 0 * hdim: 1 * hdim]
        f = sg[:, 1 * hdim: 2 * hdim]
        o = sg[:, 2 * hdim: 3 * hdim]
        c_new = f * c + i * g
        h_new = o * jnp.tanh(c_new)
        if out_ref is not None:
            out_ref[pl.ds(t, 1), :] = h_new
        return (h_new, c_new)

    carry0 = (jnp.zeros((1, hdim), jnp.float32),
              jnp.zeros((1, hdim), jnp.float32))
    h_last, _ = lax.fori_loop(0, seq_len, step, carry0, unroll=unroll)
    return h_last


# ---------------------------------------------------------------------------
# Fused autoencoder kernel: encoder (2 LSTMs) + decoder (2 LSTMs) + Linear.
# Scratch reuse:
#   zxA_ref : (seq, 4H)  input projection for rnn1, then reused for rnn4
#   zx2_ref : (seq, 4E)  input projection for rnn2
#   hA_ref  : (seq, H)   hidden sequence of rnn1, then reused for rnn4
#   h3s_ref : (seq, E)   hidden sequence of rnn3
# ---------------------------------------------------------------------------
def _fused_ae_kernel(x_ref,
                     wih1_ref, whh1_ref, b1_ref,
                     wih2_ref, whh2_ref, b2_ref,
                     wih3_ref, whh3_ref, b3_ref,
                     wih4_ref, whh4_ref, b4_ref,
                     wout_ref, bout_ref,
                     dec_ref, feat_ref,
                     zxA_ref, zx2_ref, hA_ref, h3s_ref):
    seq_len = x_ref.shape[0]
    H = whh1_ref.shape[0]          # hidden of rnn1 / rnn4 == 2 * embedding_dim
    E = whh2_ref.shape[0]          # embedding_dim

    # ---- encoder LSTM 1 (in_dim == n_features == 1) --------------------------
    # Batched input projection for the whole sequence. K=1 "matmul" is just a
    # VPU broadcast multiply.
    zxA_ref[...] = x_ref[...] * wih1_ref[...] + b1_ref[...]          # (seq, 4H)
    _lstm_scan(seq_len, H, lambda t: zxA_ref[pl.ds(t, 1), :], whh1_ref[...],
               out_ref=hA_ref)

    # ---- encoder LSTM 2 (2E -> E): batched M=seq matmul on the MXU -----------
    zx2_ref[...] = (jnp.dot(hA_ref[...], wih2_ref[...],
                            preferred_element_type=jnp.float32) + b2_ref[...])
    h2_last = _lstm_scan(seq_len, E, lambda t: zx2_ref[pl.ds(t, 1), :],
                         whh2_ref[...])

    # hidden_n of rnn2 == last-timestep output == temporal feature (1, E)
    feat_ref[...] = h2_last

    # ---- decoder LSTM 1 (E -> E) ---------------------------------------------
    # Every timestep sees the same latent vector, so the input projection is a
    # single (1, 4E) row reused at every step (no per-step read at all).
    zrow3 = (jnp.dot(h2_last, wih3_ref[...],
                     preferred_element_type=jnp.float32) + b3_ref[...])
    _lstm_scan(seq_len, E, lambda t: zrow3, whh3_ref[...], out_ref=h3s_ref)

    # ---- decoder LSTM 2 (E -> 2E) --------------------------------------------
    # Reuse zxA (rnn1 projection no longer needed) and hA (rnn1 hidden seq no
    # longer needed).
    zxA_ref[...] = (jnp.dot(h3s_ref[...], wih4_ref[...],
                            preferred_element_type=jnp.float32) + b4_ref[...])
    _lstm_scan(seq_len, H, lambda t: zxA_ref[pl.ds(t, 1), :], whh4_ref[...],
               out_ref=hA_ref)

    # ---- output Linear (2E -> n_features) ------------------------------------
    dec_ref[...] = (jnp.dot(hA_ref[...], wout_ref[...],
                            preferred_element_type=jnp.float32) + bout_ref[...])


# ---------------------------------------------------------------------------
# Forward pass wrapper: one pallas_call, everything resident in VMEM.
# ---------------------------------------------------------------------------
@partial(jax.jit, static_argnums=(2, 3, 4))
def recurrent_autoencoder_forward(params, x, seq_len, n_features, embedding_dim):
    if n_features != 1:
        raise ValueError("n_features must be 1 (required by the PyTorch reshape)")
    E = embedding_dim
    H = 2 * embedding_dim

    x2 = x.reshape(seq_len, n_features).astype(jnp.float32)
    operands = (x2,
                *params["rnn1"], *params["rnn2"],
                *params["rnn3"], *params["rnn4"],
                *params["out"])

    def vmem():
        return pl.BlockSpec(memory_space=pltpu.MemorySpace.VMEM)

    dec, feat = pl.pallas_call(
        _fused_ae_kernel,
        out_shape=(jax.ShapeDtypeStruct((seq_len, n_features), jnp.float32),
                   jax.ShapeDtypeStruct((n_features, E), jnp.float32)),
        in_specs=[vmem() for _ in operands],
        out_specs=(vmem(), vmem()),
        scratch_shapes=[
            pltpu.VMEM((seq_len, 4 * H), jnp.float32),   # zxA: rnn1 / rnn4 proj
            pltpu.VMEM((seq_len, 4 * E), jnp.float32),   # zx2: rnn2 proj
            pltpu.VMEM((seq_len, H), jnp.float32),       # hA : rnn1 / rnn4 h-seq
            pltpu.VMEM((seq_len, E), jnp.float32),       # h3s: rnn3 h-seq
        ],
    )(*operands)
    return dec, feat


# ---------------------------------------------------------------------------
# Parameter init (deterministic, PyTorch-style uniform(-1/sqrt(H), 1/sqrt(H))).
# Gate rows are permuted from PyTorch's (i, f, g, o) to (i, f, o, g) and the
# weights pre-transposed to (in_dim, 4H) / (H, 4H); biases are combined.
# NOTE: on v5e, weights could additionally be cast to bf16 (f32 accumulate).
# ---------------------------------------------------------------------------
def init_lstm_params(key, in_dim, hidden_dim):
    k = 1.0 / math.sqrt(hidden_dim)
    k1, k2, k3, k4 = jax.random.split(key, 4)
    wih = jax.random.uniform(k1, (4 * hidden_dim, in_dim),
                             minval=-k, maxval=k, dtype=jnp.float32)
    whh = jax.random.uniform(k2, (4 * hidden_dim, hidden_dim),
                             minval=-k, maxval=k, dtype=jnp.float32)
    bih = jax.random.uniform(k3, (4 * hidden_dim,),
                             minval=-k, maxval=k, dtype=jnp.float32)
    bhh = jax.random.uniform(k4, (4 * hidden_dim,),
                             minval=-k, maxval=k, dtype=jnp.float32)
    Hd = hidden_dim
    # (i, f, g, o) -> (i, f, o, g)
    perm = jnp.concatenate([jnp.arange(0 * Hd, 1 * Hd),
                            jnp.arange(1 * Hd, 2 * Hd),
                            jnp.arange(3 * Hd, 4 * Hd),
                            jnp.arange(2 * Hd, 3 * Hd)])
    wih = wih[perm]
    whh = whh[perm]
    b = (bih + bhh)[perm]
    return wih.T, whh.T, b.reshape(1, -1)


def init_linear_params(key, in_dim, out_dim):
    k = 1.0 / math.sqrt(in_dim)
    k1, k2 = jax.random.split(key, 2)
    w = jax.random.uniform(k1, (out_dim, in_dim),
                           minval=-k, maxval=k, dtype=jnp.float32)
    b = jax.random.uniform(k2, (out_dim,),
                           minval=-k, maxval=k, dtype=jnp.float32)
    return w.T, b.reshape(1, -1)


def init_autoencoder_params(key, n_features, embedding_dim):
    E, H = embedding_dim, 2 * embedding_dim
    ks = jax.random.split(key, 5)
    return {
        "rnn1": init_lstm_params(ks[0], n_features, H),     # encoder LSTM 1
        "rnn2": init_lstm_params(ks[1], H, E),               # encoder LSTM 2
        "rnn3": init_lstm_params(ks[2], E, E),                # decoder LSTM 1
        "rnn4": init_lstm_params(ks[3], E, H),                # decoder LSTM 2
        "out": init_linear_params(ks[4], H, n_features),      # output Linear
    }


# ---------------------------------------------------------------------------
# float64 numpy reference (same packed (i,f,o,g) params) for a sanity check.
# ---------------------------------------------------------------------------
def _reference_forward(params, x, seq_len, n_features, embedding_dim):
    def sigmoid(v):
        return 1.0 / (1.0 + np.exp(-v))

    def lstm(xs, wih, whh, b, hdim):
        wih = np.asarray(wih, np.float64)
        whh = np.asarray(whh, np.float64)
        b = np.asarray(b, np.float64)[0]
        h = np.zeros(hdim, np.float64)
        c = np.zeros(hdim, np.float64)
        ys = []
        for t in range(xs.shape[0]):
            z = xs[t] @ wih + h @ whh + b
            i = sigmoid(z[0 * hdim:1 * hdim])
            f = sigmoid(z[1 * hdim:2 * hdim])
            o = sigmoid(z[2 * hdim:3 * hdim])
            g = np.tanh(z[3 * hdim:4 * hdim])
            c = f * c + i * g
            h = o * np.tanh(c)
            ys.append(h)
        return np.stack(ys), h

    E, H = embedding_dim, 2 * embedding_dim
    xs = np.asarray(x, np.float64).reshape(seq_len, n_features)
    h1, _ = lstm(xs, *params["rnn1"], H)
    _, h2_last = lstm(h1, *params["rnn2"], E)
    feat = h2_last.reshape(n_features, E)
    xd = np.tile(feat, (seq_len, n_features))
    h3, _ = lstm(xd, *params["rnn3"], E)
    h4, _ = lstm(h3, *params["rnn4"], H)
    w_out, b_out = params["out"]
    dec = h4 @ np.asarray(w_out, np.float64) + np.asarray(b_out, np.float64)
    return dec, feat


if __name__ == "__main__":
    seq_len, n_features, embedding_dim = 8, 1, 32   # model requires n_features=1

    root = jax.random.PRNGKey(0)
    k_param, k_x = jax.random.split(root)
    params = init_autoencoder_params(k_param, n_features, embedding_dim)
    x = jax.random.normal(k_x, (seq_len, n_features), dtype=jnp.float32)

    dec_out, temporal_feature = recurrent_autoencoder_forward(
        params, x, seq_len, n_features, embedding_dim)
    jax.block_until_ready((dec_out, temporal_feature))

    assert dec_out.shape == (seq_len, n_features)
    assert temporal_feature.shape == (n_features, embedding_dim)

    # Sanity-check against a float64 numpy reference (tolerance loose enough to
    # be robust to MXU f32 matmul precision, tight enough to catch wiring bugs).
    ref_dec, ref_feat = _reference_forward(params, x, seq_len, n_features,
                                           embedding_dim)
    np.testing.assert_allclose(np.asarray(dec_out), ref_dec,
                               rtol=2e-2, atol=1e-3)
    np.testing.assert_allclose(np.asarray(temporal_feature), ref_feat,
                               rtol=2e-2, atol=1e-3)

    print("KERNEL_OK")
</pallas_src>

<mosaic_0001>
module attributes {stable_mosaic.version = 11 : i64} {
  func.func @_fused_ae_kernel(%arg0: memref<8x1xf32, #tpu.memory_space<vmem>>, %arg1: memref<1x256xf32, #tpu.memory_space<vmem>>, %arg2: memref<64x256xf32, #tpu.memory_space<vmem>>, %arg3: memref<1x256xf32, #tpu.memory_space<vmem>>, %arg4: memref<64x128xf32, #tpu.memory_space<vmem>>, %arg5: memref<32x128xf32, #tpu.memory_space<vmem>>, %arg6: memref<1x128xf32, #tpu.memory_space<vmem>>, %arg7: memref<32x128xf32, #tpu.memory_space<vmem>>, %arg8: memref<32x128xf32, #tpu.memory_space<vmem>>, %arg9: memref<1x128xf32, #tpu.memory_space<vmem>>, %arg10: memref<32x256xf32, #tpu.memory_space<vmem>>, %arg11: memref<64x256xf32, #tpu.memory_space<vmem>>, %arg12: memref<1x256xf32, #tpu.memory_space<vmem>>, %arg13: memref<64x1xf32, #tpu.memory_space<vmem>>, %arg14: memref<1x1xf32, #tpu.memory_space<vmem>>, %arg15: memref<8x1xf32, #tpu.memory_space<vmem>>, %arg16: memref<1x32xf32, #tpu.memory_space<vmem>>, %arg17: memref<8x256xf32, #tpu.memory_space<vmem>>, %arg18: memref<8x128xf32, #tpu.memory_space<vmem>>, %arg19: memref<8x64xf32, #tpu.memory_space<vmem>>, %arg20: memref<8x32xf32, #tpu.memory_space<vmem>>) attributes {dimension_semantics = [], scalar_prefetch = 0 : i64, scratch_operands = 4 : i64, tpu.core_type = #tpu.core_type<tc>} {
    %c0 = arith.constant 0 : index
    %c0_0 = arith.constant 0 : index
    %0 = vector.load %arg0[%c0, %c0_0] : memref<8x1xf32, #tpu.memory_space<vmem>>, vector<8x1xf32>
    %c0_1 = arith.constant 0 : index
    %c0_2 = arith.constant 0 : index
    %1 = vector.load %arg1[%c0_1, %c0_2] : memref<1x256xf32, #tpu.memory_space<vmem>>, vector<1x256xf32>
    %2 = vector.broadcast %0 : vector<8x1xf32> to vector<8x256xf32>
    %3 = vector.broadcast %1 : vector<1x256xf32> to vector<8x256xf32>
    %4 = arith.mulf %2, %3 : vector<8x256xf32>
    %c0_3 = arith.constant 0 : index
    %c0_4 = arith.constant 0 : index
    %5 = vector.load %arg3[%c0_3, %c0_4] : memref<1x256xf32, #tpu.memory_space<vmem>>, vector<1x256xf32>
    %6 = vector.broadcast %5 : vector<1x256xf32> to vector<8x256xf32>
    %7 = arith.addf %4, %6 : vector<8x256xf32>
    %c0_5 = arith.constant 0 : index
    %c0_6 = arith.constant 0 : index
    %8 = vector.load %arg17[%c0_5, %c0_6] : memref<8x256xf32, #tpu.memory_space<vmem>>, vector<8x256xf32>
    tpu.vector_store %arg17[%c0_5, %c0_6], %7 {strides = array<i32>} : memref<8x256xf32, #tpu.memory_space<vmem>>, vector<8x256xf32>,
    %c0_7 = arith.constant 0 : index
    %c0_8 = arith.constant 0 : index
    %9 = vector.load %arg2[%c0_7, %c0_8] : memref<64x256xf32, #tpu.memory_space<vmem>>, vector<64x256xf32>
    %cst = arith.constant 0.000000e+00 : f32
    %10 = vector.broadcast %cst : f32 to vector<1x64xf32>
    %cst_9 = arith.constant 0.000000e+00 : f32
    %11 = vector.broadcast %cst_9 : f32 to vector<1x64xf32>
    %c0_i32 = arith.constant 0 : i32
    %12 = arith.index_cast %c0_i32 : i32 to index
    %c0_10 = arith.constant 0 : index
    %13 = vector.load %arg17[%12, %c0_10] : memref<8x256xf32, #tpu.memory_space<vmem>>, vector<1x256xf32>
    %cst_11 = arith.constant dense<0.000000e+00> : vector<1x256xf32>
    %14 = tpu.matmul %10, %9, %cst_11 {dimension_numbers = #tpu.dot_dimension_numbers<[1], [0], [0], [1], [0, 0, 1, 1], [], []>} : vector<1x64xf32>, vector<64x256xf32>, vector<1x256xf32> -> vector<1x256xf32>
    %15 = arith.addf %13, %14 : vector<1x256xf32>
    %16 = vector.extract_strided_slice %15 {offsets = [0, 0], sizes = [1, 192], strides = [1, 1]} : vector<1x256xf32> to vector<1x192xf32>
    %17 = arith.negf %16 : vector<1x192xf32>
    %18 = math.exp %17 : vector<1x192xf32>
    %cst_12 = arith.constant 1.000000e+00 : f32
    %19 = vector.broadcast %cst_12 : f32 to vector<1x192xf32>
    %20 = arith.addf %19, %18 : vector<1x192xf32>
    %21 = arith.divf %19, %20 : vector<1x192xf32>
    %22 = vector.extract_strided_slice %15 {offsets = [0, 192], sizes = [1, 64], strides = [1, 1]} : vector<1x256xf32> to vector<1x64xf32>
    %23 = math.tanh %22 : vector<1x64xf32>
    %24 = vector.extract_strided_slice %21 {offsets = [0, 0], sizes = [1, 64], strides = [1, 1]} : vector<1x192xf32> to vector<1x64xf32>
    %25 = vector.extract_strided_slice %21 {offsets = [0, 64], sizes = [1, 64], strides = [1, 1]} : vector<1x192xf32> to vector<1x64xf32>
    %26 = vector.extract_strided_slice %21 {offsets = [0, 128], sizes = [1, 64], strides = [1, 1]} : vector<1x192xf32> to vector<1x64xf32>
    %27 = arith.mulf %25, %11 : vector<1x64xf32>
    %28 = arith.mulf %24, %23 : vector<1x64xf32>
    %29 = arith.addf %27, %28 : vector<1x64xf32>
    %30 = math.tanh %29 : vector<1x64xf32>
    %31 = arith.mulf %26, %30 : vector<1x64xf32>
    %32 = arith.index_cast %c0_i32 : i32 to index
    %c0_13 = arith.constant 0 : index
    %33 = vector.load %arg19[%32, %c0_13] : memref<8x64xf32, #tpu.memory_space<vmem>>, vector<1x64xf32>
    tpu.vector_store %arg19[%32, %c0_13], %31 {strides = array<i32>} : memref<8x64xf32, #tpu.memory_space<vmem>>, vector<1x64xf32>,
    %c1_i32 = arith.constant 1 : i32
    %34 = arith.index_cast %c1_i32 : i32 to index
    %c0_14 = arith.constant 0 : index
    %35 = vector.load %arg17[%34, %c0_14] : memref<8x256xf32, #tpu.memory_space<vmem>>, vector<1x256xf32>
    %cst_15 = arith.constant dense<0.000000e+00> : vector<1x256xf32>
    %36 = tpu.matmul %31, %9, %cst_15 {dimension_numbers = #tpu.dot_dimension_numbers<[1], [0], [0], [1], [0, 0, 1, 1], [], []>} : vector<1x64xf32>, vector<64x256xf32>, vector<1x256xf32> -> vector<1x256xf32>
    %37 = arith.addf %35, %36 : vector<1x256xf32>
    %38 = vector.extract_strided_slice %37 {offsets = [0, 0], sizes = [1, 192], strides = [1, 1]} : vector<1x256xf32> to vector<1x192xf32>
    %39 = arith.negf %38 : vector<1x192xf32>
    %40 = math.exp %39 : vector<1x192xf32>
    %cst_16 = arith.constant 1.000000e+00 : f32
    %41 = vector.broadcast %cst_16 : f32 to vector<1x192xf32>
    %42 = arith.addf %41, %40 : vector<1x192xf32>
    %43 = arith.divf %41, %42 : vector<1x192xf32>
    %44 = vector.extract_strided_slice %37 {offsets = [0, 192], sizes = [1, 64], strides = [1, 1]} : vector<1x256xf32> to vector<1x64xf32>
    %45 = math.tanh %44 : vector<1x64xf32>
    %46 = vector.extract_strided_slice %43 {offsets = [0, 0], sizes = [1, 64], strides = [1, 1]} : vector<1x192xf32> to vector<1x64xf32>
    %47 = vector.extract_strided_slice %43 {offsets = [0, 64], sizes = [1, 64], strides = [1, 1]} : vector<1x192xf32> to vector<1x64xf32>
    %48 = vector.extract_strided_slice %43 {offsets = [0, 128], sizes = [1, 64], strides = [1, 1]} : vector<1x192xf32> to vector<1x64xf32>
    %49 = arith.mulf %47, %29 : vector<1x64xf32>
    %50 = arith.mulf %46, %45 : vector<1x64xf32>
    %51 = arith.addf %49, %50 : vector<1x64xf32>
    %52 = math.tanh %51 : vector<1x64xf32>
    %53 = arith.mulf %48, %52 : vector<1x64xf32>
    %54 = arith.index_cast %c1_i32 : i32 to index
    %c0_17 = arith.constant 0 : index
    %55 = vector.load %arg19[%54, %c0_17] : memref<8x64xf32, #tpu.memory_space<vmem>>, vector<1x64xf32>
    tpu.vector_store %arg19[%54, %c0_17], %53 {strides = array<i32>} : memref<8x64xf32, #tpu.memory_space<vmem>>, vector<1x64xf32>,
    %c2_i32 = arith.constant 2 : i32
    %56 = arith.index_cast %c2_i32 : i32 to index
    %c0_18 = arith.constant 0 : index
    %57 = vector.load %arg17[%56, %c0_18] : memref<8x256xf32, #tpu.memory_space<vmem>>, vector<1x256xf32>
    %cst_19 = arith.constant dense<0.000000e+00> : vector<1x256xf32>
    %58 = tpu.matmul %53, %9, %cst_19 {dimension_numbers = #tpu.dot_dimension_numbers<[1], [0], [0], [1], [0, 0, 1, 1], [], []>} : vector<1x64xf32>, vector<64x256xf32>, vector<1x256xf32> -> vector<1x256xf32>
    %59 = arith.addf %57, %58 : vector<1x256xf32>
    %60 = vector.extract_strided_slice %59 {offsets = [0, 0], sizes = [1, 192], strides = [1, 1]} : vector<1x256xf32> to vector<1x192xf32>
    %61 = arith.negf %60 : vector<1x192xf32>
    %62 = math.exp %61 : vector<1x192xf32>
    %cst_20 = arith.constant 1.000000e+00 : f32
    %63 = vector.broadcast %cst_20 : f32 to vector<1x192xf32>
    %64 = arith.addf %63, %62 : vector<1x192xf32>
    %65 = arith.divf %63, %64 : vector<1x192xf32>
    %66 = vector.extract_strided_slice %59 {offsets = [0, 192], sizes = [1, 64], strides = [1, 1]} : vector<1x256xf32> to vector<1x64xf32>
    %67 = math.tanh %66 : vector<1x64xf32>
    %68 = vector.extract_strided_slice %65 {offsets = [0, 0], sizes = [1, 64], strides = [1, 1]} : vector<1x192xf32> to vector<1x64xf32>
    %69 = vector.extract_strided_slice %65 {offsets = [0, 64], sizes = [1, 64], strides = [1, 1]} : vector<1x192xf32> to vector<1x64xf32>
    %70 = vector.extract_strided_slice %65 {offsets = [0, 128], sizes = [1, 64], strides = [1, 1]} : vector<1x192xf32> to vector<1x64xf32>
    %71 = arith.mulf %69, %51 : vector<1x64xf32>
    %72 = arith.mulf %68, %67 : vector<1x64xf32>
    %73 = arith.addf %71, %72 : vector<1x64xf32>
    %74 = math.tanh %73 : vector<1x64xf32>
    %75 = arith.mulf %70, %74 : vector<1x64xf32>
    %76 = arith.index_cast %c2_i32 : i32 to index
    %c0_21 = arith.constant 0 : index
    %77 = vector.load %arg19[%76, %c0_21] : memref<8x64xf32, #tpu.memory_space<vmem>>, vector<1x64xf32>
    tpu.vector_store %arg19[%76, %c0_21], %75 {strides = array<i32>} : memref<8x64xf32, #tpu.memory_space<vmem>>, vector<1x64xf32>,
    %c3_i32 = arith.constant 3 : i32
    %78 = arith.index_cast %c3_i32 : i32 to index
    %c0_22 = arith.constant 0 : index
    %79 = vector.load %arg17[%78, %c0_22] : memref<8x256xf32, #tpu.memory_space<vmem>>, vector<1x256xf32>
    %cst_23 = arith.constant dense<0.000000e+00> : vector<1x256xf32>
    %80 = tpu.matmul %75, %9, %cst_23 {dimension_numbers = #tpu.dot_dimension_numbers<[1], [0], [0], [1], [0, 0, 1, 1], [], []>} : vector<1x64xf32>, vector<64x256xf32>, vector<1x256xf32> -> vector<1x256xf32>
    %81 = arith.addf %79, %80 : vector<1x256xf32>
    %82 = vector.extract_strided_slice %81 {offsets = [0, 0], sizes = [1, 192], strides = [1, 1]} : vector<1x256xf32> to vector<1x192xf32>
    %83 = arith.negf %82 : vector<1x192xf32>
    %84 = math.exp %83 : vector<1x192xf32>
    %cst_24 = arith.constant 1.000000e+00 : f32
    %85 = vector.broadcast %cst_24 : f32 to vector<1x192xf32>
    %86 = arith.addf %85, %84 : vector<1x192xf32>
    %87 = arith.divf %85, %86 : vector<1x192xf32>
    %88 = vector.extract_strided_slice %81 {offsets = [0, 192], sizes = [1, 64], strides = [1, 1]} : vector<1x256xf32> to vector<1x64xf32>
    %89 = math.tanh %88 : vector<1x64xf32>
    %90 = vector.extract_strided_slice %87 {offsets = [0, 0], sizes = [1, 64], strides = [1, 1]} : vector<1x192xf32> to vector<1x64xf32>
    %91 = vector.extract_strided_slice %87 {offsets = [0, 64], sizes = [1, 64], strides = [1, 1]} : vector<1x192xf32> to vector<1x64xf32>
    %92 = vector.extract_strided_slice %87 {offsets = [0, 128], sizes = [1, 64], strides = [1, 1]} : vector<1x192xf32> to vector<1x64xf32>
    %93 = arith.mulf %91, %73 : vector<1x64xf32>
    %94 = arith.mulf %90, %89 : vector<1x64xf32>
    %95 = arith.addf %93, %94 : vector<1x64xf32>
    %96 = math.tanh %95 : vector<1x64xf32>
    %97 = arith.mulf %92, %96 : vector<1x64xf32>
    %98 = arith.index_cast %c3_i32 : i32 to index
    %c0_25 = arith.constant 0 : index
    %99 = vector.load %arg19[%98, %c0_25] : memref<8x64xf32, #tpu.memory_space<vmem>>, vector<1x64xf32>
    tpu.vector_store %arg19[%98, %c0_25], %97 {strides = array<i32>} : memref<8x64xf32, #tpu.memory_space<vmem>>, vector<1x64xf32>,
    %c4_i32 = arith.constant 4 : i32
    %100 = arith.index_cast %c4_i32 : i32 to index
    %c0_26 = arith.constant 0 : index
    %101 = vector.load %arg17[%100, %c0_26] : memref<8x256xf32, #tpu.memory_space<vmem>>, vector<1x256xf32>
    %cst_27 = arith.constant dense<0.000000e+00> : vector<1x256xf32>
    %102 = tpu.matmul %97, %9, %cst_27 {dimension_numbers = #tpu.dot_dimension_numbers<[1], [0], [0], [1], [0, 0, 1, 1], [], []>} : vector<1x64xf32>, vector<64x256xf32>, vector<1x256xf32> -> vector<1x256xf32>
    %103 = arith.addf %101, %102 : vector<1x256xf32>
    %104 = vector.extract_strided_slice %103 {offsets = [0, 0], sizes = [1, 192], strides = [1, 1]} : vector<1x256xf32> to vector<1x192xf32>
    %105 = arith.negf %104 : vector<1x192xf32>
    %106 = math.exp %105 : vector<1x192xf32>
    %cst_28 = arith.constant 1.000000e+00 : f32
    %107 = vector.broadcast %cst_28 : f32 to vector<1x192xf32>
    %108 = arith.addf %107, %106 : vector<1x192xf32>
    %109 = arith.divf %107, %108 : vector<1x192xf32>
    %110 = vector.extract_strided_slice %103 {offsets = [0, 192], sizes = [1, 64], strides = [1, 1]} : vector<1x256xf32> to vector<1x64xf32>
    %111 = math.tanh %110 : vector<1x64xf32>
    %112 = vector.extract_strided_slice %109 {offsets = [0, 0], sizes = [1, 64], strides = [1, 1]} : vector<1x192xf32> to vector<1x64xf32>
    %113 = vector.extract_strided_slice %109 {offsets = [0, 64], sizes = [1, 64], strides = [1, 1]} : vector<1x192xf32> to vector<1x64xf32>
    %114 = vector.extract_strided_slice %109 {offsets = [0, 128], sizes = [1, 64], strides = [1, 1]} : vector<1x192xf32> to vector<1x64xf32>
    %115 = arith.mulf %113, %95 : vector<1x64xf32>
    %116 = arith.mulf %112, %111 : vector<1x64xf32>
    %117 = arith.addf %115, %116 : vector<1x64xf32>
    %118 = math.tanh %117 : vector<1x64xf32>
    %119 = arith.mulf %114, %118 : vector<1x64xf32>
    %120 = arith.index_cast %c4_i32 : i32 to index
    %c0_29 = arith.constant 0 : index
    %121 = vector.load %arg19[%120, %c0_29] : memref<8x64xf32, #tpu.memory_space<vmem>>, vector<1x64xf32>
    tpu.vector_store %arg19[%120, %c0_29], %119 {strides = array<i32>} : memref<8x64xf32, #tpu.memory_space<vmem>>, vector<1x64xf32>,
    %c5_i32 = arith.constant 5 : i32
    %122 = arith.index_cast %c5_i32 : i32 to index
    %c0_30 = arith.constant 0 : index
    %123 = vector.load %arg17[%122, %c0_30] : memref<8x256xf32, #tpu.memory_space<vmem>>, vector<1x256xf32>
    %cst_31 = arith.constant dense<0.000000e+00> : vector<1x256xf32>
    %124 = tpu.matmul %119, %9, %cst_31 {dimension_numbers = #tpu.dot_dimension_numbers<[1], [0], [0], [1], [0, 0, 1, 1], [], []>} : vector<1x64xf32>, vector<64x256xf32>, vector<1x256xf32> -> vector<1x256xf32>
    %125 = arith.addf %123, %124 : vector<1x256xf32>
    %126 = vector.extract_strided_slice %125 {offsets = [0, 0], sizes = [1, 192], strides = [1, 1]} : vector<1x256xf32> to vector<1x192xf32>
    %127 = arith.negf %126 : vector<1x192xf32>
    %128 = math.exp %127 : vector<1x192xf32>
    %cst_32 = arith.constant 1.000000e+00 : f32
    %129 = vector.broadcast %cst_32 : f32 to vector<1x192xf32>
    %130 = arith.addf %129, %128 : vector<1x192xf32>
    %131 = arith.divf %129, %130 : vector<1x192xf32>
    %132 = vector.extract_strided_slice %125 {offsets = [0, 192], sizes = [1, 64], strides = [1, 1]} : vector<1x256xf32> to vector<1x64xf32>
    %133 = math.tanh %132 : vector<1x64xf32>
    %134 = vector.extract_strided_slice %131 {offsets = [0, 0], sizes = [1, 64], strides = [1, 1]} : vector<1x192xf32> to vector<1x64xf32>
    %135 = vector.extract_strided_slice %131 {offsets = [0, 64], sizes = [1, 64], strides = [1, 1]} : vector<1x192xf32> to vector<1x64xf32>
    %136 = vector.extract_strided_slice %131 {offsets = [0, 128], sizes = [1, 64], strides = [1, 1]} : vector<1x192xf32> to vector<1x64xf32>
    %137 = arith.mulf %135, %117 : vector<1x64xf32>
    %138 = arith.mulf %134, %133 : vector<1x64xf32>
    %139 = arith.addf %137, %138 : vector<1x64xf32>
    %140 = math.tanh %139 : vector<1x64xf32>
    %141 = arith.mulf %136, %140 : vector<1x64xf32>
    %142 = arith.index_cast %c5_i32 : i32 to index
    %c0_33 = arith.constant 0 : index
    %143 = vector.load %arg19[%142, %c0_33] : memref<8x64xf32, #tpu.memory_space<vmem>>, vector<1x64xf32>
    tpu.vector_store %arg19[%142, %c0_33], %141 {strides = array<i32>} : memref<8x64xf32, #tpu.memory_space<vmem>>, vector<1x64xf32>,
    %c6_i32 = arith.constant 6 : i32
    %144 = arith.index_cast %c6_i32 : i32 to index
    %c0_34 = arith.constant 0 : index
    %145 = vector.load %arg17[%144, %c0_34] : memref<8x256xf32, #tpu.memory_space<vmem>>, vector<1x256xf32>
    %cst_35 = arith.constant dense<0.000000e+00> : vector<1x256xf32>
    %146 = tpu.matmul %141, %9, %cst_35 {dimension_numbers = #tpu.dot_dimension_numbers<[1], [0], [0], [1], [0, 0, 1, 1], [], []>} : vector<1x64xf32>, vector<64x256xf32>, vector<1x256xf32> -> vector<1x256xf32>
    %147 = arith.addf %145, %146 : vector<1x256xf32>
    %148 = vector.extract_strided_slice %147 {offsets = [0, 0], sizes = [1, 192], strides = [1, 1]} : vector<1x256xf32> to vector<1x192xf32>
    %149 = arith.negf %148 : vector<1x192xf32>
    %150 = math.exp %149 : vector<1x192xf32>
    %cst_36 = arith.constant 1.000000e+00 : f32
    %151 = vector.broadcast %cst_36 : f32 to vector<1x192xf32>
    %152 = arith.addf %151, %150 : vector<1x192xf32>
    %153 = arith.divf %151, %152 : vector<1x192xf32>
    %154 = vector.extract_strided_slice %147 {offsets = [0, 192], sizes = [1, 64], strides = [1, 1]} : vector<1x256xf32> to vector<1x64xf32>
    %155 = math.tanh %154 : vector<1x64xf32>
    %156 = vector.extract_strided_slice %153 {offsets = [0, 0], sizes = [1, 64], strides = [1, 1]} : vector<1x192xf32> to vector<1x64xf32>
    %157 = vector.extract_strided_slice %153 {offsets = [0, 64], sizes = [1, 64], strides = [1, 1]} : vector<1x192xf32> to vector<1x64xf32>
    %158 = vector.extract_strided_slice %153 {offsets = [0, 128], sizes = [1, 64], strides = [1, 1]} : vector<1x192xf32> to vector<1x64xf32>
    %159 = arith.mulf %157, %139 : vector<1x64xf32>
    %160 = arith.mulf %156, %155 : vector<1x64xf32>
    %161 = arith.addf %159, %160 : vector<1x64xf32>
    %162 = math.tanh %161 : vector<1x64xf32>
    %163 = arith.mulf %158, %162 : vector<1x64xf32>
    %164 = arith.index_cast %c6_i32 : i32 to index
    %c0_37 = arith.constant 0 : index
    %165 = vector.load %arg19[%164, %c0_37] : memref<8x64xf32, #tpu.memory_space<vmem>>, vector<1x64xf32>
    tpu.vector_store %arg19[%164, %c0_37], %163 {strides = array<i32>} : memref<8x64xf32, #tpu.memory_space<vmem>>, vector<1x64xf32>,
    %c7_i32 = arith.constant 7 : i32
    %166 = arith.index_cast %c7_i32 : i32 to index
    %c0_38 = arith.constant 0 : index
    %167 = vector.load %arg17[%166, %c0_38] : memref<8x256xf32, #tpu.memory_space<vmem>>, vector<1x256xf32>
    %cst_39 = arith.constant dense<0.000000e+00> : vector<1x256xf32>
    %168 = tpu.matmul %163, %9, %cst_39 {dimension_numbers = #tpu.dot_dimension_numbers<[1], [0], [0], [1], [0, 0, 1, 1], [], []>} : vector<1x64xf32>, vector<64x256xf32>, vector<1x256xf32> -> vector<1x256xf32>
    %169 = arith.addf %167, %168 : vector<1x256xf32>
    %170 = vector.extract_strided_slice %169 {offsets = [0, 0], sizes = [1, 192], strides = [1, 1]} : vector<1x256xf32> to vector<1x192xf32>
    %171 = arith.negf %170 : vector<1x192xf32>
    %172 = math.exp %171 : vector<1x192xf32>
    %cst_40 = arith.constant 1.000000e+00 : f32
    %173 = vector.broadcast %cst_40 : f32 to vector<1x192xf32>
    %174 = arith.addf %173, %172 : vector<1x192xf32>
    %175 = arith.divf %173, %174 : vector<1x192xf32>
    %176 = vector.extract_strided_slice %169 {offsets = [0, 192], sizes = [1, 64], strides = [1, 1]} : vector<1x256xf32> to vector<1x64xf32>
    %177 = math.tanh %176 : vector<1x64xf32>
    %178 = vector.extract_strided_slice %175 {offsets = [0, 0], sizes = [1, 64], strides = [1, 1]} : vector<1x192xf32> to vector<1x64xf32>
    %179 = vector.extract_strided_slice %175 {offsets = [0, 64], sizes = [1, 64], strides = [1, 1]} : vector<1x192xf32> to vector<1x64xf32>
    %180 = vector.extract_strided_slice %175 {offsets = [0, 128], sizes = [1, 64], strides = [1, 1]} : vector<1x192xf32> to vector<1x64xf32>
    %181 = arith.mulf %179, %161 : vector<1x64xf32>
    %182 = arith.mulf %178, %177 : vector<1x64xf32>
    %183 = arith.addf %181, %182 : vector<1x64xf32>
    %184 = math.tanh %183 : vector<1x64xf32>
    %185 = arith.mulf %180, %184 : vector<1x64xf32>
    %186 = arith.index_cast %c7_i32 : i32 to index
    %c0_41 = arith.constant 0 : index
    %187 = vector.load %arg19[%186, %c0_41] : memref<8x64xf32, #tpu.memory_space<vmem>>, vector<1x64xf32>
    tpu.vector_store %arg19[%186, %c0_41], %185 {strides = array<i32>} : memref<8x64xf32, #tpu.memory_space<vmem>>, vector<1x64xf32>,
    %c8_i32 = arith.constant 8 : i32
    %c0_42 = arith.constant 0 : index
    %c0_43 = arith.constant 0 : index
    %188 = vector.load %arg19[%c0_42, %c0_43] : memref<8x64xf32, #tpu.memory_space<vmem>>, vector<8x64xf32>
    %c0_44 = arith.constant 0 : index
    %c0_45 = arith.constant 0 : index
    %189 = vector.load %arg4[%c0_44, %c0_45] : memref<64x128xf32, #tpu.memory_space<vmem>>, vector<64x128xf32>
    %cst_46 = arith.constant dense<0.000000e+00> : vector<8x128xf32>
    %190 = tpu.matmul %188, %189, %cst_46 {dimension_numbers = #tpu.dot_dimension_numbers<[1], [0], [0], [1], [0, 0, 1, 1], [], []>} : vector<8x64xf32>, vector<64x128xf32>, vector<8x128xf32> -> vector<8x128xf32>
    %c0_47 = arith.constant 0 : index
    %c0_48 = arith.constant 0 : index
    %191 = vector.load %arg6[%c0_47, %c0_48] : memref<1x128xf32, #tpu.memory_space<vmem>>, vector<1x128xf32>
    %192 = vector.broadcast %191 : vector<1x128xf32> to vector<8x128xf32>
    %193 = arith.addf %190, %192 : vector<8x128xf32>
    %c0_49 = arith.constant 0 : index
    %c0_50 = arith.constant 0 : index
    %194 = vector.load %arg18[%c0_49, %c0_50] : memref<8x128xf32, #tpu.memory_space<vmem>>, vector<8x128xf32>
    tpu.vector_store %arg18[%c0_49, %c0_50], %193 {strides = array<i32>} : memref<8x128xf32, #tpu.memory_space<vmem>>, vector<8x128xf32>,
    %c0_51 = arith.constant 0 : index
    %c0_52 = arith.constant 0 : index
    %195 = vector.load %arg5[%c0_51, %c0_52] : memref<32x128xf32, #tpu.memory_space<vmem>>, vector<32x128xf32>
    %cst_53 = arith.constant 0.000000e+00 : f32
    %196 = vector.broadcast %cst_53 : f32 to vector<1x32xf32>
    %cst_54 = arith.constant 0.000000e+00 : f32
    %197 = vector.broadcast %cst_54 : f32 to vector<1x32xf32>
    %c0_i32_55 = arith.constant 0 : i32
    %198 = arith.index_cast %c0_i32_55 : i32 to index
    %c0_56 = arith.constant 0 : index
    %199 = vector.load %arg18[%198, %c0_56] : memref<8x128xf32, #tpu.memory_space<vmem>>, vector<1x128xf32>
    %cst_57 = arith.constant dense<0.000000e+00> : vector<1x128xf32>
    %200 = tpu.matmul %196, %195, %cst_57 {dimension_numbers = #tpu.dot_dimension_numbers<[1], [0], [0], [1], [0, 0, 1, 1], [], []>} : vector<1x32xf32>, vector<32x128xf32>, vector<1x128xf32> -> vector<1x128xf32>
    %201 = arith.addf %199, %200 : vector<1x128xf32>
    %202 = vector.extract_strided_slice %201 {offsets = [0, 0], sizes = [1, 96], strides = [1, 1]} : vector<1x128xf32> to vector<1x96xf32>
    %203 = arith.negf %202 : vector<1x96xf32>
    %204 = math.exp %203 : vector<1x96xf32>
    %cst_58 = arith.constant 1.000000e+00 : f32
    %205 = vector.broadcast %cst_58 : f32 to vector<1x96xf32>
    %206 = arith.addf %205, %204 : vector<1x96xf32>
    %207 = arith.divf %205, %206 : vector<1x96xf32>
    %208 = vector.extract_strided_slice %201 {offsets = [0, 96], sizes = [1, 32], strides = [1, 1]} : vector<1x128xf32> to vector<1x32xf32>
    %209 = math.tanh %208 : vector<1x32xf32>
    %210 = vector.extract_strided_slice %207 {offsets = [0, 0], sizes = [1, 32], strides = [1, 1]} : vector<1x96xf32> to vector<1x32xf32>
    %211 = vector.extract_strided_slice %207 {offsets = [0, 32], sizes = [1, 32], strides = [1, 1]} : vector<1x96xf32> to vector<1x32xf32>
    %212 = vector.extract_strided_slice %207 {offsets = [0, 64], sizes = [1, 32], strides = [1, 1]} : vector<1x96xf32> to vector<1x32xf32>
    %213 = arith.mulf %211, %197 : vector<1x32xf32>
    %214 = arith.mulf %210, %209 : vector<1x32xf32>
    %215 = arith.addf %213, %214 : vector<1x32xf32>
    %216 = math.tanh %215 : vector<1x32xf32>
    %217 = arith.mulf %212, %216 : vector<1x32xf32>
    %c1_i32_59 = arith.constant 1 : i32
    %218 = arith.index_cast %c1_i32_59 : i32 to index
    %c0_60 = arith.constant 0 : index
    %219 = vector.load %arg18[%218, %c0_60] : memref<8x128xf32, #tpu.memory_space<vmem>>, vector<1x128xf32>
    %cst_61 = arith.constant dense<0.000000e+00> : vector<1x128xf32>
    %220 = tpu.matmul %217, %195, %cst_61 {dimension_numbers = #tpu.dot_dimension_numbers<[1], [0], [0], [1], [0, 0, 1, 1], [], []>} : vector<1x32xf32>, vector<32x128xf32>, vector<1x128xf32> -> vector<1x128xf32>
    %221 = arith.addf %219, %220 : vector<1x128xf32>
    %222 = vector.extract_strided_slice %221 {offsets = [0, 0], sizes = [1, 96], strides = [1, 1]} : vector<1x128xf32> to vector<1x96xf32>
    %223 = arith.negf %222 : vector<1x96xf32>
    %224 = math.exp %223 : vector<1x96xf32>
    %cst_62 = arith.constant 1.000000e+00 : f32
    %225 = vector.broadcast %cst_62 : f32 to vector<1x96xf32>
    %226 = arith.addf %225, %224 : vector<1x96xf32>
    %227 = arith.divf %225, %226 : vector<1x96xf32>
    %228 = vector.extract_strided_slice %221 {offsets = [0, 96], sizes = [1, 32], strides = [1, 1]} : vector<1x128xf32> to vector<1x32xf32>
    %229 = math.tanh %228 : vector<1x32xf32>
    %230 = vector.extract_strided_slice %227 {offsets = [0, 0], sizes = [1, 32], strides = [1, 1]} : vector<1x96xf32> to vector<1x32xf32>
    %231 = vector.extract_strided_slice %227 {offsets = [0, 32], sizes = [1, 32], strides = [1, 1]} : vector<1x96xf32> to vector<1x32xf32>
    %232 = vector.extract_strided_slice %227 {offsets = [0, 64], sizes = [1, 32], strides = [1, 1]} : vector<1x96xf32> to vector<1x32xf32>
    %233 = arith.mulf %231, %215 : vector<1x32xf32>
    %234 = arith.mulf %230, %229 : vector<1x32xf32>
    %235 = arith.addf %233, %234 : vector<1x32xf32>
    %236 = math.tanh %235 : vector<1x32xf32>
    %237 = arith.mulf %232, %236 : vector<1x32xf32>
    %c2_i32_63 = arith.constant 2 : i32
    %238 = arith.index_cast %c2_i32_63 : i32 to index
    %c0_64 = arith.constant 0 : index
    %239 = vector.load %arg18[%238, %c0_64] : memref<8x128xf32, #tpu.memory_space<vmem>>, vector<1x128xf32>
    %cst_65 = arith.constant dense<0.000000e+00> : vector<1x128xf32>
    %240 = tpu.matmul %237, %195, %cst_65 {dimension_numbers = #tpu.dot_dimension_numbers<[1], [0], [0], [1], [0, 0, 1, 1], [], []>} : vector<1x32xf32>, vector<32x128xf32>, vector<1x128xf32> -> vector<1x128xf32>
    %241 = arith.addf %239, %240 : vector<1x128xf32>
    %242 = vector.extract_strided_slice %241 {offsets = [0, 0], sizes = [1, 96], strides = [1, 1]} : vector<1x128xf32> to vector<1x96xf32>
    %243 = arith.negf %242 : vector<1x96xf32>
    %244 = math.exp %243 : vector<1x96xf32>
    %cst_66 = arith.constant 1.000000e+00 : f32
    %245 = vector.broadcast %cst_66 : f32 to vector<1x96xf32>
    %246 = arith.addf %245, %244 : vector<1x96xf32>
    %247 = arith.divf %245, %246 : vector<1x96xf32>
    %248 = vector.extract_strided_slice %241 {offsets = [0, 96], sizes = [1, 32], strides = [1, 1]} : vector<1x128xf32> to vector<1x32xf32>
    %249 = math.tanh %248 : vector<1x32xf32>
    %250 = vector.extract_strided_slice %247 {offsets = [0, 0], sizes = [1, 32], strides = [1, 1]} : vector<1x96xf32> to vector<1x32xf32>
    %251 = vector.extract_strided_slice %247 {offsets = [0, 32], sizes = [1, 32], strides = [1, 1]} : vector<1x96xf32> to vector<1x32xf32>
    %252 = vector.extract_strided_slice %247 {offsets = [0, 64], sizes = [1, 32], strides = [1, 1]} : vector<1x96xf32> to vector<1x32xf32>
    %253 = arith.mulf %251, %235 : vector<1x32xf32>
    %254 = arith.mulf %250, %249 : vector<1x32xf32>
    %255 = arith.addf %253, %254 : vector<1x32xf32>
    %256 = math.tanh %255 : vector<1x32xf32>
    %257 = arith.mulf %252, %256 : vector<1x32xf32>
    %c3_i32_67 = arith.constant 3 : i32
    %258 = arith.index_cast %c3_i32_67 : i32 to index
    %c0_68 = arith.constant 0 : index
    %259 = vector.load %arg18[%258, %c0_68] : memref<8x128xf32, #tpu.memory_space<vmem>>, vector<1x128xf32>
    %cst_69 = arith.constant dense<0.000000e+00> : vector<1x128xf32>
    %260 = tpu.matmul %257, %195, %cst_69 {dimension_numbers = #tpu.dot_dimension_numbers<[1], [0], [0], [1], [0, 0, 1, 1], [], []>} : vector<1x32xf32>, vector<32x128xf32>, vector<1x128xf32> -> vector<1x128xf32>
    %261 = arith.addf %259, %260 : vector<1x128xf32>
    %262 = vector.extract_strided_slice %261 {offsets = [0, 0], sizes = [1, 96], strides = [1, 1]} : vector<1x128xf32> to vector<1x96xf32>
    %263 = arith.negf %262 : vector<1x96xf32>
    %264 = math.exp %263 : vector<1x96xf32>
    %cst_70 = arith.constant 1.000000e+00 : f32
    %265 = vector.broadcast %cst_70 : f32 to vector<1x96xf32>
    %266 = arith.addf %265, %264 : vector<1x96xf32>
    %267 = arith.divf %265, %266 : vector<1x96xf32>
    %268 = vector.extract_strided_slice %261 {offsets = [0, 96], sizes = [1, 32], strides = [1, 1]} : vector<1x128xf32> to vector<1x32xf32>
    %269 = math.tanh %268 : vector<1x32xf32>
    %270 = vector.extract_strided_slice %267 {offsets = [0, 0], sizes = [1, 32], strides = [1, 1]} : vector<1x96xf32> to vector<1x32xf32>
    %271 = vector.extract_strided_slice %267 {offsets = [0, 32], sizes = [1, 32], strides = [1, 1]} : vector<1x96xf32> to vector<1x32xf32>
    %272 = vector.extract_strided_slice %267 {offsets = [0, 64], sizes = [1, 32], strides = [1, 1]} : vector<1x96xf32> to vector<1x32xf32>
    %273 = arith.mulf %271, %255 : vector<1x32xf32>
    %274 = arith.mulf %270, %269 : vector<1x32xf32>
    %275 = arith.addf %273, %274 : vector<1x32xf32>
    %276 = math.tanh %275 : vector<1x32xf32>
    %277 = arith.mulf %272, %276 : vector<1x32xf32>
    %c4_i32_71 = arith.constant 4 : i32
    %278 = arith.index_cast %c4_i32_71 : i32 to index
    %c0_72 = arith.constant 0 : index
    %279 = vector.load %arg18[%278, %c0_72] : memref<8x128xf32, #tpu.memory_space<vmem>>, vector<1x128xf32>
    %cst_73 = arith.constant dense<0.000000e+00> : vector<1x128xf32>
    %280 = tpu.matmul %277, %195, %cst_73 {dimension_numbers = #tpu.dot_dimension_numbers<[1], [0], [0], [1], [0, 0, 1, 1], [], []>} : vector<1x32xf32>, vector<32x128xf32>, vector<1x128xf32> -> vector<1x128xf32>
    %281 = arith.addf %279, %280 : vector<1x128xf32>
    %282 = vector.extract_strided_slice %281 {offsets = [0, 0], sizes = [1, 96], strides = [1, 1]} : vector<1x128xf32> to vector<1x96xf32>
    %283 = arith.negf %282 : vector<1x96xf32>
    %284 = math.exp %283 : vector<1x96xf32>
    %cst_74 = arith.constant 1.000000e+00 : f32
    %285 = vector.broadcast %cst_74 : f32 to vector<1x96xf32>
    %286 = arith.addf %285, %284 : vector<1x96xf32>
    %287 = arith.divf %285, %286 : vector<1x96xf32>
    %288 = vector.extract_strided_slice %281 {offsets = [0, 96], sizes = [1, 32], strides = [1, 1]} : vector<1x128xf32> to vector<1x32xf32>
    %289 = math.tanh %288 : vector<1x32xf32>
    %290 = vector.extract_strided_slice %287 {offsets = [0, 0], sizes = [1, 32], strides = [1, 1]} : vector<1x96xf32> to vector<1x32xf32>
    %291 = vector.extract_strided_slice %287 {offsets = [0, 32], sizes = [1, 32], strides = [1, 1]} : vector<1x96xf32> to vector<1x32xf32>
    %292 = vector.extract_strided_slice %287 {offsets = [0, 64], sizes = [1, 32], strides = [1, 1]} : vector<1x96xf32> to vector<1x32xf32>
    %293 = arith.mulf %291, %275 : vector<1x32xf32>
    %294 = arith.mulf %290, %289 : vector<1x32xf32>
    %295 = arith.addf %293, %294 : vector<1x32xf32>
    %296 = math.tanh %295 : vector<1x32xf32>
    %297 = arith.mulf %292, %296 : vector<1x32xf32>
    %c5_i32_75 = arith.constant 5 : i32
    %298 = arith.index_cast %c5_i32_75 : i32 to index
    %c0_76 = arith.constant 0 : index
    %299 = vector.load %arg18[%298, %c0_76] : memref<8x128xf32, #tpu.memory_space<vmem>>, vector<1x128xf32>
    %cst_77 = arith.constant dense<0.000000e+00> : vector<1x128xf32>
    %300 = tpu.matmul %297, %195, %cst_77 {dimension_numbers = #tpu.dot_dimension_numbers<[1], [0], [0], [1], [0, 0, 1, 1], [], []>} : vector<1x32xf32>, vector<32x128xf32>, vector<1x128xf32> -> vector<1x128xf32>
    %301 = arith.addf %299, %300 : vector<1x128xf32>
    %302 = vector.extract_strided_slice %301 {offsets = [0, 0], sizes = [1, 96], strides = [1, 1]} : vector<1x128xf32> to vector<1x96xf32>
    %303 = arith.negf %302 : vector<1x96xf32>
    %304 = math.exp %303 : vector<1x96xf32>
    %cst_78 = arith.constant 1.000000e+00 : f32
    %305 = vector.broadcast %cst_78 : f32 to vector<1x96xf32>
    %306 = arith.addf %305, %304 : vector<1x96xf32>
    %307 = arith.divf %305, %306 : vector<1x96xf32>
    %308 = vector.extract_strided_slice %301 {offsets = [0, 96], sizes = [1, 32], strides = [1, 1]} : vector<1x128xf32> to vector<1x32xf32>
    %309 = math.tanh %308 : vector<1x32xf32>
    %310 = vector.extract_strided_slice %307 {offsets = [0, 0], sizes = [1, 32], strides = [1, 1]} : vector<1x96xf32> to vector<1x32xf32>
    %311 = vector.extract_strided_slice %307 {offsets = [0, 32], sizes = [1, 32], strides = [1, 1]} : vector<1x96xf32> to vector<1x32xf32>
    %312 = vector.extract_strided_slice %307 {offsets = [0, 64], sizes = [1, 32], strides = [1, 1]} : vector<1x96xf32> to vector<1x32xf32>
    %313 = arith.mulf %311, %295 : vector<1x32xf32>
    %314 = arith.mulf %310, %309 : vector<1x32xf32>
    %315 = arith.addf %313, %314 : vector<1x32xf32>
    %316 = math.tanh %315 : vector<1x32xf32>
    %317 = arith.mulf %312, %316 : vector<1x32xf32>
    %c6_i32_79 = arith.constant 6 : i32
    %318 = arith.index_cast %c6_i32_79 : i32 to index
    %c0_80 = arith.constant 0 : index
    %319 = vector.load %arg18[%318, %c0_80] : memref<8x128xf32, #tpu.memory_space<vmem>>, vector<1x128xf32>
    %cst_81 = arith.constant dense<0.000000e+00> : vector<1x128xf32>
    %320 = tpu.matmul %317, %195, %cst_81 {dimension_numbers = #tpu.dot_dimension_numbers<[1], [0], [0], [1], [0, 0, 1, 1], [], []>} : vector<1x32xf32>, vector<32x128xf32>, vector<1x128xf32> -> vector<1x128xf32>
    %321 = arith.addf %319, %320 : vector<1x128xf32>
    %322 = vector.extract_strided_slice %321 {offsets = [0, 0], sizes = [1, 96], strides = [1, 1]} : vector<1x128xf32> to vector<1x96xf32>
    %323 = arith.negf %322 : vector<1x96xf32>
    %324 = math.exp %323 : vector<1x96xf32>
    %cst_82 = arith.constant 1.000000e+00 : f32
    %325 = vector.broadcast %cst_82 : f32 to vector<1x96xf32>
    %326 = arith.addf %325, %324 : vector<1x96xf32>
    %327 = arith.divf %325, %326 : vector<1x96xf32>
    %328 = vector.extract_strided_slice %321 {offsets = [0, 96], sizes = [1, 32], strides = [1, 1]} : vector<1x128xf32> to vector<1x32xf32>
    %329 = math.tanh %328 : vector<1x32xf32>
    %330 = vector.extract_strided_slice %327 {offsets = [0, 0], sizes = [1, 32], strides = [1, 1]} : vector<1x96xf32> to vector<1x32xf32>
    %331 = vector.extract_strided_slice %327 {offsets = [0, 32], sizes = [1, 32], strides = [1, 1]} : vector<1x96xf32> to vector<1x32xf32>
    %332 = vector.extract_strided_slice %327 {offsets = [0, 64], sizes = [1, 32], strides = [1, 1]} : vector<1x96xf32> to vector<1x32xf32>
    %333 = arith.mulf %331, %315 : vector<1x32xf32>
    %334 = arith.mulf %330, %329 : vector<1x32xf32>
    %335 = arith.addf %333, %334 : vector<1x32xf32>
    %336 = math.tanh %335 : vector<1x32xf32>
    %337 = arith.mulf %332, %336 : vector<1x32xf32>
    %c7_i32_83 = arith.constant 7 : i32
    %338 = arith.index_cast %c7_i32_83 : i32 to index
    %c0_84 = arith.constant 0 : index
    %339 = vector.load %arg18[%338, %c0_84] : memref<8x128xf32, #tpu.memory_space<vmem>>, vector<1x128xf32>
    %cst_85 = arith.constant dense<0.000000e+00> : vector<1x128xf32>
    %340 = tpu.matmul %337, %195, %cst_85 {dimension_numbers = #tpu.dot_dimension_numbers<[1], [0], [0], [1], [0, 0, 1, 1], [], []>} : vector<1x32xf32>, vector<32x128xf32>, vector<1x128xf32> -> vector<1x128xf32>
    %341 = arith.addf %339, %340 : vector<1x128xf32>
    %342 = vector.extract_strided_slice %341 {offsets = [0, 0], sizes = [1, 96], strides = [1, 1]} : vector<1x128xf32> to vector<1x96xf32>
    %343 = arith.negf %342 : vector<1x96xf32>
    %344 = math.exp %343 : vector<1x96xf32>
    %cst_86 = arith.constant 1.000000e+00 : f32
    %345 = vector.broadcast %cst_86 : f32 to vector<1x96xf32>
    %346 = arith.addf %345, %344 : vector<1x96xf32>
    %347 = arith.divf %345, %346 : vector<1x96xf32>
    %348 = vector.extract_strided_slice %341 {offsets = [0, 96], sizes = [1, 32], strides = [1, 1]} : vector<1x128xf32> to vector<1x32xf32>
    %349 = math.tanh %348 : vector<1x32xf32>
    %350 = vector.extract_strided_slice %347 {offsets = [0, 0], sizes = [1, 32], strides = [1, 1]} : vector<1x96xf32> to vector<1x32xf32>
    %351 = vector.extract_strided_slice %347 {offsets = [0, 32], sizes = [1, 32], strides = [1, 1]} : vector<1x96xf32> to vector<1x32xf32>
    %352 = vector.extract_strided_slice %347 {offsets = [0, 64], sizes = [1, 32], strides = [1, 1]} : vector<1x96xf32> to vector<1x32xf32>
    %353 = arith.mulf %351, %335 : vector<1x32xf32>
    %354 = arith.mulf %350, %349 : vector<1x32xf32>
    %355 = arith.addf %353, %354 : vector<1x32xf32>
    %356 = math.tanh %355 : vector<1x32xf32>
    %357 = arith.mulf %352, %356 : vector<1x32xf32>
    %c8_i32_87 = arith.constant 8 : i32
    %c0_88 = arith.constant 0 : index
    %c0_89 = arith.constant 0 : index
    %358 = vector.load %arg16[%c0_88, %c0_89] : memref<1x32xf32, #tpu.memory_space<vmem>>, vector<1x32xf32>
    tpu.vector_store %arg16[%c0_88, %c0_89], %357 {strides = array<i32>} : memref<1x32xf32, #tpu.memory_space<vmem>>, vector<1x32xf32>,
    %c0_90 = arith.constant 0 : index
    %c0_91 = arith.constant 0 : index
    %359 = vector.load %arg7[%c0_90, %c0_91] : memref<32x128xf32, #tpu.memory_space<vmem>>, vector<32x128xf32>
    %cst_92 = arith.constant dense<0.000000e+00> : vector<1x128xf32>
    %360 = tpu.matmul %357, %359, %cst_92 {dimension_numbers = #tpu.dot_dimension_numbers<[1], [0], [0], [1], [0, 0, 1, 1], [], []>} : vector<1x32xf32>, vector<32x128xf32>, vector<1x128xf32> -> vector<1x128xf32>
    %c0_93 = arith.constant 0 : index
    %c0_94 = arith.constant 0 : index
    %361 = vector.load %arg9[%c0_93, %c0_94] : memref<1x128xf32, #tpu.memory_space<vmem>>, vector<1x128xf32>
    %362 = arith.addf %360, %361 : vector<1x128xf32>
    %c0_95 = arith.constant 0 : index
    %c0_96 = arith.constant 0 : index
    %363 = vector.load %arg8[%c0_95, %c0_96] : memref<32x128xf32, #tpu.memory_space<vmem>>, vector<32x128xf32>
    %cst_97 = arith.constant 0.000000e+00 : f32
    %364 = vector.broadcast %cst_97 : f32 to vector<1x32xf32>
    %cst_98 = arith.constant 0.000000e+00 : f32
    %365 = vector.broadcast %cst_98 : f32 to vector<1x32xf32>
    %c0_i32_99 = arith.constant 0 : i32
    %cst_100 = arith.constant dense<0.000000e+00> : vector<1x128xf32>
    %366 = tpu.matmul %364, %363, %cst_100 {dimension_numbers = #tpu.dot_dimension_numbers<[1], [0], [0], [1], [0, 0, 1, 1], [], []>} : vector<1x32xf32>, vector<32x128xf32>, vector<1x128xf32> -> vector<1x128xf32>
    %367 = arith.addf %362, %366 : vector<1x128xf32>
    %368 = vector.extract_strided_slice %367 {offsets = [0, 0], sizes = [1, 96], strides = [1, 1]} : vector<1x128xf32> to vector<1x96xf32>
    %369 = arith.negf %368 : vector<1x96xf32>
    %370 = math.exp %369 : vector<1x96xf32>
    %cst_101 = arith.constant 1.000000e+00 : f32
    %371 = vector.broadcast %cst_101 : f32 to vector<1x96xf32>
    %372 = arith.addf %371, %370 : vector<1x96xf32>
    %373 = arith.divf %371, %372 : vector<1x96xf32>
    %374 = vector.extract_strided_slice %367 {offsets = [0, 96], sizes = [1, 32], strides = [1, 1]} : vector<1x128xf32> to vector<1x32xf32>
    %375 = math.tanh %374 : vector<1x32xf32>
    %376 = vector.extract_strided_slice %373 {offsets = [0, 0], sizes = [1, 32], strides = [1, 1]} : vector<1x96xf32> to vector<1x32xf32>
    %377 = vector.extract_strided_slice %373 {offsets = [0, 32], sizes = [1, 32], strides = [1, 1]} : vector<1x96xf32> to vector<1x32xf32>
    %378 = vector.extract_strided_slice %373 {offsets = [0, 64], sizes = [1, 32], strides = [1, 1]} : vector<1x96xf32> to vector<1x32xf32>
    %379 = arith.mulf %377, %365 : vector<1x32xf32>
    %380 = arith.mulf %376, %375 : vector<1x32xf32>
    %381 = arith.addf %379, %380 : vector<1x32xf32>
    %382 = math.tanh %381 : vector<1x32xf32>
    %383 = arith.mulf %378, %382 : vector<1x32xf32>
    %384 = arith.index_cast %c0_i32_99 : i32 to index
    %c0_102 = arith.constant 0 : index
    %385 = vector.load %arg20[%384, %c0_102] : memref<8x32xf32, #tpu.memory_space<vmem>>, vector<1x32xf32>
    tpu.vector_store %arg20[%384, %c0_102], %383 {strides = array<i32>} : memref<8x32xf32, #tpu.memory_space<vmem>>, vector<1x32xf32>,
    %c1_i32_103 = arith.constant 1 : i32
    %cst_104 = arith.constant dense<0.000000e+00> : vector<1x128xf32>
    %386 = tpu.matmul %383, %363, %cst_104 {dimension_numbers = #tpu.dot_dimension_numbers<[1], [0], [0], [1], [0, 0, 1, 1], [], []>} : vector<1x32xf32>, vector<32x128xf32>, vector<1x128xf32> -> vector<1x128xf32>
    %387 = arith.addf %362, %386 : vector<1x128xf32>
    %388 = vector.extract_strided_slice %387 {offsets = [0, 0], sizes = [1, 96], strides = [1, 1]} : vector<1x128xf32> to vector<1x96xf32>
    %389 = arith.negf %388 : vector<1x96xf32>
    %390 = math.exp %389 : vector<1x96xf32>
    %cst_105 = arith.constant 1.000000e+00 : f32
    %391 = vector.broadcast %cst_105 : f32 to vector<1x96xf32>
    %392 = arith.addf %391, %390 : vector<1x96xf32>
    %393 = arith.divf %391, %392 : vector<1x96xf32>
    %394 = vector.extract_strided_slice %387 {offsets = [0, 96], sizes = [1, 32], strides = [1, 1]} : vector<1x128xf32> to vector<1x32xf32>
    %395 = math.tanh %394 : vector<1x32xf32>
    %396 = vector.extract_strided_slice %393 {offsets = [0, 0], sizes = [1, 32], strides = [1, 1]} : vector<1x96xf32> to vector<1x32xf32>
    %397 = vector.extract_strided_slice %393 {offsets = [0, 32], sizes = [1, 32], strides = [1, 1]} : vector<1x96xf32> to vector<1x32xf32>
    %398 = vector.extract_strided_slice %393 {offsets = [0, 64], sizes = [1, 32], strides = [1, 1]} : vector<1x96xf32> to vector<1x32xf32>
    %399 = arith.mulf %397, %381 : vector<1x32xf32>
    %400 = arith.mulf %396, %395 : vector<1x32xf32>
    %401 = arith.addf %399, %400 : vector<1x32xf32>
    %402 = math.tanh %401 : vector<1x32xf32>
    %403 = arith.mulf %398, %402 : vector<1x32xf32>
    %404 = arith.index_cast %c1_i32_103 : i32 to index
    %c0_106 = arith.constant 0 : index
    %405 = vector.load %arg20[%404, %c0_106] : memref<8x32xf32, #tpu.memory_space<vmem>>, vector<1x32xf32>
    tpu.vector_store %arg20[%404, %c0_106], %403 {strides = array<i32>} : memref<8x32xf32, #tpu.memory_space<vmem>>, vector<1x32xf32>,
    %c2_i32_107 = arith.constant 2 : i32
    %cst_108 = arith.constant dense<0.000000e+00> : vector<1x128xf32>
    %406 = tpu.matmul %403, %363, %cst_108 {dimension_numbers = #tpu.dot_dimension_numbers<[1], [0], [0], [1], [0, 0, 1, 1], [], []>} : vector<1x32xf32>, vector<32x128xf32>, vector<1x128xf32> -> vector<1x128xf32>
    %407 = arith.addf %362, %406 : vector<1x128xf32>
    %408 = vector.extract_strided_slice %407 {offsets = [0, 0], sizes = [1, 96], strides = [1, 1]} : vector<1x128xf32> to vector<1x96xf32>
    %409 = arith.negf %408 : vector<1x96xf32>
    %410 = math.exp %409 : vector<1x96xf32>
    %cst_109 = arith.constant 1.000000e+00 : f32
    %411 = vector.broadcast %cst_109 : f32 to vector<1x96xf32>
    %412 = arith.addf %411, %410 : vector<1x96xf32>
    %413 = arith.divf %411, %412 : vector<1x96xf32>
    %414 = vector.extract_strided_slice %407 {offsets = [0, 96], sizes = [1, 32], strides = [1, 1]} : vector<1x128xf32> to vector<1x32xf32>
    %415 = math.tanh %414 : vector<1x32xf32>
    %416 = vector.extract_strided_slice %413 {offsets = [0, 0], sizes = [1, 32], strides = [1, 1]} : vector<1x96xf32> to vector<1x32xf32>
    %417 = vector.extract_strided_slice %413 {offsets = [0, 32], sizes = [1, 32], strides = [1, 1]} : vector<1x96xf32> to vector<1x32xf32>
    %418 = vector.extract_strided_slice %413 {offsets = [0, 64], sizes = [1, 32], strides = [1, 1]} : vector<1x96xf32> to vector<1x32xf32>
    %419 = arith.mulf %417, %401 : vector<1x32xf32>
    %420 = arith.mulf %416, %415 : vector<1x32xf32>
    %421 = arith.addf %419, %420 : vector<1x32xf32>
    %422 = math.tanh %421 : vector<1x32xf32>
    %423 = arith.mulf %418, %422 : vector<1x32xf32>
    %424 = arith.index_cast %c2_i32_107 : i32 to index
    %c0_110 = arith.constant 0 : index
    %425 = vector.load %arg20[%424, %c0_110] : memref<8x32xf32, #tpu.memory_space<vmem>>, vector<1x32xf32>
    tpu.vector_store %arg20[%424, %c0_110], %423 {strides = array<i32>} : memref<8x32xf32, #tpu.memory_space<vmem>>, vector<1x32xf32>,
    %c3_i32_111 = arith.constant 3 : i32
    %cst_112 = arith.constant dense<0.000000e+00> : vector<1x128xf32>
    %426 = tpu.matmul %423, %363, %cst_112 {dimension_numbers = #tpu.dot_dimension_numbers<[1], [0], [0], [1], [0, 0, 1, 1], [], []>} : vector<1x32xf32>, vector<32x128xf32>, vector<1x128xf32> -> vector<1x128xf32>
    %427 = arith.addf %362, %426 : vector<1x128xf32>
    %428 = vector.extract_strided_slice %427 {offsets = [0, 0], sizes = [1, 96], strides = [1, 1]} : vector<1x128xf32> to vector<1x96xf32>
    %429 = arith.negf %428 : vector<1x96xf32>
    %430 = math.exp %429 : vector<1x96xf32>
    %cst_113 = arith.constant 1.000000e+00 : f32
    %431 = vector.broadcast %cst_113 : f32 to vector<1x96xf32>
    %432 = arith.addf %431, %430 : vector<1x96xf32>
    %433 = arith.divf %431, %432 : vector<1x96xf32>
    %434 = vector.extract_strided_slice %427 {offsets = [0, 96], sizes = [1, 32], strides = [1, 1]} : vector<1x128xf32> to vector<1x32xf32>
    %435 = math.tanh %434 : vector<1x32xf32>
    %436 = vector.extract_strided_slice %433 {offsets = [0, 0], sizes = [1, 32], strides = [1, 1]} : vector<1x96xf32> to vector<1x32xf32>
    %437 = vector.extract_strided_slice %433 {offsets = [0, 32], sizes = [1, 32], strides = [1, 1]} : vector<1x96xf32> to vector<1x32xf32>
    %438 = vector.extract_strided_slice %433 {offsets = [0, 64], sizes = [1, 32], strides = [1, 1]} : vector<1x96xf32> to vector<1x32xf32>
    %439 = arith.mulf %437, %421 : vector<1x32xf32>
    %440 = arith.mulf %436, %435 : vector<1x32xf32>
    %441 = arith.addf %439, %440 : vector<1x32xf32>
    %442 = math.tanh %441 : vector<1x32xf32>
    %443 = arith.mulf %438, %442 : vector<1x32xf32>
    %444 = arith.index_cast %c3_i32_111 : i32 to index
    %c0_114 = arith.constant 0 : index
    %445 = vector.load %arg20[%444, %c0_114] : memref<8x32xf32, #tpu.memory_space<vmem>>, vector<1x32xf32>
    tpu.vector_store %arg20[%444, %c0_114], %443 {strides = array<i32>} : memref<8x32xf32, #tpu.memory_space<vmem>>, vector<1x32xf32>,
    %c4_i32_115 = arith.constant 4 : i32
    %cst_116 = arith.constant dense<0.000000e+00> : vector<1x128xf32>
    %446 = tpu.matmul %443, %363, %cst_116 {dimension_numbers = #tpu.dot_dimension_numbers<[1], [0], [0], [1], [0, 0, 1, 1], [], []>} : vector<1x32xf32>, vector<32x128xf32>, vector<1x128xf32> -> vector<1x128xf32>
    %447 = arith.addf %362, %446 : vector<1x128xf32>
    %448 = vector.extract_strided_slice %447 {offsets = [0, 0], sizes = [1, 96], strides = [1, 1]} : vector<1x128xf32> to vector<1x96xf32>
    %449 = arith.negf %448 : vector<1x96xf32>
    %450 = math.exp %449 : vector<1x96xf32>
    %cst_117 = arith.constant 1.000000e+00 : f32
    %451 = vector.broadcast %cst_117 : f32 to vector<1x96xf32>
    %452 = arith.addf %451, %450 : vector<1x96xf32>
    %453 = arith.divf %451, %452 : vector<1x96xf32>
    %454 = vector.extract_strided_slice %447 {offsets = [0, 96], sizes = [1, 32], strides = [1, 1]} : vector<1x128xf32> to vector<1x32xf32>
    %455 = math.tanh %454 : vector<1x32xf32>
    %456 = vector.extract_strided_slice %453 {offsets = [0, 0], sizes = [1, 32], strides = [1, 1]} : vector<1x96xf32> to vector<1x32xf32>
    %457 = vector.extract_strided_slice %453 {offsets = [0, 32], sizes = [1, 32], strides = [1, 1]} : vector<1x96xf32> to vector<1x32xf32>
    %458 = vector.extract_strided_slice %453 {offsets = [0, 64], sizes = [1, 32], strides = [1, 1]} : vector<1x96xf32> to vector<1x32xf32>
    %459 = arith.mulf %457, %441 : vector<1x32xf32>
    %460 = arith.mulf %456, %455 : vector<1x32xf32>
    %461 = arith.addf %459, %460 : vector<1x32xf32>
    %462 = math.tanh %461 : vector<1x32xf32>
    %463 = arith.mulf %458, %462 : vector<1x32xf32>
    %464 = arith.index_cast %c4_i32_115 : i32 to index
    %c0_118 = arith.constant 0 : index
    %465 = vector.load %arg20[%464, %c0_118] : memref<8x32xf32, #tpu.memory_space<vmem>>, vector<1x32xf32>
    tpu.vector_store %arg20[%464, %c0_118], %463 {strides = array<i32>} : memref<8x32xf32, #tpu.memory_space<vmem>>, vector<1x32xf32>,
    %c5_i32_119 = arith.constant 5 : i32
    %cst_120 = arith.constant dense<0.000000e+00> : vector<1x128xf32>
    %466 = tpu.matmul %463, %363, %cst_120 {dimension_numbers = #tpu.dot_dimension_numbers<[1], [0], [0], [1], [0, 0, 1, 1], [], []>} : vector<1x32xf32>, vector<32x128xf32>, vector<1x128xf32> -> vector<1x128xf32>
    %467 = arith.addf %362, %466 : vector<1x128xf32>
    %468 = vector.extract_strided_slice %467 {offsets = [0, 0], sizes = [1, 96], strides = [1, 1]} : vector<1x128xf32> to vector<1x96xf32>
    %469 = arith.negf %468 : vector<1x96xf32>
    %470 = math.exp %469 : vector<1x96xf32>
    %cst_121 = arith.constant 1.000000e+00 : f32
    %471 = vector.broadcast %cst_121 : f32 to vector<1x96xf32>
    %472 = arith.addf %471, %470 : vector<1x96xf32>
    %473 = arith.divf %471, %472 : vector<1x96xf32>
    %474 = vector.extract_strided_slice %467 {offsets = [0, 96], sizes = [1, 32], strides = [1, 1]} : vector<1x128xf32> to vector<1x32xf32>
    %475 = math.tanh %474 : vector<1x32xf32>
    %476 = vector.extract_strided_slice %473 {offsets = [0, 0], sizes = [1, 32], strides = [1, 1]} : vector<1x96xf32> to vector<1x32xf32>
    %477 = vector.extract_strided_slice %473 {offsets = [0, 32], sizes = [1, 32], strides = [1, 1]} : vector<1x96xf32> to vector<1x32xf32>
    %478 = vector.extract_strided_slice %473 {offsets = [0, 64], sizes = [1, 32], strides = [1, 1]} : vector<1x96xf32> to vector<1x32xf32>
    %479 = arith.mulf %477, %461 : vector<1x32xf32>
    %480 = arith.mulf %476, %475 : vector<1x32xf32>
    %481 = arith.addf %479, %480 : vector<1x32xf32>
    %482 = math.tanh %481 : vector<1x32xf32>
    %483 = arith.mulf %478, %482 : vector<1x32xf32>
    %484 = arith.index_cast %c5_i32_119 : i32 to index
    %c0_122 = arith.constant 0 : index
    %485 = vector.load %arg20[%484, %c0_122] : memref<8x32xf32, #tpu.memory_space<vmem>>, vector<1x32xf32>
    tpu.vector_store %arg20[%484, %c0_122], %483 {strides = array<i32>} : memref<8x32xf32, #tpu.memory_space<vmem>>, vector<1x32xf32>,
    %c6_i32_123 = arith.constant 6 : i32
    %cst_124 = arith.constant dense<0.000000e+00> : vector<1x128xf32>
    %486 = tpu.matmul %483, %363, %cst_124 {dimension_numbers = #tpu.dot_dimension_numbers<[1], [0], [0], [1], [0, 0, 1, 1], [], []>} : vector<1x32xf32>, vector<32x128xf32>, vector<1x128xf32> -> vector<1x128xf32>
    %487 = arith.addf %362, %486 : vector<1x128xf32>
    %488 = vector.extract_strided_slice %487 {offsets = [0, 0], sizes = [1, 96], strides = [1, 1]} : vector<1x128xf32> to vector<1x96xf32>
    %489 = arith.negf %488 : vector<1x96xf32>
    %490 = math.exp %489 : vector<1x96xf32>
    %cst_125 = arith.constant 1.000000e+00 : f32
    %491 = vector.broadcast %cst_125 : f32 to vector<1x96xf32>
    %492 = arith.addf %491, %490 : vector<1x96xf32>
    %493 = arith.divf %491, %492 : vector<1x96xf32>
    %494 = vector.extract_strided_slice %487 {offsets = [0, 96], sizes = [1, 32], strides = [1, 1]} : vector<1x128xf32> to vector<1x32xf32>
    %495 = math.tanh %494 : vector<1x32xf32>
    %496 = vector.extract_strided_slice %493 {offsets = [0, 0], sizes = [1, 32], strides = [1, 1]} : vector<1x96xf32> to vector<1x32xf32>
    %497 = vector.extract_strided_slice %493 {offsets = [0, 32], sizes = [1, 32], strides = [1, 1]} : vector<1x96xf32> to vector<1x32xf32>
    %498 = vector.extract_strided_slice %493 {offsets = [0, 64], sizes = [1, 32], strides = [1, 1]} : vector<1x96xf32> to vector<1x32xf32>
    %499 = arith.mulf %497, %481 : vector<1x32xf32>
    %500 = arith.mulf %496, %495 : vector<1x32xf32>
    %501 = arith.addf %499, %500 : vector<1x32xf32>
    %502 = math.tanh %501 : vector<1x32xf32>
    %503 = arith.mulf %498, %502 : vector<1x32xf32>
    %504 = arith.index_cast %c6_i32_123 : i32 to index
    %c0_126 = arith.constant 0 : index
    %505 = vector.load %arg20[%504, %c0_126] : memref<8x32xf32, #tpu.memory_space<vmem>>, vector<1x32xf32>
    tpu.vector_store %arg20[%504, %c0_126], %503 {strides = array<i32>} : memref<8x32xf32, #tpu.memory_space<vmem>>, vector<1x32xf32>,
    %c7_i32_127 = arith.constant 7 : i32
    %cst_128 = arith.constant dense<0.000000e+00> : vector<1x128xf32>
    %506 = tpu.matmul %503, %363, %cst_128 {dimension_numbers = #tpu.dot_dimension_numbers<[1], [0], [0], [1], [0, 0, 1, 1], [], []>} : vector<1x32xf32>, vector<32x128xf32>, vector<1x128xf32> -> vector<1x128xf32>
    %507 = arith.addf %362, %506 : vector<1x128xf32>
    %508 = vector.extract_strided_slice %507 {offsets = [0, 0], sizes = [1, 96], strides = [1, 1]} : vector<1x128xf32> to vector<1x96xf32>
    %509 = arith.negf %508 : vector<1x96xf32>
    %510 = math.exp %509 : vector<1x96xf32>
    %cst_129 = arith.constant 1.000000e+00 : f32
    %511 = vector.broadcast %cst_129 : f32 to vector<1x96xf32>
    %512 = arith.addf %511, %510 : vector<1x96xf32>
    %513 = arith.divf %511, %512 : vector<1x96xf32>
    %514 = vector.extract_strided_slice %507 {offsets = [0, 96], sizes = [1, 32], strides = [1, 1]} : vector<1x128xf32> to vector<1x32xf32>
    %515 = math.tanh %514 : vector<1x32xf32>
    %516 = vector.extract_strided_slice %513 {offsets = [0, 0], sizes = [1, 32], strides = [1, 1]} : vector<1x96xf32> to vector<1x32xf32>
    %517 = vector.extract_strided_slice %513 {offsets = [0, 32], sizes = [1, 32], strides = [1, 1]} : vector<1x96xf32> to vector<1x32xf32>
    %518 = vector.extract_strided_slice %513 {offsets = [0, 64], sizes = [1, 32], strides = [1, 1]} : vector<1x96xf32> to vector<1x32xf32>
    %519 = arith.mulf %517, %501 : vector<1x32xf32>
    %520 = arith.mulf %516, %515 : vector<1x32xf32>
    %521 = arith.addf %519, %520 : vector<1x32xf32>
    %522 = math.tanh %521 : vector<1x32xf32>
    %523 = arith.mulf %518, %522 : vector<1x32xf32>
    %524 = arith.index_cast %c7_i32_127 : i32 to index
    %c0_130 = arith.constant 0 : index
    %525 = vector.load %arg20[%524, %c0_130] : memref<8x32xf32, #tpu.memory_space<vmem>>, vector<1x32xf32>
    tpu.vector_store %arg20[%524, %c0_130], %523 {strides = array<i32>} : memref<8x32xf32, #tpu.memory_space<vmem>>, vector<1x32xf32>,
    %c8_i32_131 = arith.constant 8 : i32
    %c0_132 = arith.constant 0 : index
    %c0_133 = arith.constant 0 : index
    %526 = vector.load %arg20[%c0_132, %c0_133] : memref<8x32xf32, #tpu.memory_space<vmem>>, vector<8x32xf32>
    %c0_134 = arith.constant 0 : index
    %c0_135 = arith.constant 0 : index
    %527 = vector.load %arg10[%c0_134, %c0_135] : memref<32x256xf32, #tpu.memory_space<vmem>>, vector<32x256xf32>
    %cst_136 = arith.constant dense<0.000000e+00> : vector<8x256xf32>
    %528 = tpu.matmul %526, %527, %cst_136 {dimension_numbers = #tpu.dot_dimension_numbers<[1], [0], [0], [1], [0, 0, 1, 1], [], []>} : vector<8x32xf32>, vector<32x256xf32>, vector<8x256xf32> -> vector<8x256xf32>
    %c0_137 = arith.constant 0 : index
    %c0_138 = arith.constant 0 : index
    %529 = vector.load %arg12[%c0_137, %c0_138] : memref<1x256xf32, #tpu.memory_space<vmem>>, vector<1x256xf32>
    %530 = vector.broadcast %529 : vector<1x256xf32> to vector<8x256xf32>
    %531 = arith.addf %528, %530 : vector<8x256xf32>
    %c0_139 = arith.constant 0 : index
    %c0_140 = arith.constant 0 : index
    %532 = vector.load %arg17[%c0_139, %c0_140] : memref<8x256xf32, #tpu.memory_space<vmem>>, vector<8x256xf32>
    tpu.vector_store %arg17[%c0_139, %c0_140], %531 {strides = array<i32>} : memref<8x256xf32, #tpu.memory_space<vmem>>, vector<8x256xf32>,
    %c0_141 = arith.constant 0 : index
    %c0_142 = arith.constant 0 : index
    %533 = vector.load %arg11[%c0_141, %c0_142] : memref<64x256xf32, #tpu.memory_space<vmem>>, vector<64x256xf32>
    %cst_143 = arith.constant 0.000000e+00 : f32
    %534 = vector.broadcast %cst_143 : f32 to vector<1x64xf32>
    %cst_144 = arith.constant 0.000000e+00 : f32
    %535 = vector.broadcast %cst_144 : f32 to vector<1x64xf32>
    %c0_i32_145 = arith.constant 0 : i32
    %536 = arith.index_cast %c0_i32_145 : i32 to index
    %c0_146 = arith.constant 0 : index
    %537 = vector.load %arg17[%536, %c0_146] : memref<8x256xf32, #tpu.memory_space<vmem>>, vector<1x256xf32>
    %cst_147 = arith.constant dense<0.000000e+00> : vector<1x256xf32>
    %538 = tpu.matmul %534, %533, %cst_147 {dimension_numbers = #tpu.dot_dimension_numbers<[1], [0], [0], [1], [0, 0, 1, 1], [], []>} : vector<1x64xf32>, vector<64x256xf32>, vector<1x256xf32> -> vector<1x256xf32>
    %539 = arith.addf %537, %538 : vector<1x256xf32>
    %540 = vector.extract_strided_slice %539 {offsets = [0, 0], sizes = [1, 192], strides = [1, 1]} : vector<1x256xf32> to vector<1x192xf32>
    %541 = arith.negf %540 : vector<1x192xf32>
    %542 = math.exp %541 : vector<1x192xf32>
    %cst_148 = arith.constant 1.000000e+00 : f32
    %543 = vector.broadcast %cst_148 : f32 to vector<1x192xf32>
    %544 = arith.addf %543, %542 : vector<1x192xf32>
    %545 = arith.divf %543, %544 : vector<1x192xf32>
    %546 = vector.extract_strided_slice %539 {offsets = [0, 192], sizes = [1, 64], strides = [1, 1]} : vector<1x256xf32> to vector<1x64xf32>
    %547 = math.tanh %546 : vector<1x64xf32>
    %548 = vector.extract_strided_slice %545 {offsets = [0, 0], sizes = [1, 64], strides = [1, 1]} : vector<1x192xf32> to vector<1x64xf32>
    %549 = vector.extract_strided_slice %545 {offsets = [0, 64], sizes = [1, 64], strides = [1, 1]} : vector<1x192xf32> to vector<1x64xf32>
    %550 = vector.extract_strided_slice %545 {offsets = [0, 128], sizes = [1, 64], strides = [1, 1]} : vector<1x192xf32> to vector<1x64xf32>
    %551 = arith.mulf %549, %535 : vector<1x64xf32>
    %552 = arith.mulf %548, %547 : vector<1x64xf32>
    %553 = arith.addf %551, %552 : vector<1x64xf32>
    %554 = math.tanh %553 : vector<1x64xf32>
    %555 = arith.mulf %550, %554 : vector<1x64xf32>
    %556 = arith.index_cast %c0_i32_145 : i32 to index
    %c0_149 = arith.constant 0 : index
    %557 = vector.load %arg19[%556, %c0_149] : memref<8x64xf32, #tpu.memory_space<vmem>>, vector<1x64xf32>
    tpu.vector_store %arg19[%556, %c0_149], %555 {strides = array<i32>} : memref<8x64xf32, #tpu.memory_space<vmem>>, vector<1x64xf32>,
    %c1_i32_150 = arith.constant 1 : i32
    %558 = arith.index_cast %c1_i32_150 : i32 to index
    %c0_151 = arith.constant 0 : index
    %559 = vector.load %arg17[%558, %c0_151] : memref<8x256xf32, #tpu.memory_space<vmem>>, vector<1x256xf32>
    %cst_152 = arith.constant dense<0.000000e+00> : vector<1x256xf32>
    %560 = tpu.matmul %555, %533, %cst_152 {dimension_numbers = #tpu.dot_dimension_numbers<[1], [0], [0], [1], [0, 0, 1, 1], [], []>} : vector<1x64xf32>, vector<64x256xf32>, vector<1x256xf32> -> vector<1x256xf32>
    %561 = arith.addf %559, %560 : vector<1x256xf32>
    %562 = vector.extract_strided_slice %561 {offsets = [0, 0], sizes = [1, 192], strides = [1, 1]} : vector<1x256xf32> to vector<1x192xf32>
    %563 = arith.negf %562 : vector<1x192xf32>
    %564 = math.exp %563 : vector<1x192xf32>
    %cst_153 = arith.constant 1.000000e+00 : f32
    %565 = vector.broadcast %cst_153 : f32 to vector<1x192xf32>
    %566 = arith.addf %565, %564 : vector<1x192xf32>
    %567 = arith.divf %565, %566 : vector<1x192xf32>
    %568 = vector.extract_strided_slice %561 {offsets = [0, 192], sizes = [1, 64], strides = [1, 1]} : vector<1x256xf32> to vector<1x64xf32>
    %569 = math.tanh %568 : vector<1x64xf32>
    %570 = vector.extract_strided_slice %567 {offsets = [0, 0], sizes = [1, 64], strides = [1, 1]} : vector<1x192xf32> to vector<1x64xf32>
    %571 = vector.extract_strided_slice %567 {offsets = [0, 64], sizes = [1, 64], strides = [1, 1]} : vector<1x192xf32> to vector<1x64xf32>
    %572 = vector.extract_strided_slice %567 {offsets = [0, 128], sizes = [1, 64], strides = [1, 1]} : vector<1x192xf32> to vector<1x64xf32>
    %573 = arith.mulf %571, %553 : vector<1x64xf32>
    %574 = arith.mulf %570, %569 : vector<1x64xf32>
    %575 = arith.addf %573, %574 : vector<1x64xf32>
    %576 = math.tanh %575 : vector<1x64xf32>
    %577 = arith.mulf %572, %576 : vector<1x64xf32>
    %578 = arith.index_cast %c1_i32_150 : i32 to index
    %c0_154 = arith.constant 0 : index
    %579 = vector.load %arg19[%578, %c0_154] : memref<8x64xf32, #tpu.memory_space<vmem>>, vector<1x64xf32>
    tpu.vector_store %arg19[%578, %c0_154], %577 {strides = array<i32>} : memref<8x64xf32, #tpu.memory_space<vmem>>, vector<1x64xf32>,
    %c2_i32_155 = arith.constant 2 : i32
    %580 = arith.index_cast %c2_i32_155 : i32 to index
    %c0_156 = arith.constant 0 : index
    %581 = vector.load %arg17[%580, %c0_156] : memref<8x256xf32, #tpu.memory_space<vmem>>, vector<1x256xf32>
    %cst_157 = arith.constant dense<0.000000e+00> : vector<1x256xf32>
    %582 = tpu.matmul %577, %533, %cst_157 {dimension_numbers = #tpu.dot_dimension_numbers<[1], [0], [0], [1], [0, 0, 1, 1], [], []>} : vector<1x64xf32>, vector<64x256xf32>, vector<1x256xf32> -> vector<1x256xf32>
    %583 = arith.addf %581, %582 : vector<1x256xf32>
    %584 = vector.extract_strided_slice %583 {offsets = [0, 0], sizes = [1, 192], strides = [1, 1]} : vector<1x256xf32> to vector<1x192xf32>
    %585 = arith.negf %584 : vector<1x192xf32>
    %586 = math.exp %585 : vector<1x192xf32>
    %cst_158 = arith.constant 1.000000e+00 : f32
    %587 = vector.broadcast %cst_158 : f32 to vector<1x192xf32>
    %588 = arith.addf %587, %586 : vector<1x192xf32>
    %589 = arith.divf %587, %588 : vector<1x192xf32>
    %590 = vector.extract_strided_slice %583 {offsets = [0, 192], sizes = [1, 64], strides = [1, 1]} : vector<1x256xf32> to vector<1x64xf32>
    %591 = math.tanh %590 : vector<1x64xf32>
    %592 = vector.extract_strided_slice %589 {offsets = [0, 0], sizes = [1, 64], strides = [1, 1]} : vector<1x192xf32> to vector<1x64xf32>
    %593 = vector.extract_strided_slice %589 {offsets = [0, 64], sizes = [1, 64], strides = [1, 1]} : vector<1x192xf32> to vector<1x64xf32>
    %594 = vector.extract_strided_slice %589 {offsets = [0, 128], sizes = [1, 64], strides = [1, 1]} : vector<1x192xf32> to vector<1x64xf32>
    %595 = arith.mulf %593, %575 : vector<1x64xf32>
    %596 = arith.mulf %592, %591 : vector<1x64xf32>
    %597 = arith.addf %595, %596 : vector<1x64xf32>
    %598 = math.tanh %597 : vector<1x64xf32>
    %599 = arith.mulf %594, %598 : vector<1x64xf32>
    %600 = arith.index_cast %c2_i32_155 : i32 to index
    %c0_159 = arith.constant 0 : index
    %601 = vector.load %arg19[%600, %c0_159] : memref<8x64xf32, #tpu.memory_space<vmem>>, vector<1x64xf32>
    tpu.vector_store %arg19[%600, %c0_159], %599 {strides = array<i32>} : memref<8x64xf32, #tpu.memory_space<vmem>>, vector<1x64xf32>,
    %c3_i32_160 = arith.constant 3 : i32
    %602 = arith.index_cast %c3_i32_160 : i32 to index
    %c0_161 = arith.constant 0 : index
    %603 = vector.load %arg17[%602, %c0_161] : memref<8x256xf32, #tpu.memory_space<vmem>>, vector<1x256xf32>
    %cst_162 = arith.constant dense<0.000000e+00> : vector<1x256xf32>
    %604 = tpu.matmul %599, %533, %cst_162 {dimension_numbers = #tpu.dot_dimension_numbers<[1], [0], [0], [1], [0, 0, 1, 1], [], []>} : vector<1x64xf32>, vector<64x256xf32>, vector<1x256xf32> -> vector<1x256xf32>
    %605 = arith.addf %603, %604 : vector<1x256xf32>
    %606 = vector.extract_strided_slice %605 {offsets = [0, 0], sizes = [1, 192], strides = [1, 1]} : vector<1x256xf32> to vector<1x192xf32>
    %607 = arith.negf %606 : vector<1x192xf32>
    %608 = math.exp %607 : vector<1x192xf32>
    %cst_163 = arith.constant 1.000000e+00 : f32
    %609 = vector.broadcast %cst_163 : f32 to vector<1x192xf32>
    %610 = arith.addf %609, %608 : vector<1x192xf32>
    %611 = arith.divf %609, %610 : vector<1x192xf32>
    %612 = vector.extract_strided_slice %605 {offsets = [0, 192], sizes = [1, 64], strides = [1, 1]} : vector<1x256xf32> to vector<1x64xf32>
    %613 = math.tanh %612 : vector<1x64xf32>
    %614 = vector.extract_strided_slice %611 {offsets = [0, 0], sizes = [1, 64], strides = [1, 1]} : vector<1x192xf32> to vector<1x64xf32>
    %615 = vector.extract_strided_slice %611 {offsets = [0, 64], sizes = [1, 64], strides = [1, 1]} : vector<1x192xf32> to vector<1x64xf32>
    %616 = vector.extract_strided_slice %611 {offsets = [0, 128], sizes = [1, 64], strides = [1, 1]} : vector<1x192xf32> to vector<1x64xf32>
    %617 = arith.mulf %615, %597 : vector<1x64xf32>
    %618 = arith.mulf %614, %613 : vector<1x64xf32>
    %619 = arith.addf %617, %618 : vector<1x64xf32>
    %620 = math.tanh %619 : vector<1x64xf32>
    %621 = arith.mulf %616, %620 : vector<1x64xf32>
    %622 = arith.index_cast %c3_i32_160 : i32 to index
    %c0_164 = arith.constant 0 : index
    %623 = vector.load %arg19[%622, %c0_164] : memref<8x64xf32, #tpu.memory_space<vmem>>, vector<1x64xf32>
    tpu.vector_store %arg19[%622, %c0_164], %621 {strides = array<i32>} : memref<8x64xf32, #tpu.memory_space<vmem>>, vector<1x64xf32>,
    %c4_i32_165 = arith.constant 4 : i32
    %624 = arith.index_cast %c4_i32_165 : i32 to index
    %c0_166 = arith.constant 0 : index
    %625 = vector.load %arg17[%624, %c0_166] : memref<8x256xf32, #tpu.memory_space<vmem>>, vector<1x256xf32>
    %cst_167 = arith.constant dense<0.000000e+00> : vector<1x256xf32>
    %626 = tpu.matmul %621, %533, %cst_167 {dimension_numbers = #tpu.dot_dimension_numbers<[1], [0], [0], [1], [0, 0, 1, 1], [], []>} : vector<1x64xf32>, vector<64x256xf32>, vector<1x256xf32> -> vector<1x256xf32>
    %627 = arith.addf %625, %626 : vector<1x256xf32>
    %628 = vector.extract_strided_slice %627 {offsets = [0, 0], sizes = [1, 192], strides = [1, 1]} : vector<1x256xf32> to vector<1x192xf32>
    %629 = arith.negf %628 : vector<1x192xf32>
    %630 = math.exp %629 : vector<1x192xf32>
    %cst_168 = arith.constant 1.000000e+00 : f32
    %631 = vector.broadcast %cst_168 : f32 to vector<1x192xf32>
    %632 = arith.addf %631, %630 : vector<1x192xf32>
    %633 = arith.divf %631, %632 : vector<1x192xf32>
    %634 = vector.extract_strided_slice %627 {offsets = [0, 192], sizes = [1, 64], strides = [1, 1]} : vector<1x256xf32> to vector<1x64xf32>
    %635 = math.tanh %634 : vector<1x64xf32>
    %636 = vector.extract_strided_slice %633 {offsets = [0, 0], sizes = [1, 64], strides = [1, 1]} : vector<1x192xf32> to vector<1x64xf32>
    %637 = vector.extract_strided_slice %633 {offsets = [0, 64], sizes = [1, 64], strides = [1, 1]} : vector<1x192xf32> to vector<1x64xf32>
    %638 = vector.extract_strided_slice %633 {offsets = [0, 128], sizes = [1, 64], strides = [1, 1]} : vector<1x192xf32> to vector<1x64xf32>
    %639 = arith.mulf %637, %619 : vector<1x64xf32>
    %640 = arith.mulf %636, %635 : vector<1x64xf32>
    %641 = arith.addf %639, %640 : vector<1x64xf32>
    %642 = math.tanh %641 : vector<1x64xf32>
    %643 = arith.mulf %638, %642 : vector<1x64xf32>
    %644 = arith.index_cast %c4_i32_165 : i32 to index
    %c0_169 = arith.constant 0 : index
    %645 = vector.load %arg19[%644, %c0_169] : memref<8x64xf32, #tpu.memory_space<vmem>>, vector<1x64xf32>
    tpu.vector_store %arg19[%644, %c0_169], %643 {strides = array<i32>} : memref<8x64xf32, #tpu.memory_space<vmem>>, vector<1x64xf32>,
    %c5_i32_170 = arith.constant 5 : i32
    %646 = arith.index_cast %c5_i32_170 : i32 to index
    %c0_171 = arith.constant 0 : index
    %647 = vector.load %arg17[%646, %c0_171] : memref<8x256xf32, #tpu.memory_space<vmem>>, vector<1x256xf32>
    %cst_172 = arith.constant dense<0.000000e+00> : vector<1x256xf32>
    %648 = tpu.matmul %643, %533, %cst_172 {dimension_numbers = #tpu.dot_dimension_numbers<[1], [0], [0], [1], [0, 0, 1, 1], [], []>} : vector<1x64xf32>, vector<64x256xf32>, vector<1x256xf32> -> vector<1x256xf32>
    %649 = arith.addf %647, %648 : vector<1x256xf32>
    %650 = vector.extract_strided_slice %649 {offsets = [0, 0], sizes = [1, 192], strides = [1, 1]} : vector<1x256xf32> to vector<1x192xf32>
    %651 = arith.negf %650 : vector<1x192xf32>
    %652 = math.exp %651 : vector<1x192xf32>
    %cst_173 = arith.constant 1.000000e+00 : f32
    %653 = vector.broadcast %cst_173 : f32 to vector<1x192xf32>
    %654 = arith.addf %653, %652 : vector<1x192xf32>
    %655 = arith.divf %653, %654 : vector<1x192xf32>
    %656 = vector.extract_strided_slice %649 {offsets = [0, 192], sizes = [1, 64], strides = [1, 1]} : vector<1x256xf32> to vector<1x64xf32>
    %657 = math.tanh %656 : vector<1x64xf32>
    %658 = vector.extract_strided_slice %655 {offsets = [0, 0], sizes = [1, 64], strides = [1, 1]} : vector<1x192xf32> to vector<1x64xf32>
    %659 = vector.extract_strided_slice %655 {offsets = [0, 64], sizes = [1, 64], strides = [1, 1]} : vector<1x192xf32> to vector<1x64xf32>
    %660 = vector.extract_strided_slice %655 {offsets = [0, 128], sizes = [1, 64], strides = [1, 1]} : vector<1x192xf32> to vector<1x64xf32>
    %661 = arith.mulf %659, %641 : vector<1x64xf32>
    %662 = arith.mulf %658, %657 : vector<1x64xf32>
    %663 = arith.addf %661, %662 : vector<1x64xf32>
    %664 = math.tanh %663 : vector<1x64xf32>
    %665 = arith.mulf %660, %664 : vector<1x64xf32>
    %666 = arith.index_cast %c5_i32_170 : i32 to index
    %c0_174 = arith.constant 0 : index
    %667 = vector.load %arg19[%666, %c0_174] : memref<8x64xf32, #tpu.memory_space<vmem>>, vector<1x64xf32>
    tpu.vector_store %arg19[%666, %c0_174], %665 {strides = array<i32>} : memref<8x64xf32, #tpu.memory_space<vmem>>, vector<1x64xf32>,
    %c6_i32_175 = arith.constant 6 : i32
    %668 = arith.index_cast %c6_i32_175 : i32 to index
    %c0_176 = arith.constant 0 : index
    %669 = vector.load %arg17[%668, %c0_176] : memref<8x256xf32, #tpu.memory_space<vmem>>, vector<1x256xf32>
    %cst_177 = arith.constant dense<0.000000e+00> : vector<1x256xf32>
    %670 = tpu.matmul %665, %533, %cst_177 {dimension_numbers = #tpu.dot_dimension_numbers<[1], [0], [0], [1], [0, 0, 1, 1], [], []>} : vector<1x64xf32>, vector<64x256xf32>, vector<1x256xf32> -> vector<1x256xf32>
    %671 = arith.addf %669, %670 : vector<1x256xf32>
    %672 = vector.extract_strided_slice %671 {offsets = [0, 0], sizes = [1, 192], strides = [1, 1]} : vector<1x256xf32> to vector<1x192xf32>
    %673 = arith.negf %672 : vector<1x192xf32>
    %674 = math.exp %673 : vector<1x192xf32>
    %cst_178 = arith.constant 1.000000e+00 : f32
    %675 = vector.broadcast %cst_178 : f32 to vector<1x192xf32>
    %676 = arith.addf %675, %674 : vector<1x192xf32>
    %677 = arith.divf %675, %676 : vector<1x192xf32>
    %678 = vector.extract_strided_slice %671 {offsets = [0, 192], sizes = [1, 64], strides = [1, 1]} : vector<1x256xf32> to vector<1x64xf32>
    %679 = math.tanh %678 : vector<1x64xf32>
    %680 = vector.extract_strided_slice %677 {offsets = [0, 0], sizes = [1, 64], strides = [1, 1]} : vector<1x192xf32> to vector<1x64xf32>
    %681 = vector.extract_strided_slice %677 {offsets = [0, 64], sizes = [1, 64], strides = [1, 1]} : vector<1x192xf32> to vector<1x64xf32>
    %682 = vector.extract_strided_slice %677 {offsets = [0, 128], sizes = [1, 64], strides = [1, 1]} : vector<1x192xf32> to vector<1x64xf32>
    %683 = arith.mulf %681, %663 : vector<1x64xf32>
    %684 = arith.mulf %680, %679 : vector<1x64xf32>
    %685 = arith.addf %683, %684 : vector<1x64xf32>
    %686 = math.tanh %685 : vector<1x64xf32>
    %687 = arith.mulf %682, %686 : vector<1x64xf32>
    %688 = arith.index_cast %c6_i32_175 : i32 to index
    %c0_179 = arith.constant 0 : index
    %689 = vector.load %arg19[%688, %c0_179] : memref<8x64xf32, #tpu.memory_space<vmem>>, vector<1x64xf32>
    tpu.vector_store %arg19[%688, %c0_179], %687 {strides = array<i32>} : memref<8x64xf32, #tpu.memory_space<vmem>>, vector<1x64xf32>,
    %c7_i32_180 = arith.constant 7 : i32
    %690 = arith.index_cast %c7_i32_180 : i32 to index
    %c0_181 = arith.constant 0 : index
    %691 = vector.load %arg17[%690, %c0_181] : memref<8x256xf32, #tpu.memory_space<vmem>>, vector<1x256xf32>
    %cst_182 = arith.constant dense<0.000000e+00> : vector<1x256xf32>
    %692 = tpu.matmul %687, %533, %cst_182 {dimension_numbers = #tpu.dot_dimension_numbers<[1], [0], [0], [1], [0, 0, 1, 1], [], []>} : vector<1x64xf32>, vector<64x256xf32>, vector<1x256xf32> -> vector<1x256xf32>
    %693 = arith.addf %691, %692 : vector<1x256xf32>
    %694 = vector.extract_strided_slice %693 {offsets = [0, 0], sizes = [1, 192], strides = [1, 1]} : vector<1x256xf32> to vector<1x192xf32>
    %695 = arith.negf %694 : vector<1x192xf32>
    %696 = math.exp %695 : vector<1x192xf32>
    %cst_183 = arith.constant 1.000000e+00 : f32
    %697 = vector.broadcast %cst_183 : f32 to vector<1x192xf32>
    %698 = arith.addf %697, %696 : vector<1x192xf32>
    %699 = arith.divf %697, %698 : vector<1x192xf32>
    %700 = vector.extract_strided_slice %693 {offsets = [0, 192], sizes = [1, 64], strides = [1, 1]} : vector<1x256xf32> to vector<1x64xf32>
    %701 = math.tanh %700 : vector<1x64xf32>
    %702 = vector.extract_strided_slice %699 {offsets = [0, 0], sizes = [1, 64], strides = [1, 1]} : vector<1x192xf32> to vector<1x64xf32>
    %703 = vector.extract_strided_slice %699 {offsets = [0, 64], sizes = [1, 64], strides = [1, 1]} : vector<1x192xf32> to vector<1x64xf32>
    %704 = vector.extract_strided_slice %699 {offsets = [0, 128], sizes = [1, 64], strides = [1, 1]} : vector<1x192xf32> to vector<1x64xf32>
    %705 = arith.mulf %703, %685 : vector<1x64xf32>
    %706 = arith.mulf %702, %701 : vector<1x64xf32>
    %707 = arith.addf %705, %706 : vector<1x64xf32>
    %708 = math.tanh %707 : vector<1x64xf32>
    %709 = arith.mulf %704, %708 : vector<1x64xf32>
    %710 = arith.index_cast %c7_i32_180 : i32 to index
    %c0_184 = arith.constant 0 : index
    %711 = vector.load %arg19[%710, %c0_184] : memref<8x64xf32, #tpu.memory_space<vmem>>, vector<1x64xf32>
    tpu.vector_store %arg19[%710, %c0_184], %709 {strides = array<i32>} : memref<8x64xf32, #tpu.memory_space<vmem>>, vector<1x64xf32>,
    %c8_i32_185 = arith.constant 8 : i32
    %c0_186 = arith.constant 0 : index
    %c0_187 = arith.constant 0 : index
    %712 = vector.load %arg19[%c0_186, %c0_187] : memref<8x64xf32, #tpu.memory_space<vmem>>, vector<8x64xf32>
    %c0_188 = arith.constant 0 : index
    %c0_189 = arith.constant 0 : index
    %713 = vector.load %arg13[%c0_188, %c0_189] : memref<64x1xf32, #tpu.memory_space<vmem>>, vector<64x1xf32>
    %cst_190 = arith.constant dense<0.000000e+00> : vector<8x1xf32>
    %714 = tpu.matmul %712, %713, %cst_190 {dimension_numbers = #tpu.dot_dimension_numbers<[1], [0], [0], [1], [0, 0, 1, 1], [], []>} : vector<8x64xf32>, vector<64x1xf32>, vector<8x1xf32> -> vector<8x1xf32>
    %c0_191 = arith.constant 0 : index
    %c0_192 = arith.constant 0 : index
    %715 = vector.load %arg14[%c0_191, %c0_192] : memref<1x1xf32, #tpu.memory_space<vmem>>, vector<1x1xf32>
    %716 = vector.broadcast %715 : vector<1x1xf32> to vector<8x1xf32>
    %717 = arith.addf %714, %716 : vector<8x1xf32>
    %c0_193 = arith.constant 0 : index
    %c0_194 = arith.constant 0 : index
    %718 = vector.load %arg15[%c0_193, %c0_194] : memref<8x1xf32, #tpu.memory_space<vmem>>, vector<8x1xf32>
    tpu.vector_store %arg15[%c0_193, %c0_194], %717 {strides = array<i32>} : memref<8x1xf32, #tpu.memory_space<vmem>>, vector<8x1xf32>,
    return
  }
}

</mosaic_0001>

<bundles_post_ra>
// kernel: recurrent_autoencoder_forward.1
= control target key start
LH: loop header
LB: loop body
LE: loop exit
PB: predicated region body
PF: predicated region fallthrough
CT: control target
= control target key end

     0   :  { %s6269_s0 = inlined_call_operand.vmem [shape: f32[8,1], index: 0, kind: input, shape index: {}]   ;;  %s6270_s1 = inlined_call_operand.hbm [shape: f32[1,256], index: 1, kind: input, shape index: {}]   ;;  %s6271_s2 = inlined_call_operand.hbm [shape: f32[64,256], index: 2, kind: input, shape index: {}]   ;;  %s6272_s3 = inlined_call_operand.hbm [shape: f32[1,256], index: 3, kind: input, shape index: {}]   ;;  %s6273_s4 = inlined_call_operand.vmem [shape: f32[64,128], index: 4, kind: input, shape index: {}]   ;;  %s6274_s5 = inlined_call_operand.vmem [shape: f32[32,128], index: 5, kind: input, shape index: {}]   ;;  %s6275_s6 = inlined_call_operand.vmem [shape: f32[1,128], index: 6, kind: input, shape index: {}]   ;;  %s6276_s7 = inlined_call_operand.hbm [shape: f32[32,128], index: 7, kind: input, shape index: {}]   ;;  %s6277_s8 = inlined_call_operand.hbm [shape: f32[32,128], index: 8, kind: input, shape index: {}]   ;;  %s6278_s9 = inlined_call_operand.vmem [shape: f32[1,128], index: 9, kind: input, shape index: {}]   ;;  %s6279_s10 = inlined_call_operand.hbm [shape: f32[32,256], index: 10, kind: input, shape index: {}]   ;;  %s6280_s11 = inlined_call_operand.hbm [shape: f32[64,256], index: 11, kind: input, shape index: {}]   ;;  %s6281_s12 = inlined_call_operand.vmem [shape: f32[1,256], index: 12, kind: input, shape index: {}]   ;;  %s6282_s13 = inlined_call_operand.vmem [shape: f32[64,1], index: 13, kind: input, shape index: {}]   ;;  %s6283_s14 = inlined_call_operand.<no memory space> [shape: f32[1,1], index: 14, kind: input, shape index: {}]   ;;  %s6284_s15 = inlined_call_operand.vmem [shape: f32[8,1], index: 15, kind: output, shape index: {0}]   ;;  %s6285_s16 = inlined_call_operand.hbm [shape: f32[1,32], index: 16, kind: output, shape index: {1}]  }
   0x1   :  { %6288 = sst [smem:[#allocation25_spill]] %s6269_s0  ;;  %v22_v0 = vstv %s6283_s14 }
   0x2   :  { %23 = vst [vmem:[#allocation6] sm:$0x1] %v22_v0 }
   0x3   :  { %24 = vsyncpa [#allocation8], 0 }
   0x4   :  { %25 = vsyncpa [#allocation11], 0 }
   0x5   :  { %26 = vsyncpa [#allocation14], 0 }
   0x6   :  { %27 = vsyncpa [#allocation17], 0 }
   0x7   :  { %28 = vsyncpa [#allocation9], 0  ;;  %s5445_s23 = smov [#allocation10]   ;;  %s5259_s27 = scalar_lea.hbm %s6271_s2, 2048 }
   0x8   :  { %s46_s24 = sshll.u32 %s5445_s23, 4  ;;  %p5260_p0 = scmp.ne.s32.totalorder %s6271_s2, %s5259_s27  ;;  %s47_s24 = int_to_ptr.vmem [resolvable:$true] %s46_s24 }
   0x9   :  { %p5263_p1 = scmp.lt.u32.totalorder %s5259_s27, %s6271_s2 }
   0xb   :  { %p5265_p2 = pnand %p5263_p1, %p5260_p0 }
   0xd   :  { %5268 = shalt.err (!%p5265_p2)
}
   0xe   :  { %s5269_s14 = scalar_lea.vmem %s47_s24, 2048  ;;  %p5274_p4 = scmp.lt.s32.totalorder %s47_s24, %s47_s24 }
   0xf   :  { %p5270_p3 = scmp.ne.s32.totalorder %s47_s24, %s5269_s14  ;;  %p5275_p5 = scmp.lt.s32.totalorder %s5269_s14, %s5269_s14 }
  0x11   :  { %p5276_p6 = por %p5275_p5, %p5274_p4 }
  0x13   :  { %p5277_p7 = pnand %p5276_p6, %p5270_p3 }
  0x15   :  { %5280 = shalt.err (!%p5277_p7)
}
  0x16   :  { %s6286_s17 = smov 256   ;;  %s5447_s18 = smov 16  }
  0x17   :  { %52 = dma.hbm_to_vmem [thread:$0]  %s6271_s2, 2048, %s47_s24, [#allocation11], %s6286_s17, %s6286_s17, %s5447_s18  }
  0x18   :  { %s5448_s21 = smov [#allocation13]   ;;  %s5281_s26 = scalar_lea.hbm %s6276_s7, 512 }
  0x19   :  { %s74_s22 = sshll.u32 %s5448_s21, 4  ;;  %p5282_p8 = scmp.ne.s32.totalorder %s6276_s7, %s5281_s26  ;;  %s75_s22 = int_to_ptr.vmem [resolvable:$true] %s74_s22 }
  0x1a   :  { %p5285_p9 = scmp.lt.u32.totalorder %s5281_s26, %s6276_s7 }
  0x1c   :  { %p5287_p10 = pnand %p5285_p9, %p5282_p8 }
  0x1e   :  { %5290 = shalt.err (!%p5287_p10)
}
  0x1f   :  { %s5291_s0 = scalar_lea.vmem %s75_s22, 512  ;;  %p5296_p12 = scmp.lt.s32.totalorder %s75_s22, %s75_s22 }
  0x20   :  { %p5292_p11 = scmp.ne.s32.totalorder %s75_s22, %s5291_s0  ;;  %p5297_p13 = scmp.lt.s32.totalorder %s5291_s0, %s5291_s0 }
  0x22   :  { %p5298_p0 = por %p5297_p13, %p5296_p12 }
  0x24   :  { %p5299_p1 = pnand %p5298_p0, %p5292_p11 }
  0x26   :  { %5302 = shalt.err (!%p5299_p1)
}
  0x27   :  { %s5449_s2 = smov 128   ;;  %s5450_s24 = smov 8  }
  0x28   :  { %80 = dma.hbm_to_vmem [thread:$0]  %s6276_s7, 512, %s75_s22, [#allocation14], %s5449_s2, %s5449_s2, %s5450_s24  }
  0x29   :  { %s5451_s20 = smov [#allocation16]   ;;  %s5452_s23 = smov [#allocation7]  }
  0x2a   :  { %s100_s21 = sshll.u32 %s5451_s20, 4  ;;  %s37_s25 = sshll.u32 %s5452_s23, 4  ;;  %s101_s21 = int_to_ptr.vmem [resolvable:$true] %s100_s21  ;;  %s38_s25 = int_to_ptr.vmem [resolvable:$true] %s37_s25 }
  0x2b   :  { %s5303_s28 = scalar_lea.hbm %s6279_s10, 1024 }
  0x2c   :  { %p5304_p2 = scmp.ne.s32.totalorder %s6279_s10, %s5303_s28  ;;  %p5307_p3 = scmp.lt.u32.totalorder %s5303_s28, %s6279_s10 }
  0x2e   :  { %p5309_p4 = pnand %p5307_p3, %p5304_p2 }
  0x30   :  { %5312 = shalt.err (!%p5309_p4)
}
  0x31   :  { %s5313_s7 = scalar_lea.vmem %s101_s21, 1024  ;;  %p5318_p6 = scmp.lt.s32.totalorder %s101_s21, %s101_s21 }
  0x32   :  { %p5314_p5 = scmp.ne.s32.totalorder %s101_s21, %s5313_s7  ;;  %p5319_p7 = scmp.lt.s32.totalorder %s5313_s7, %s5313_s7 }
  0x34   :  { %p5320_p8 = por %p5319_p7, %p5318_p6 }
  0x36   :  { %p5321_p9 = pnand %p5320_p8, %p5314_p5 }
  0x38   :  { %5324 = shalt.err (!%p5321_p9)
}
  0x39   :  { %s6289_s22 = smov 256   ;;  %s5325_s17 = scalar_lea.hbm %s6270_s1, 32 }
  0x3a   :  { %106 = dma.hbm_to_vmem [thread:$0]  %s6279_s10, 1024, %s101_s21, [#allocation17], %s6289_s22, %s6289_s22, %s5447_s18  }
  0x3b   :  { %p5326_p10 = scmp.ne.s32.totalorder %s6270_s1, %s5325_s17  ;;  %p5329_p11 = scmp.lt.u32.totalorder %s5325_s17, %s6270_s1 }
  0x3d   :  { %p5331_p12 = pnand %p5329_p11, %p5326_p10 }
  0x3f   :  { %5334 = shalt.err (!%p5331_p12)
}
  0x40   :  { %s5335_s30 = scalar_lea.vmem %s38_s25, 32  ;;  %p5340_p0 = scmp.lt.s32.totalorder %s38_s25, %s38_s25 }
  0x41   :  { %p5336_p13 = scmp.ne.s32.totalorder %s38_s25, %s5335_s30  ;;  %p5341_p1 = scmp.lt.s32.totalorder %s5335_s30, %s5335_s30 }
  0x43   :  { %p5342_p2 = por %p5341_p1, %p5340_p0 }
  0x45   :  { %p5343_p3 = pnand %p5342_p2, %p5336_p13 }
  0x47   :  { %5346 = shalt.err (!%p5343_p3)
}
  0x48   :  { %40 = dma.hbm_to_vmem [thread:$0]  %s6270_s1, 32, %s38_s25, [#allocation8]  }
  0x49   :  { %s5453_s0 = smov [#allocation12]   ;;  %s5454_s14 = smov [#allocation15]  }
  0x4a   :  { %s59_s7 = sshll.u32 %s5453_s0, 4  ;;  %s86_s19 = sshll.u32 %s5454_s14, 4  ;;  %s60_s7 = int_to_ptr.vmem [resolvable:$true] %s59_s7  ;;  %s5609_s19 = int_to_ptr.vmem [resolvable:$true] %s86_s19 }
  0x4b   :  { %s5347_s17 = scalar_lea.hbm %s6272_s3, 32 }
  0x4c   :  { %p5348_p4 = scmp.ne.s32.totalorder %s6272_s3, %s5347_s17  ;;  %p5351_p5 = scmp.lt.u32.totalorder %s5347_s17, %s6272_s3 }
  0x4e   :  { %p5353_p6 = pnand %p5351_p5, %p5348_p4 }
  0x50   :  { %5356 = shalt.err (!%p5353_p6)
}
  0x51   :  { %s5357_s1 = scalar_lea.vmem %s60_s7, 32  ;;  %p5362_p8 = scmp.lt.s32.totalorder %s60_s7, %s60_s7 }
  0x52   :  { %p5358_p7 = scmp.ne.s32.totalorder %s60_s7, %s5357_s1  ;;  %p5363_p9 = scmp.lt.s32.totalorder %s5357_s1, %s5357_s1 }
  0x54   :  { %p5364_p10 = por %p5363_p9, %p5362_p8 }
  0x56   :  { %p5365_p11 = pnand %p5364_p10, %p5358_p7 }
  0x58   :  { %5368 = shalt.err (!%p5365_p11)
}
  0x59   :  { %62 = dma.hbm_to_vmem [thread:$0]  %s6272_s3, 32, %s60_s7, [#allocation11]  }
  0x5a   :  { %s5369_s0 = scalar_lea.hbm %s6277_s8, 512 }
  0x5b   :  { %p5370_p12 = scmp.ne.s32.totalorder %s6277_s8, %s5369_s0  ;;  %p5373_p13 = scmp.lt.u32.totalorder %s5369_s0, %s6277_s8 }
  0x5d   :  { %p5375_p0 = pnand %p5373_p13, %p5370_p12 }
  0x5f   :  { %5378 = shalt.err (!%p5375_p0)
}
  0x60   :  { %s5379_s26 = scalar_lea.vmem %s5609_s19, 512  ;;  %p5384_p2 = scmp.lt.s32.totalorder %s5609_s19, %s5609_s19 }
  0x61   :  { %p5380_p1 = scmp.ne.s32.totalorder %s5609_s19, %s5379_s26  ;;  %p5385_p3 = scmp.lt.s32.totalorder %s5379_s26, %s5379_s26 }
  0x63   :  { %p5386_p4 = por %p5385_p3, %p5384_p2 }
  0x65   :  { %p5387_p5 = pnand %p5386_p4, %p5380_p1 }
  0x67   :  { %5390 = shalt.err (!%p5387_p5)
}
  0x68   :  { %92 = dma.hbm_to_vmem [thread:$0]  %s6277_s8, 512, %s5609_s19, [#allocation14], %s5449_s2, %s5449_s2, %s5450_s24  }
  0x69   :  { %s5455_s27 = smov [#allocation18]   ;;  %s5391_s25 = scalar_lea.hbm %s6280_s11, 2048 }
  0x6a   :  { %s112_s28 = sshll.u32 %s5455_s27, 4  ;;  %p5392_p6 = scmp.ne.s32.totalorder %s6280_s11, %s5391_s25  ;;  %s113_s28 = int_to_ptr.vmem [resolvable:$true] %s112_s28 }
  0x6b   :  { %p5395_p7 = scmp.lt.u32.totalorder %s5391_s25, %s6280_s11 }
  0x6d   :  { %p5397_p8 = pnand %p5395_p7, %p5392_p6 }
  0x6f   :  { %5400 = shalt.err (!%p5397_p8)
}
  0x70   :  { %s5401_s14 = scalar_lea.vmem %s113_s28, 2048  ;;  %p5406_p10 = scmp.lt.s32.totalorder %s113_s28, %s113_s28 }
  0x71   :  { %p5402_p9 = scmp.ne.s32.totalorder %s113_s28, %s5401_s14  ;;  %p5407_p11 = scmp.lt.s32.totalorder %s5401_s14, %s5401_s14 }
  0x73   :  { %p5408_p12 = por %p5407_p11, %p5406_p10 }
  0x75   :  { %p5409_p13 = pnand %p5408_p12, %p5402_p9 }
  0x77   :  { %5412 = shalt.err (!%p5409_p13)
}
  0x78   :  { %118 = dma.hbm_to_vmem [thread:$0]  %s6280_s11, 2048, %s113_s28, [#allocation17], %s6289_s22, %s6289_s22, %s5447_s18  }
  0x79   :  { %5435 = dma.done.wait [#allocation8], 32  }
  0x7a   :  { %5436 = vsyncadd [#allocation8], 4294967264 }
  0x7b   :  { %5437 = dma.done.wait [#allocation11], 2080  }
  0x7c   :  { %5438 = vsyncadd [#allocation11], 4294965216 }
  0x7d   :  { %5439 = dma.done.wait [#allocation14], 1024  }
  0x7e   :  { %5440 = vsyncadd [#allocation14], 4294966272 }
  0x7f   :  { %5441 = dma.done.wait [#allocation17], 3072  }
  0x80   :  { %5442 = vsyncadd [#allocation17], 4294964224  ;;  %v5456_v1 = vmov 0.0   ;;  %v5457_v2 = vmov 0   ;;  %v183_v3 = vld [vmem:[#allocation10 + $0x8] sm:$0xff]  ;;  %v185_v4 = vld [vmem:[#allocation10 + $0x18] sm:$0xff]  ;;  %v154_v28 = vlaneseq }
  0x81   :  { %267 = vmatprep.mubr.f32.mxu0 %v5456_v1  ;;  %5002 = vset.pattern.permute.xlu0 %v5457_v2  ;;  %v182_v5 = vld [vmem:[#allocation10] sm:$0xff]  ;;  %v5660_v6 = vpack.c.bf16 %v185_v4, %v183_v3  ;;  %v184_v7 = vld [vmem:[#allocation10 + $0x10] sm:$0xff]  ;;  %v187_v8 = vld [vmem:[#allocation10 + $0x28] sm:$0xff]  ;;  %s6290_s24 = sld [smem:[#allocation25_spill]]  ;;  %v5458_v43 = vmov 1966171168  }
  0x82   :  { %392 = vmatprep.mubr.f32.mxu1 %v5456_v1  ;;  %v189_v9 = vld [vmem:[#allocation10 + $0x38] sm:$0xff]  ;;  %v5662_v10 = vpack.c.bf16 %v184_v7, %v182_v5  ;;  %v186_v12 = vld [vmem:[#allocation10 + $0x20] sm:$0xff]  ;;  %v188_v13 = vld [vmem:[#allocation10 + $0x30] sm:$0xff]  ;;  %v155_v29 = vshrl.u32 %v154_v28, 7  ;;  %v278_v44 = vunpack.c.l.s4 %v5458_v43  ;;  %s5459_s22 = smov 64   ;;  %vm321_vm0 = vcmask 516096  }
  0x83   :  { %v5664_v11 = vpack.c.bf16 %v189_v9, %v187_v8  ;;  %v191_v14 = vld [vmem:[#allocation10 + $0x48] sm:$0xff]  ;;  %4594 = vmatprep.subr.bf16.mxu0 %v5660_v6  ;;  %v193_v15 = vld [vmem:[#allocation10 + $0x58] sm:$0xff]  ;;  %4610 = vmatprep.subr.bf16.mxu1 %v5660_v6  ;;  %v5669_v16 = vpack.c.bf16 %v188_v13, %v186_v12  ;;  %v190_v18 = vld [vmem:[#allocation10 + $0x40] sm:$0xff]  ;;  %vm199_vm1 = vcmask 523264   ;;  %vm5461_vm2 = vmmov 0   ;;  %s5462_s23 = smov 32  }
  0x84   :  { %4596 = vmatpush1.bf16.msra.mxu0 %v5662_v10  ;;  %4612 = vmatpush1.bf16.msra.mxu1 %v5662_v10  ;;  %v5673_v17 = vpack.c.bf16 %v193_v15, %v191_v14  ;;  %v192_v19 = vld [vmem:[#allocation10 + $0x50] sm:$0xff]  ;;  %v195_v21 = vld [vmem:[#allocation10 + $0x68] sm:$0xff]  ;;  %v197_v22 = vld [vmem:[#allocation10 + $0x78] sm:$0xff]  ;;  %v5707_v30 = vsub.s32 0, %v155_v29  ;;  %v5709_v31 = vsub.s32 1, %v155_v29  ;;  %v279_v45 = vunpack.c.0.s8 %v278_v44  ;;  %s5463_s11 = smov [#allocation19]  }
  0x85   :  { %4598 = vmatprep.subr.bf16.mxu0 %v5664_v11  ;;  %4614 = vmatprep.subr.bf16.mxu1 %v5664_v11  ;;  %v5680_v23 = vpack.c.bf16 %v192_v19, %v190_v18  ;;  %v5684_v24 = vpack.c.bf16 %v197_v22, %v195_v21  ;;  %v194_v25 = vld [vmem:[#allocation10 + $0x60] sm:$0xff]  ;;  %v196_v26 = vld [vmem:[#allocation10 + $0x70] sm:$0xff]  ;;  %v147_v32 = vld [vmem:[#allocation7] sm:$0x3]  ;;  %vm1286_vm3 = vcmask 261120   ;;  %vm2095_vm4 = vcmask 253952  }
  0x86   :  { %v5688_v27 = vpack.c.bf16 %v196_v26, %v194_v25  ;;  %v166_v33 = vld [vmem:[#allocation12] sm:$0x3]  ;;  %v157_v34 = vrot.slane %v147_v32, %v5707_v30  ;;  %v161_v35 = vrot.slane %v147_v32, %v5709_v31  ;;  %v5715_v46 = vsub.s32 %v279_v45, %v155_v29  ;;  %s4185_s18 = sshll.u32 %s5463_s11, 4  ;;  %s4186_s18 = int_to_ptr.vmem [resolvable:$true] %s4185_s18 }
  0x87   :  { %v146_v20 = vld [vmem:[%s6290_s24] sm:$0xff]  ;;  %v171_v36 = vrot.slane %v166_v33, %v5707_v30  ;;  %v175_v37 = vrot.slane %v166_v33, %v5709_v31  ;;  %s5417_s24 = scalar_lea.vmem %s4186_s18, 32  ;;  %p5418_p1 = scmp.lt.s32.totalorder %s4186_s18, %s4186_s18 }
  0x88   :  { %150 = vperm.xlu0 %5002, %v146_v20   ;;  %4600 = vmatpush1.bf16.msra.mxu0 %v5669_v16 }
  0x89   :  { %4616 = vmatpush1.bf16.msra.mxu1 %v5669_v16  ;;  %4602 = vmatprep.subr.bf16.mxu0 %v5673_v17 }
  0x8a   :  { %4618 = vmatprep.subr.bf16.mxu1 %v5673_v17 }
  0x8c   :  { %4604 = vmatpush1.bf16.msra.mxu0 %v5680_v23 }
  0x8d   :  { %4620 = vmatpush1.bf16.msra.mxu1 %v5680_v23  ;;  %4606 = vmatprep.subr.bf16.mxu0 %v5684_v24 }
  0x8e   :  { %4622 = vmatprep.subr.bf16.mxu1 %v5684_v24 }
  0x90   :  { %4608 = vmatpush1.bf16.msra.mxu0 %v5688_v27 }
  0x91   :  { %4624 = vmatpush1.bf16.msra.mxu1 %v5688_v27  ;;  %4626 = vmatprep.subr.bf16.mxu0 %v5660_v6 }
  0x92   :  { %4642 = vmatprep.subr.bf16.mxu1 %v5660_v6 }
  0x93   :  { %268 = vmatmul.mubr.f32.vlgmr.msra.gmra.mrb[0].mxu0 %v5456_v1 }
  0x94   :  { %4628 = vmatpush1.bf16.msra.mxu0 %v5662_v10  ;;  %516 = vmatprep.mubr.f32.mxu0 %v5456_v1 }
  0x95   :  { %4630 = vmatprep.subr.bf16.mxu0 %v5664_v11 }
  0x98   :  { %4632 = vmatpush1.bf16.msra.mxu0 %v5669_v16 }
  0x99   :  { %4634 = vmatprep.subr.bf16.mxu0 %v5673_v17 }
  0x9c   :  { %4636 = vmatpush1.bf16.msra.mxu0 %v5680_v23 }
  0x9d   :  { %4638 = vmatprep.subr.bf16.mxu0 %v5684_v24 }
  0xa0   :  { %4640 = vmatpush1.bf16.msra.mxu0 %v5688_v27 }
  0xa1   :  { %4658 = vmatprep.subr.bf16.mxu0 %v5660_v6 }
 0x107   :  { %v151_v38 = vpop.permute.xlu0 %150 }
 0x108   :  { %v164_v39 = vmul.f32 %v157_v34, %v151_v38  ;;  %v165_v40 = vmul.f32 %v161_v35, %v151_v38 }
 0x10a   :  { %v178_v41 = vadd.f32 %v171_v36, %v164_v39  ;;  %v179_v42 = vadd.f32 %v175_v37, %v165_v40 }
 0x10c   :  { %180 = vst [vmem:[#allocation2] sm:$0xff] %v178_v41  ;;  %181 = vst [vmem:[#allocation2 + $0x8] sm:$0xff] %v179_v42 }
 0x113   :  { %v198_v51 = vld [vmem:[#allocation2] ss:$8 sm:$0x3]  ;;  %v324_v14 = vld [vmem:[#allocation2 + $0x1] ss:$8 sm:$0x3] }
 0x114   :  { %v448_v43 = vld [vmem:[#allocation2 + $0x2] ss:$8 sm:$0x3] }
 0x166   :  { %v269_v47 = vpop.f32.mrb[0].mxu0 }
 0x167   :  { %v271_v48 = vpop.f32.mrb[1].mxu0 }
 0x168   :  { %v276_v49 = vcombine.low %v269_v47, %v271_v48 }
 0x16a   :  { %v283_v50 = vrot.slane %v276_v49, %v5715_v46 }
 0x16c   :  { %v290_v52 = vrot.slane %v283_v50, %v5715_v46 }
 0x16e   :  { %v292_v53 = vadd.f32 %v290_v52, %v198_v51 }
 0x170   :  { %300 = vrot.lane.b32.xlu0 %v292_v53, %s5459_s22  ;;  %v4199_v54 = vmul.f32 -1.442695, %v292_v53 }
 0x172   :  { %5003 = vpow2.f32 %v4199_v54 }
 0x17c   :  { %v5004_v55 = vpop.eup %5003 }
 0x17d   :  { %v296_v56 = vadd.f32 1.0, %v5004_v55 }
 0x17f   :  { %5005 = vrcp.f32 %v296_v56 }
 0x189   :  { %v5006_v59 = vpop.eup %5005 }
 0x18a   :  { %v305_v62 = vmul.f32 0.0, %v5006_v59  ;;  %v314_v3 = vrot.slane %v5006_v59, 1 }
 0x1e2   :  { %v301_v57 = vpop.permute.xlu0 %300 }
 0x1e3   :  { %v302_v58 = vrot.slane %v301_v57, 1 }
 0x1e5   :  { %5007 = vtanh.f32 %v302_v58 }
 0x1ef   :  { %v5008_v60 = vpop.eup %5007 }
 0x1f0   :  { %v306_v61 = vmul.f32 %v5008_v60, %v5006_v59 }
 0x1f2   :  { %308 = vrot.lane.b32.xlu1 %v306_v61, %s5459_s22 }
 0x264   :  { %v309_v63 = vpop.permute.xlu1 %308 }
 0x265   :  { %v311_v0 = vadd.f32 %v309_v63, %v305_v62 }
 0x267   :  { %5009 = vtanh.f32 %v311_v0 }
 0x271   :  { %v5010_v2 = vpop.eup %5009 }
 0x272   :  { %317 = vrot.lane.b32.xlu1 %v5010_v2, %s5459_s22 }
 0x2e4   :  { %v318_v4 = vpop.permute.xlu1 %317 }
 0x2e5   :  { %v320_v5 = vmul.f32 %v318_v4, %v314_v3  ;;  %v572_v3 = vld [vmem:[#allocation2 + $0x3] ss:$8 sm:$0x3] }
 0x2e7   :  { %322 = vst.msk [vmem:[#allocation4] sm:$0x1] %vm321_vm0, %v320_v5  ;;  %4200 = vmatmul.mubr.msk.f32.vlgmr.msra.gmra.mrb[0].mxu1 %vm199_vm1, %v320_v5 }
 0x2e8   :  { %4644 = vmatpush1.bf16.msra.mxu1 %v5662_v10  ;;  %640 = vmatprep.mubr.f32.mxu1 %v5456_v1 }
 0x2e9   :  { %4646 = vmatprep.subr.bf16.mxu1 %v5664_v11 }
 0x2ec   :  { %4648 = vmatpush1.bf16.msra.mxu1 %v5669_v16 }
 0x2ed   :  { %4650 = vmatprep.subr.bf16.mxu1 %v5673_v17 }
 0x2f0   :  { %4652 = vmatpush1.bf16.msra.mxu1 %v5680_v23 }
 0x2f1   :  { %4654 = vmatprep.subr.bf16.mxu1 %v5684_v24 }
 0x2f4   :  { %4656 = vmatpush1.bf16.msra.mxu1 %v5688_v27 }
 0x2f5   :  { %4674 = vmatprep.subr.bf16.mxu1 %v5660_v6 }
 0x3ba   :  { %v394_v7 = vpop.f32.mrb[0].mxu1 }
 0x3bb   :  { %v396_v8 = vpop.f32.mrb[1].mxu1 }
 0x3bc   :  { %v401_v9 = vcombine.low %v394_v7, %v396_v8 }
 0x3be   :  { %v408_v12 = vrot.slane %v401_v9, %v5715_v46 }
 0x3c0   :  { %v415_v13 = vrot.slane %v408_v12, %v5715_v46 }
 0x3c2   :  { %v417_v15 = vadd.f32 %v415_v13, %v324_v14 }
 0x3c4   :  { %425 = vrot.lane.b32.xlu0 %v417_v15, %s5459_s22  ;;  %v4201_v18 = vmul.f32 -1.442695, %v417_v15 }
 0x3c6   :  { %5011 = vpow2.f32 %v4201_v18 }
 0x3d0   :  { %v5012_v19 = vpop.eup %5011 }
 0x3d1   :  { %v421_v20 = vadd.f32 1.0, %v5012_v19 }
 0x3d3   :  { %5013 = vrcp.f32 %v421_v20 }
 0x3dd   :  { %v5014_v25 = vpop.eup %5013 }
 0x3de   :  { %v430_v29 = vmul.f32 %v5014_v25, %v311_v0  ;;  %v439_v35 = vrot.slane %v5014_v25, 1 }
 0x436   :  { %v426_v21 = vpop.permute.xlu0 %425 }
 0x437   :  { %v427_v22 = vrot.slane %v426_v21, 1 }
 0x439   :  { %5015 = vtanh.f32 %v427_v22 }
 0x443   :  { %v5016_v26 = vpop.eup %5015 }
 0x444   :  { %v431_v28 = vmul.f32 %v5016_v26, %v5014_v25 }
 0x446   :  { %433 = vrot.lane.b32.xlu1 %v431_v28, %s5459_s22 }
 0x4b8   :  { %v434_v32 = vpop.permute.xlu1 %433 }
 0x4b9   :  { %v436_v33 = vadd.f32 %v434_v32, %v430_v29 }
 0x4bb   :  { %5017 = vtanh.f32 %v436_v33 }
 0x4c5   :  { %v5018_v34 = vpop.eup %5017 }
 0x4c6   :  { %442 = vrot.lane.b32.xlu0 %v5018_v34, %s5459_s22  ;;  %v696_v34 = vld [vmem:[#allocation2 + $0x4] ss:$8 sm:$0x3] }
 0x538   :  { %v443_v36 = vpop.permute.xlu0 %442 }
 0x539   :  { %v445_v37 = vmul.f32 %v443_v36, %v439_v35 }
 0x53b   :  { %446 = vst.msk [vmem:[#allocation4 + $0x1] sm:$0x1] %vm321_vm0, %v445_v37  ;;  %4202 = vmatmul.mubr.msk.f32.vlgmr.msra.gmra.mrb[2].mxu0 %vm199_vm1, %v445_v37 }
 0x53c   :  { %4660 = vmatpush1.bf16.msra.mxu0 %v5662_v10  ;;  %764 = vmatprep.mubr.f32.mxu0 %v5456_v1 }
 0x53d   :  { %4662 = vmatprep.subr.bf16.mxu0 %v5664_v11 }
 0x540   :  { %4664 = vmatpush1.bf16.msra.mxu0 %v5669_v16 }
 0x541   :  { %4666 = vmatprep.subr.bf16.mxu0 %v5673_v17 }
 0x544   :  { %4668 = vmatpush1.bf16.msra.mxu0 %v5680_v23 }
 0x545   :  { %4670 = vmatprep.subr.bf16.mxu0 %v5684_v24 }
 0x548   :  { %4672 = vmatpush1.bf16.msra.mxu0 %v5688_v27 }
 0x549   :  { %4690 = vmatprep.subr.bf16.mxu0 %v5660_v6 }
 0x60e   :  { %v518_v38 = vpop.f32.mrb[2].mxu0 }
 0x60f   :  { %v520_v39 = vpop.f32.mrb[3].mxu0 }
 0x610   :  { %v525_v40 = vcombine.low %v518_v38, %v520_v39 }
 0x612   :  { %v532_v41 = vrot.slane %v525_v40, %v5715_v46 }
 0x614   :  { %v539_v42 = vrot.slane %v532_v41, %v5715_v46 }
 0x616   :  { %v541_v44 = vadd.f32 %v539_v42, %v448_v43 }
 0x618   :  { %549 = vrot.lane.b32.xlu1 %v541_v44, %s5459_s22  ;;  %v4203_v45 = vmul.f32 -1.442695, %v541_v44 }
 0x61a   :  { %5019 = vpow2.f32 %v4203_v45 }
 0x624   :  { %v5020_v47 = vpop.eup %5019 }
 0x625   :  { %v545_v48 = vadd.f32 1.0, %v5020_v47 }
 0x627   :  { %5021 = vrcp.f32 %v545_v48 }
 0x631   :  { %v5022_v51 = vpop.eup %5021 }
 0x632   :  { %v554_v54 = vmul.f32 %v5022_v51, %v436_v33  ;;  %v563_v58 = vrot.slane %v5022_v51, 1 }
 0x68a   :  { %v550_v49 = vpop.permute.xlu1 %549 }
 0x68b   :  { %v551_v50 = vrot.slane %v550_v49, 1 }
 0x68d   :  { %5023 = vtanh.f32 %v551_v50 }
 0x697   :  { %v5024_v52 = vpop.eup %5023 }
 0x698   :  { %v555_v53 = vmul.f32 %v5024_v52, %v5022_v51 }
 0x69a   :  { %557 = vrot.lane.b32.xlu0 %v555_v53, %s5459_s22 }
 0x70c   :  { %v558_v55 = vpop.permute.xlu0 %557 }
 0x70d   :  { %v560_v56 = vadd.f32 %v558_v55, %v554_v54 }
 0x70f   :  { %5025 = vtanh.f32 %v560_v56 }
 0x719   :  { %v5026_v57 = vpop.eup %5025 }
 0x71a   :  { %566 = vrot.lane.b32.xlu1 %v5026_v57, %s5459_s22 }
 0x78c   :  { %v567_v59 = vpop.permute.xlu1 %566 }
 0x78d   :  { %v569_v60 = vmul.f32 %v567_v59, %v563_v58 }
 0x78f   :  { %570 = vst.msk [vmem:[#allocation4 + $0x2] sm:$0x1] %vm321_vm0, %v569_v60  ;;  %4204 = vmatmul.mubr.msk.f32.vlgmr.msra.gmra.mrb[2].mxu1 %vm199_vm1, %v569_v60 }
 0x790   :  { %4676 = vmatpush1.bf16.msra.mxu1 %v5662_v10  ;;  %888 = vmatprep.mubr.f32.mxu1 %v5456_v1 }
 0x791   :  { %4678 = vmatprep.subr.bf16.mxu1 %v5664_v11 }
 0x794   :  { %4680 = vmatpush1.bf16.msra.mxu1 %v5669_v16 }
 0x795   :  { %4682 = vmatprep.subr.bf16.mxu1 %v5673_v17 }
 0x798   :  { %4684 = vmatpush1.bf16.msra.mxu1 %v5680_v23 }
 0x799   :  { %4686 = vmatprep.subr.bf16.mxu1 %v5684_v24 }
 0x79c   :  { %4688 = vmatpush1.bf16.msra.mxu1 %v5688_v27 }
 0x79d   :  { %4706 = vmatprep.subr.bf16.mxu1 %v5660_v6 }
 0x862   :  { %v642_v61 = vpop.f32.mrb[2].mxu1 }
 0x863   :  { %v644_v62 = vpop.f32.mrb[3].mxu1 }
 0x864   :  { %v649_v63 = vcombine.low %v642_v61, %v644_v62 }
 0x866   :  { %v656_v0 = vrot.slane %v649_v63, %v5715_v46 }
 0x868   :  { %v663_v2 = vrot.slane %v656_v0, %v5715_v46 }
 0x86a   :  { %v665_v4 = vadd.f32 %v663_v2, %v572_v3 }
 0x86c   :  { %673 = vrot.lane.b32.xlu0 %v665_v4, %s5459_s22  ;;  %v4205_v5 = vmul.f32 -1.442695, %v665_v4 }
 0x86e   :  { %5027 = vpow2.f32 %v4205_v5 }
 0x878   :  { %v5028_v7 = vpop.eup %5027 }
 0x879   :  { %v669_v8 = vadd.f32 1.0, %v5028_v7 }
 0x87b   :  { %5029 = vrcp.f32 %v669_v8 }
 0x885   :  { %v5030_v6 = vpop.eup %5029 }
 0x886   :  { %v678_v15 = vmul.f32 %v5030_v6, %v560_v56  ;;  %v687_v21 = vrot.slane %v5030_v6, 1  ;;  %v820_v56 = vld [vmem:[#allocation2 + $0x5] ss:$8 sm:$0x3] }
 0x8de   :  { %v674_v9 = vpop.permute.xlu0 %673 }
 0x8df   :  { %v675_v12 = vrot.slane %v674_v9, 1 }
 0x8e1   :  { %5031 = vtanh.f32 %v675_v12  ;;  %v944_v12 = vld [vmem:[#allocation2 + $0x6] ss:$8 sm:$0x3] }
 0x8eb   :  { %v5032_v13 = vpop.eup %5031 }
 0x8ec   :  { %v679_v14 = vmul.f32 %v5032_v13, %v5030_v6 }
 0x8ee   :  { %681 = vrot.lane.b32.xlu1 %v679_v14, %s5459_s22 }
 0x960   :  { %v682_v18 = vpop.permute.xlu1 %681 }
 0x961   :  { %v684_v19 = vadd.f32 %v682_v18, %v678_v15 }
 0x963   :  { %5033 = vtanh.f32 %v684_v19 }
 0x96d   :  { %v5034_v20 = vpop.eup %5033 }
 0x96e   :  { %690 = vrot.lane.b32.xlu0 %v5034_v20, %s5459_s22 }
 0x9e0   :  { %v691_v22 = vpop.permute.xlu0 %690 }
 0x9e1   :  { %v693_v25 = vmul.f32 %v691_v22, %v687_v21 }
 0x9e3   :  { %694 = vst.msk [vmem:[#allocation4 + $0x3] sm:$0x1] %vm321_vm0, %v693_v25  ;;  %4206 = vmatmul.mubr.msk.f32.vlgmr.msra.gmra.mrb[4].mxu0 %vm199_vm1, %v693_v25 }
 0x9e4   :  { %4692 = vmatpush1.bf16.msra.mxu0 %v5662_v10  ;;  %1012 = vmatprep.mubr.f32.mxu0 %v5456_v1 }
 0x9e5   :  { %4694 = vmatprep.subr.bf16.mxu0 %v5664_v11 }
 0x9e8   :  { %4696 = vmatpush1.bf16.msra.mxu0 %v5669_v16 }
 0x9e9   :  { %4698 = vmatprep.subr.bf16.mxu0 %v5673_v17 }
 0x9ec   :  { %4700 = vmatpush1.bf16.msra.mxu0 %v5680_v23 }
 0x9ed   :  { %4702 = vmatprep.subr.bf16.mxu0 %v5684_v24 }
 0x9f0   :  { %4704 = vmatpush1.bf16.msra.mxu0 %v5688_v27 }
 0xab6   :  { %v766_v26 = vpop.f32.mrb[4].mxu0 }
 0xab7   :  { %v768_v28 = vpop.f32.mrb[5].mxu0 }
 0xab8   :  { %v773_v29 = vcombine.low %v766_v26, %v768_v28 }
 0xaba   :  { %v780_v32 = vrot.slane %v773_v29, %v5715_v46 }
 0xabc   :  { %v787_v33 = vrot.slane %v780_v32, %v5715_v46 }
 0xabe   :  { %v789_v35 = vadd.f32 %v787_v33, %v696_v34 }
 0xac0   :  { %797 = vrot.lane.b32.xlu1 %v789_v35, %s5459_s22  ;;  %v4207_v36 = vmul.f32 -1.442695, %v789_v35 }
 0xac2   :  { %5035 = vpow2.f32 %v4207_v36 }
 0xacc   :  { %v5036_v37 = vpop.eup %5035 }
 0xacd   :  { %v793_v38 = vadd.f32 1.0, %v5036_v37 }
 0xacf   :  { %5037 = vrcp.f32 %v793_v38 }
 0xad9   :  { %v5038_v41 = vpop.eup %5037 }
 0xada   :  { %v802_v44 = vmul.f32 %v5038_v41, %v684_v19  ;;  %v811_v49 = vrot.slane %v5038_v41, 1 }
 0xb32   :  { %v798_v39 = vpop.permute.xlu1 %797 }
 0xb33   :  { %v799_v40 = vrot.slane %v798_v39, 1 }
 0xb35   :  { %5039 = vtanh.f32 %v799_v40  ;;  %v1068_v40 = vld [vmem:[#allocation2 + $0x7] ss:$8 sm:$0x3] }
 0xb3f   :  { %v5040_v42 = vpop.eup %5039 }
 0xb40   :  { %v803_v43 = vmul.f32 %v5040_v42, %v5038_v41 }
 0xb42   :  { %805 = vrot.lane.b32.xlu0 %v803_v43, %s5459_s22 }
 0xbb4   :  { %v806_v45 = vpop.permute.xlu0 %805 }
 0xbb5   :  { %v808_v47 = vadd.f32 %v806_v45, %v802_v44 }
 0xbb7   :  { %5041 = vtanh.f32 %v808_v47 }
 0xbc1   :  { %v5042_v48 = vpop.eup %5041 }
 0xbc2   :  { %814 = vrot.lane.b32.xlu1 %v5042_v48, %s5459_s22 }
 0xc34   :  { %v815_v50 = vpop.permute.xlu1 %814 }
 0xc35   :  { %v817_v51 = vmul.f32 %v815_v50, %v811_v49 }
 0xc37   :  { %818 = vst.msk [vmem:[#allocation4 + $0x4] sm:$0x1] %vm321_vm0, %v817_v51  ;;  %4208 = vmatmul.mubr.msk.f32.vlgmr.msra.gmra.mrb[4].mxu1 %vm199_vm1, %v817_v51  ;;  %v1192_v51 = vld [vmem:[%s6273_s4] sm:$0xff] }
 0xc38   :  { %4708 = vmatpush1.bf16.msra.mxu1 %v5662_v10  ;;  %1136 = vmatprep.mubr.f32.mxu1 %v5456_v1 }
 0xc39   :  { %4710 = vmatprep.subr.bf16.mxu1 %v5664_v11 }
 0xc3c   :  { %4712 = vmatpush1.bf16.msra.mxu1 %v5669_v16 }
 0xc3d   :  { %4714 = vmatprep.subr.bf16.mxu1 %v5673_v17 }
 0xc40   :  { %4716 = vmatpush1.bf16.msra.mxu1 %v5680_v23 }
 0xc41   :  { %4718 = vmatprep.subr.bf16.mxu1 %v5684_v24 }
 0xc44   :  { %4720 = vmatpush1.bf16.msra.mxu1 %v5688_v27 }
 0xd0a   :  { %v890_v52 = vpop.f32.mrb[4].mxu1 }
 0xd0b   :  { %v892_v53 = vpop.f32.mrb[5].mxu1 }
 0xd0c   :  { %v897_v54 = vcombine.low %v890_v52, %v892_v53  ;;  %v1193_v52 = vld [vmem:[%s6273_s4 + $0x8] sm:$0xff]  ;;  %v1194_v53 = vld [vmem:[%s6273_s4 + $0x10] sm:$0xff] }
 0xd0e   :  { %v904_v55 = vrot.slane %v897_v54, %v5715_v46  ;;  %v5460_v54 = vmov 0.0|0.0  }
 0xd0f   :  { %4721 = vmatprep.subr.bf16.mxu0 %v5460_v54  ;;  %4733 = vmatprep.subr.bf16.mxu1 %v5460_v54 }
 0xd10   :  { %v911_v10 = vrot.slane %v904_v55, %v5715_v46  ;;  %v4722_v55 = vpack.c.bf16 %v1193_v52, %v1192_v51 }
 0xd12   :  { %v913_v57 = vadd.f32 %v911_v10, %v820_v56  ;;  %v1195_v10 = vld [vmem:[%s6273_s4 + $0x18] sm:$0xff] }
 0xd13   :  { %v4725_v56 = vpack.c.bf16 %v1195_v10, %v1194_v53 }
 0xd14   :  { %921 = vrot.lane.b32.xlu0 %v913_v57, %s5459_s22  ;;  %v4209_v11 = vmul.f32 -1.442695, %v913_v57 }
 0xd16   :  { %5043 = vpow2.f32 %v4209_v11 }
 0xd20   :  { %v5044_v16 = vpop.eup %5043 }
 0xd21   :  { %v917_v17 = vadd.f32 1.0, %v5044_v16 }
 0xd23   :  { %5045 = vrcp.f32 %v917_v17  ;;  %v1196_v17 = vld [vmem:[%s6273_s4 + $0x20] sm:$0xff] }
 0xd2d   :  { %v5046_v24 = vpop.eup %5045 }
 0xd2e   :  { %v926_v60 = vmul.f32 %v5046_v24, %v808_v47  ;;  %v935_v0 = vrot.slane %v5046_v24, 1 }
 0xd86   :  { %v922_v23 = vpop.permute.xlu0 %921 }
 0xd87   :  { %v923_v58 = vrot.slane %v922_v23, 1  ;;  %v1197_v23 = vld [vmem:[%s6273_s4 + $0x28] sm:$0xff] }
 0xd89   :  { %5047 = vtanh.f32 %v923_v58  ;;  %v4728_v58 = vpack.c.bf16 %v1197_v23, %v1196_v17 }
 0xd93   :  { %v5048_v27 = vpop.eup %5047 }
 0xd94   :  { %v927_v59 = vmul.f32 %v5048_v27, %v5046_v24  ;;  %v1198_v24 = vld [vmem:[%s6273_s4 + $0x30] sm:$0xff]  ;;  %v1199_v27 = vld [vmem:[%s6273_s4 + $0x38] sm:$0xff] }
 0xd96   :  { %929 = vrot.lane.b32.xlu1 %v927_v59, %s5459_s22  ;;  %v4731_v59 = vpack.c.bf16 %v1199_v27, %v1198_v24 }
 0xe08   :  { %v930_v61 = vpop.permute.xlu1 %929 }
 0xe09   :  { %v932_v62 = vadd.f32 %v930_v61, %v926_v60  ;;  %v1281_v60 = vld [vmem:[%s6274_s5] sm:$0xff]  ;;  %v1282_v61 = vld [vmem:[%s6274_s5 + $0x8] sm:$0xff] }
 0xe0b   :  { %5049 = vtanh.f32 %v932_v62 }
 0xe15   :  { %v5050_v63 = vpop.eup %5049 }
 0xe16   :  { %938 = vrot.lane.b32.xlu0 %v5050_v63, %s5459_s22  ;;  %v1283_v63 = vld [vmem:[%s6274_s5 + $0x10] sm:$0xff] }
 0xe88   :  { %v939_v2 = vpop.permute.xlu0 %938 }
 0xe89   :  { %v941_v3 = vmul.f32 %v939_v2, %v935_v0  ;;  %v1284_v0 = vld [vmem:[%s6274_s5 + $0x18] sm:$0xff] }
 0xe8b   :  { %942 = vst.msk [vmem:[#allocation4 + $0x5] sm:$0x1] %vm321_vm0, %v941_v3  ;;  %4210 = vmatmul.mubr.msk.f32.vlgmr.msra.gmra.mrb[6].mxu0 %vm199_vm1, %v941_v3  ;;  %v5862_v3 = vpack.c.bf16 %v1284_v0, %v1283_v63 }
 0xe8c   :  { %4723 = vmatpush3.bf16.msra.mxu0 %v4722_v55  ;;  %4384 = vmatprep.mubr.msk.f32.mxu0 %vm5461_vm2, %v5456_v1 }
 0xe8d   :  { %4724 = vmatprep.subr.bf16.mxu0 %v5460_v54 }
 0xe90   :  { %4726 = vmatpush3.bf16.msra.mxu0 %v4725_v56 }
 0xe91   :  { %4727 = vmatprep.subr.bf16.mxu0 %v5460_v54 }
 0xe94   :  { %4729 = vmatpush3.bf16.msra.mxu0 %v4728_v58 }
 0xe95   :  { %4730 = vmatprep.subr.bf16.mxu0 %v5460_v54 }
 0xe98   :  { %4732 = vmatpush3.bf16.msra.mxu0 %v4731_v59 }
 0xe99   :  { %4757 = vmatprep.subr.bf16.mxu0 %v5460_v54 }
 0xf5e   :  { %v1014_v4 = vpop.f32.mrb[6].mxu0 }
 0xf5f   :  { %v1016_v5 = vpop.f32.mrb[7].mxu0 }
 0xf60   :  { %v1021_v7 = vcombine.low %v1014_v4, %v1016_v5 }
 0xf62   :  { %v1028_v8 = vrot.slane %v1021_v7, %v5715_v46 }
 0xf64   :  { %v1035_v9 = vrot.slane %v1028_v8, %v5715_v46 }
 0xf66   :  { %v1037_v6 = vadd.f32 %v1035_v9, %v944_v12 }
 0xf68   :  { %1045 = vrot.lane.b32.xlu1 %v1037_v6, %s5459_s22  ;;  %v4211_v13 = vmul.f32 -1.442695, %v1037_v6  ;;  %v4214_v6 = vld [vmem:[%s6275_s6] ss:$0 sm:$0xff] }
 0xf6a   :  { %5051 = vpow2.f32 %v4211_v13 }
 0xf74   :  { %v5052_v14 = vpop.eup %5051 }
 0xf75   :  { %v1041_v15 = vadd.f32 1.0, %v5052_v14 }
 0xf77   :  { %5053 = vrcp.f32 %v1041_v15 }
 0xf81   :  { %v5054_v20 = vpop.eup %5053 }
 0xf82   :  { %v1050_v25 = vmul.f32 %v5054_v20, %v932_v62  ;;  %v1059_v32 = vrot.slane %v5054_v20, 1  ;;  %v5853_v62 = vpack.c.bf16 %v1282_v61, %v1281_v60 }
 0xfda   :  { %v1046_v18 = vpop.permute.xlu1 %1045 }
 0xfdb   :  { %v1047_v19 = vrot.slane %v1046_v18, 1 }
 0xfdd   :  { %5055 = vtanh.f32 %v1047_v19 }
 0xfe7   :  { %v5056_v21 = vpop.eup %5055 }
 0xfe8   :  { %v1051_v22 = vmul.f32 %v5056_v21, %v5054_v20 }
 0xfea   :  { %1053 = vrot.lane.b32.xlu0 %v1051_v22, %s5459_s22 }
0x105c   :  { %v1054_v26 = vpop.permute.xlu0 %1053 }
0x105d   :  { %v1056_v28 = vadd.f32 %v1054_v26, %v1050_v25 }
0x105f   :  { %5057 = vtanh.f32 %v1056_v28 }
0x1069   :  { %v5058_v29 = vpop.eup %5057 }
0x106a   :  { %1062 = vrot.lane.b32.xlu1 %v5058_v29, %s5459_s22 }
0x10dc   :  { %v1063_v33 = vpop.permute.xlu1 %1062 }
0x10dd   :  { %v1065_v34 = vmul.f32 %v1063_v33, %v1059_v32 }
0x10df   :  { %1066 = vst.msk [vmem:[#allocation4 + $0x6] sm:$0x1] %vm321_vm0, %v1065_v34  ;;  %4212 = vmatmul.mubr.msk.f32.vlgmr.msra.gmra.mrb[6].mxu1 %vm199_vm1, %v1065_v34 }
0x10e0   :  { %4395 = vmatprep.mubr.msk.f32.mxu1 %vm5461_vm2, %v5456_v1  ;;  %4735 = vmatpush3.bf16.msra.mxu1 %v5853_v62 }
0x10e1   :  { %4736 = vmatprep.subr.bf16.mxu1 %v5460_v54 }
0x10e4   :  { %4738 = vmatpush3.bf16.msra.mxu1 %v5862_v3 }
0x10e5   :  { %4739 = vmatprep.subr.bf16.mxu1 %v5460_v54 }
0x10e7   :  { %4396 = vmatmul.mubr.f32.vlgmr.msra.gmra.mrb[8].mxu1 %v5456_v1 }
0x10e8   :  { %4741 = vmatpush3.bf16.msra.mxu1 %v5853_v62  ;;  %4406 = vmatprep.mubr.msk.f32.mxu1 %vm5461_vm2, %v5456_v1 }
0x10e9   :  { %4742 = vmatprep.subr.bf16.mxu1 %v5460_v54 }
0x10ec   :  { %4744 = vmatpush3.bf16.msra.mxu1 %v5862_v3 }
0x10ed   :  { %4745 = vmatprep.subr.bf16.mxu1 %v5460_v54 }
0x11b2   :  { %v1138_v35 = vpop.f32.mrb[6].mxu1 }
0x11b3   :  { %v1140_v36 = vpop.f32.mrb[7].mxu1 }
0x11b4   :  { %v1145_v37 = vcombine.low %v1138_v35, %v1140_v36 }
0x11b6   :  { %v1152_v38 = vrot.slane %v1145_v37, %v5715_v46 }
0x11b8   :  { %v1159_v39 = vrot.slane %v1152_v38, %v5715_v46 }
0x11ba   :  { %v1161_v41 = vadd.f32 %v1159_v39, %v1068_v40  ;;  %v1355_v9 = vpop.f32.mrb[8].mxu1 }
0x11bb   :  { %v4397_v12 = vpop.f32.mrb[9].mxu1 }
0x11bc   :  { %1169 = vrot.lane.b32.xlu0 %v1161_v41, %s5459_s22  ;;  %v4213_v42 = vmul.f32 -1.442695, %v1161_v41 }
0x11be   :  { %5059 = vpow2.f32 %v4213_v42 }
0x11c8   :  { %v5060_v43 = vpop.eup %5059 }
0x11c9   :  { %v1165_v44 = vadd.f32 1.0, %v5060_v43 }
0x11cb   :  { %5061 = vrcp.f32 %v1165_v44 }
0x11d5   :  { %v5062_v48 = vpop.eup %5061 }
0x11d6   :  { %v1174_v57 = vmul.f32 %v5062_v48, %v1056_v28  ;;  %v1183_v4 = vrot.slane %v5062_v48, 1 }
0x122e   :  { %v1170_v45 = vpop.permute.xlu0 %1169 }
0x122f   :  { %v1171_v47 = vrot.slane %v1170_v45, 1 }
0x1231   :  { %5063 = vtanh.f32 %v1171_v47 }
0x123b   :  { %v5064_v49 = vpop.eup %5063 }
0x123c   :  { %v1175_v50 = vmul.f32 %v5064_v49, %v5062_v48 }
0x123e   :  { %1177 = vrot.lane.b32.xlu1 %v1175_v50, %s5459_s22 }
0x12b0   :  { %v1178_v11 = vpop.permute.xlu1 %1177 }
0x12b1   :  { %v1180_v16 = vadd.f32 %v1178_v11, %v1174_v57 }
0x12b3   :  { %5065 = vtanh.f32 %v1180_v16 }
0x12bd   :  { %v5066_v2 = vpop.eup %5065 }
0x12be   :  { %1186 = vrot.lane.b32.xlu0 %v5066_v2, %s5459_s22 }
0x1330   :  { %v1187_v5 = vpop.permute.xlu0 %1186 }
0x1331   :  { %v1189_v7 = vmul.f32 %v1187_v5, %v1183_v4 }
0x1333   :  { %1190 = vst.msk [vmem:[#allocation4 + $0x7] sm:$0x1] %vm321_vm0, %v1189_v7 }
0x133a   :  { %v1191_v8 = vld [vmem:[#allocation4] sm:$0xff] }
0x133b   :  { %4385 = vmatmul.mubr.msk.f32.vlgmr.msra.gmra.mrb[8].mxu0 %vm199_vm1, %v1191_v8 }
0x133c   :  { %4759 = vmatpush3.bf16.msra.mxu0 %v5853_v62  ;;  %4439 = vmatprep.mubr.msk.f32.mxu0 %vm5461_vm2, %v5456_v1 }
0x133d   :  { %4760 = vmatprep.subr.bf16.mxu0 %v5460_v54 }
0x1340   :  { %4762 = vmatpush3.bf16.msra.mxu0 %v5862_v3 }
0x1341   :  { %4769 = vmatprep.subr.bf16.mxu0 %v5460_v54 }
0x140e   :  { %v1276_v13 = vpop.f32.mrb[8].mxu0 }
0x140f   :  { %v1277_v14 = vadd.f32 %v4214_v6, %v1276_v13  ;;  %v4386_v15 = vpop.f32.mrb[9].mxu0 }
0x1411   :  { %1280 = vst [vmem:[#allocation3] sm:$0xff] %v1277_v14 }
0x1418   :  { %v1285_v18 = vld [vmem:[#allocation3] sm:$0x1]  ;;  %v1384_v39 = vld [vmem:[#allocation3 + $0x1] sm:$0x1]  ;;  %v1485_v11 = vld [vmem:[#allocation3 + $0x2] sm:$0x1] }
0x1419   :  { %v1359_v19 = vadd.f32 %v1355_v9, %v1285_v18  ;;  %v1586_v12 = vld [vmem:[#allocation3 + $0x3] sm:$0x1] }
0x141b   :  { %5067 = vtanh.f32 %v1359_v19  ;;  %v4216_v21 = vmul.f32 -1.442695, %v1359_v19 }
0x141d   :  { %5069 = vpow2.f32 %v4216_v21 }
0x1425   :  { %v5068_v20 = vpop.eup %5067 }
0x1426   :  { %1369 = vrot.lane.b32.xlu1 %v5068_v20, %s5462_s23 }
0x1427   :  { %v5070_v22 = vpop.eup %5069 }
0x1428   :  { %v1363_v25 = vadd.f32 1.0, %v5070_v22 }
0x142a   :  { %5071 = vrcp.f32 %v1363_v25 }
0x1434   :  { %v5072_v26 = vpop.eup %5071 }
0x1435   :  { %v1367_v32 = vmul.f32 0.0, %v5072_v26 }
0x1498   :  { %v1370_v28 = vpop.permute.xlu1 %1369 }
0x1499   :  { %v1372_v29 = vmul.f32 %v5072_v26, %v1370_v28 }
0x149b   :  { %1374 = vrot.lane.b32.xlu0 %v1372_v29, %s5462_s23 }
0x150d   :  { %v1375_v33 = vpop.permute.xlu0 %1374 }
0x150e   :  { %v1377_v34 = vadd.f32 %v1375_v33, %v1367_v32 }
0x1510   :  { %5073 = vtanh.f32 %v1377_v34 }
0x151a   :  { %v5074_v35 = vpop.eup %5073 }
0x151b   :  { %1380 = vrot.lane.b32.xlu1 %v5074_v35, %s5462_s23 }
0x158d   :  { %v1381_v36 = vpop.permute.xlu1 %1380 }
0x158e   :  { %v1383_v37 = vmul.f32 %v5072_v26, %v1381_v36  ;;  %v1687_v36 = vld [vmem:[#allocation3 + $0x4] sm:$0x1] }
0x1590   :  { %1386 = vrot.lane.b32.xlu0 %v1383_v37, %s5459_s22 }
0x1602   :  { %v1387_v38 = vpop.permute.xlu0 %1386 }
0x1603   :  { %4407 = vmatmul.mubr.msk.f32.vlgmr.msra.gmra.mrb[10].mxu1 %vm1286_vm3, %v1387_v38 }
0x1604   :  { %4747 = vmatpush3.bf16.msra.mxu1 %v5853_v62  ;;  %4417 = vmatprep.mubr.msk.f32.mxu1 %vm5461_vm2, %v5456_v1 }
0x1605   :  { %4748 = vmatprep.subr.bf16.mxu1 %v5460_v54 }
0x1608   :  { %4750 = vmatpush3.bf16.msra.mxu1 %v5862_v3 }
0x1609   :  { %4751 = vmatprep.subr.bf16.mxu1 %v5460_v54 }
0x16d6   :  { %v1456_v40 = vpop.f32.mrb[10].mxu1 }
0x16d7   :  { %v1460_v41 = vadd.f32 %v1456_v40, %v1384_v39  ;;  %v4408_v42 = vpop.f32.mrb[11].mxu1 }
0x16d9   :  { %5075 = vtanh.f32 %v1460_v41  ;;  %v4218_v44 = vmul.f32 -1.442695, %v1460_v41 }
0x16db   :  { %5077 = vpow2.f32 %v4218_v44 }
0x16e3   :  { %v5076_v43 = vpop.eup %5075 }
0x16e4   :  { %1470 = vrot.lane.b32.xlu1 %v5076_v43, %s5462_s23 }
0x16e5   :  { %v5078_v45 = vpop.eup %5077 }
0x16e6   :  { %v1464_v47 = vadd.f32 1.0, %v5078_v45 }
0x16e8   :  { %5079 = vrcp.f32 %v1464_v47 }
0x16f2   :  { %v5080_v48 = vpop.eup %5079 }
0x16f3   :  { %v1468_v51 = vmul.f32 %v5080_v48, %v1377_v34 }
0x1756   :  { %v1471_v49 = vpop.permute.xlu1 %1470 }
0x1757   :  { %v1473_v50 = vmul.f32 %v5080_v48, %v1471_v49 }
0x1759   :  { %1475 = vrot.lane.b32.xlu0 %v1473_v50, %s5462_s23 }
0x17cb   :  { %v1476_v52 = vpop.permute.xlu0 %1475 }
0x17cc   :  { %v1478_v53 = vadd.f32 %v1476_v52, %v1468_v51 }
0x17ce   :  { %5081 = vtanh.f32 %v1478_v53 }
0x17d8   :  { %v5082_v55 = vpop.eup %5081 }
0x17d9   :  { %1481 = vrot.lane.b32.xlu1 %v5082_v55, %s5462_s23 }
0x184b   :  { %v1482_v10 = vpop.permute.xlu1 %1481 }
0x184c   :  { %v1484_v56 = vmul.f32 %v5080_v48, %v1482_v10  ;;  %v1788_v10 = vld [vmem:[#allocation3 + $0x5] sm:$0x1] }
0x184e   :  { %1487 = vrot.lane.b32.xlu0 %v1484_v56, %s5459_s22 }
0x18c0   :  { %v1488_v57 = vpop.permute.xlu0 %1487 }
0x18c1   :  { %4418 = vmatmul.mubr.msk.f32.vlgmr.msra.gmra.mrb[12].mxu1 %vm1286_vm3, %v1488_v57 }
0x18c2   :  { %4753 = vmatpush3.bf16.msra.mxu1 %v5853_v62  ;;  %4428 = vmatprep.mubr.msk.f32.mxu1 %vm5461_vm2, %v5456_v1 }
0x18c3   :  { %4754 = vmatprep.subr.bf16.mxu1 %v5460_v54 }
0x18c6   :  { %4756 = vmatpush3.bf16.msra.mxu1 %v5862_v3 }
0x18c7   :  { %4763 = vmatprep.subr.bf16.mxu1 %v5460_v54 }
0x1994   :  { %v1557_v16 = vpop.f32.mrb[12].mxu1 }
0x1995   :  { %v1561_v17 = vadd.f32 %v1557_v16, %v1485_v11  ;;  %v4419_v23 = vpop.f32.mrb[13].mxu1 }
0x1997   :  { %5083 = vtanh.f32 %v1561_v17  ;;  %v4220_v24 = vmul.f32 -1.442695, %v1561_v17 }
0x1999   :  { %5085 = vpow2.f32 %v4220_v24 }
0x19a1   :  { %v5084_v58 = vpop.eup %5083 }
0x19a2   :  { %1571 = vrot.lane.b32.xlu1 %v5084_v58, %s5462_s23 }
0x19a3   :  { %v5086_v27 = vpop.eup %5085 }
0x19a4   :  { %v1565_v59 = vadd.f32 1.0, %v5086_v27 }
0x19a6   :  { %5087 = vrcp.f32 %v1565_v59 }
0x19b0   :  { %v5088_v60 = vpop.eup %5087 }
0x19b1   :  { %v1569_v0 = vmul.f32 %v5088_v60, %v1478_v53 }
0x1a14   :  { %v1572_v61 = vpop.permute.xlu1 %1571 }
0x1a15   :  { %v1574_v63 = vmul.f32 %v5088_v60, %v1572_v61 }
0x1a17   :  { %1576 = vrot.lane.b32.xlu0 %v1574_v63, %s5462_s23 }
0x1a89   :  { %v1577_v2 = vpop.permute.xlu0 %1576 }
0x1a8a   :  { %v1579_v4 = vadd.f32 %v1577_v2, %v1569_v0 }
0x1a8c   :  { %5089 = vtanh.f32 %v1579_v4 }
0x1a96   :  { %v5090_v5 = vpop.eup %5089 }
0x1a97   :  { %1582 = vrot.lane.b32.xlu1 %v5090_v5, %s5462_s23 }
0x1b09   :  { %v1583_v7 = vpop.permute.xlu1 %1582 }
0x1b0a   :  { %v1585_v8 = vmul.f32 %v5088_v60, %v1583_v7 }
0x1b0c   :  { %1588 = vrot.lane.b32.xlu0 %v1585_v8, %s5459_s22 }
0x1b7e   :  { %v1589_v9 = vpop.permute.xlu0 %1588 }
0x1b7f   :  { %4429 = vmatmul.mubr.msk.f32.vlgmr.msra.gmra.mrb[14].mxu1 %vm1286_vm3, %v1589_v9 }
0x1b80   :  { %4765 = vmatpush3.bf16.msra.mxu1 %v5853_v62  ;;  %4450 = vmatprep.mubr.msk.f32.mxu1 %vm5461_vm2, %v5456_v1 }
0x1b81   :  { %4766 = vmatprep.subr.bf16.mxu1 %v5460_v54 }
0x1b84   :  { %4768 = vmatpush3.bf16.msra.mxu1 %v5862_v3 }
0x1b85   :  { %4775 = vmatprep.subr.bf16.mxu1 %v5460_v54 }
0x1c52   :  { %v1658_v6 = vpop.f32.mrb[14].mxu1 }
0x1c53   :  { %v1662_v13 = vadd.f32 %v1658_v6, %v1586_v12  ;;  %v4430_v14 = vpop.f32.mrb[15].mxu1 }
0x1c55   :  { %5091 = vtanh.f32 %v1662_v13  ;;  %v4222_v18 = vmul.f32 -1.442695, %v1662_v13 }
0x1c57   :  { %5093 = vpow2.f32 %v4222_v18 }
0x1c5f   :  { %v5092_v15 = vpop.eup %5091 }
0x1c60   :  { %1672 = vrot.lane.b32.xlu1 %v5092_v15, %s5462_s23 }
0x1c61   :  { %v5094_v19 = vpop.eup %5093 }
0x1c62   :  { %v1666_v20 = vadd.f32 1.0, %v5094_v19 }
0x1c64   :  { %5095 = vrcp.f32 %v1666_v20 }
0x1c6e   :  { %v5096_v21 = vpop.eup %5095 }
0x1c6f   :  { %v1670_v26 = vmul.f32 %v5096_v21, %v1579_v4  ;;  %v1889_v4 = vld [vmem:[#allocation3 + $0x6] sm:$0x1] }
0x1cd2   :  { %v1673_v22 = vpop.permute.xlu1 %1672 }
0x1cd3   :  { %v1675_v25 = vmul.f32 %v5096_v21, %v1673_v22 }
0x1cd5   :  { %1677 = vrot.lane.b32.xlu0 %v1675_v25, %s5462_s23 }
0x1d47   :  { %v1678_v28 = vpop.permute.xlu0 %1677 }
0x1d48   :  { %v1680_v29 = vadd.f32 %v1678_v28, %v1670_v26 }
0x1d4a   :  { %5097 = vtanh.f32 %v1680_v29 }
0x1d54   :  { %v5098_v32 = vpop.eup %5097 }
0x1d55   :  { %1683 = vrot.lane.b32.xlu1 %v5098_v32, %s5462_s23 }
0x1dc7   :  { %v1684_v33 = vpop.permute.xlu1 %1683 }
0x1dc8   :  { %v1686_v34 = vmul.f32 %v5096_v21, %v1684_v33 }
0x1dca   :  { %1689 = vrot.lane.b32.xlu0 %v1686_v34, %s5459_s22 }
0x1e3c   :  { %v1690_v35 = vpop.permute.xlu0 %1689 }
0x1e3d   :  { %4440 = vmatmul.mubr.msk.f32.vlgmr.msra.gmra.mrb[10].mxu0 %vm1286_vm3, %v1690_v35 }
0x1e3e   :  { %4771 = vmatpush3.bf16.msra.mxu0 %v5853_v62  ;;  %4461 = vmatprep.mubr.msk.f32.mxu0 %vm5461_vm2, %v5456_v1 }
0x1e3f   :  { %4772 = vmatprep.subr.bf16.mxu0 %v5460_v54 }
0x1e42   :  { %4774 = vmatpush3.bf16.msra.mxu0 %v5862_v3 }
0x1e43   :  { %4781 = vmatprep.subr.bf16.mxu0 %v5460_v54 }
0x1f10   :  { %v1759_v37 = vpop.f32.mrb[10].mxu0 }
0x1f11   :  { %v1763_v38 = vadd.f32 %v1759_v37, %v1687_v36  ;;  %v4441_v39 = vpop.f32.mrb[11].mxu0 }
0x1f13   :  { %5099 = vtanh.f32 %v1763_v38  ;;  %v4224_v41 = vmul.f32 -1.442695, %v1763_v38 }
0x1f15   :  { %5101 = vpow2.f32 %v4224_v41 }
0x1f1d   :  { %v5100_v40 = vpop.eup %5099 }
0x1f1e   :  { %1773 = vrot.lane.b32.xlu1 %v5100_v40, %s5462_s23 }
0x1f1f   :  { %v5102_v42 = vpop.eup %5101 }
0x1f20   :  { %v1767_v43 = vadd.f32 1.0, %v5102_v42 }
0x1f22   :  { %5103 = vrcp.f32 %v1767_v43 }
0x1f2c   :  { %v5104_v44 = vpop.eup %5103 }
0x1f2d   :  { %v1771_v48 = vmul.f32 %v5104_v44, %v1680_v29  ;;  %v1990_v29 = vld [vmem:[#allocation3 + $0x7] sm:$0x1] }
0x1f90   :  { %v1774_v45 = vpop.permute.xlu1 %1773 }
0x1f91   :  { %v1776_v47 = vmul.f32 %v5104_v44, %v1774_v45  ;;  %v2097_v45 = vld [vmem:[#allocation13] sm:$0xff] }
0x1f93   :  { %1778 = vrot.lane.b32.xlu0 %v1776_v47, %s5462_s23  ;;  %v2098_v47 = vld [vmem:[#allocation13 + $0x8] sm:$0xff] }
0x2005   :  { %v1779_v49 = vpop.permute.xlu0 %1778 }
0x2006   :  { %v1781_v50 = vadd.f32 %v1779_v49, %v1771_v48  ;;  %v2174_v48 = vld [vmem:[#allocation15] sm:$0xff]  ;;  %v4782_v49 = vpack.c.bf16 %v2098_v47, %v2097_v45 }
0x2008   :  { %5105 = vtanh.f32 %v1781_v50 }
0x2012   :  { %v5106_v51 = vpop.eup %5105 }
0x2013   :  { %1784 = vrot.lane.b32.xlu1 %v5106_v51, %s5462_s23  ;;  %v2099_v51 = vld [vmem:[#allocation13 + $0x10] sm:$0xff] }
0x2085   :  { %v1785_v52 = vpop.permute.xlu1 %1784 }
0x2086   :  { %v1787_v53 = vmul.f32 %v5104_v44, %v1785_v52  ;;  %v2100_v52 = vld [vmem:[#allocation13 + $0x18] sm:$0xff] }
0x2088   :  { %1790 = vrot.lane.b32.xlu0 %v1787_v53, %s5459_s22 }
0x20fa   :  { %v1791_v55 = vpop.permute.xlu0 %1790 }
0x20fb   :  { %4451 = vmatmul.mubr.msk.f32.vlgmr.msra.gmra.mrb[16].mxu1 %vm1286_vm3, %v1791_v55  ;;  %v2176_v55 = vld [vmem:[#allocation15 + $0x10] sm:$0xff] }
0x20fc   :  { %4777 = vmatpush3.bf16.msra.mxu1 %v5853_v62  ;;  %4472 = vmatprep.mubr.msk.f32.mxu1 %vm5461_vm2, %v5456_v1 }
0x20fd   :  { %4778 = vmatprep.subr.bf16.mxu1 %v5460_v54 }
0x2100   :  { %4780 = vmatpush3.bf16.msra.mxu1 %v5862_v3 }
0x2101   :  { %4787 = vmatprep.subr.bf16.mxu1 %v5460_v54 }
0x21ce   :  { %v1860_v56 = vpop.f32.mrb[16].mxu1 }
0x21cf   :  { %v1864_v57 = vadd.f32 %v1860_v56, %v1788_v10  ;;  %v4452_v11 = vpop.f32.mrb[17].mxu1  ;;  %v2177_v10 = vld [vmem:[#allocation15 + $0x18] sm:$0xff]  ;;  %v4785_v56 = vpack.c.bf16 %v2100_v52, %v2099_v51 }
0x21d1   :  { %5107 = vtanh.f32 %v1864_v57  ;;  %v4226_v17 = vmul.f32 -1.442695, %v1864_v57  ;;  %v5961_v57 = vpack.c.bf16 %v2177_v10, %v2176_v55 }
0x21d3   :  { %5109 = vpow2.f32 %v4226_v17 }
0x21db   :  { %v5108_v16 = vpop.eup %5107 }
0x21dc   :  { %1874 = vrot.lane.b32.xlu1 %v5108_v16, %s5462_s23 }
0x21dd   :  { %v5110_v62 = vpop.eup %5109 }
0x21de   :  { %v1868_v23 = vadd.f32 1.0, %v5110_v62 }
0x21e0   :  { %5111 = vrcp.f32 %v1868_v23 }
0x21ea   :  { %v5112_v58 = vpop.eup %5111 }
0x21eb   :  { %v1872_v3 = vmul.f32 %v5112_v58, %v1781_v50  ;;  %v2175_v50 = vld [vmem:[#allocation15 + $0x8] sm:$0xff] }
0x21ec   :  { %v5957_v53 = vpack.c.bf16 %v2175_v50, %v2174_v48 }
0x224e   :  { %v1875_v24 = vpop.permute.xlu1 %1874 }
0x224f   :  { %v1877_v27 = vmul.f32 %v5112_v58, %v1875_v24  ;;  %v2101_v24 = vld [vmem:[%s6278_s9] sm:$0x1] }
0x2251   :  { %1879 = vrot.lane.b32.xlu0 %v1877_v27, %s5462_s23 }
0x22c3   :  { %v1880_v59 = vpop.permute.xlu0 %1879 }
0x22c4   :  { %v1882_v60 = vadd.f32 %v1880_v59, %v1872_v3 }
0x22c6   :  { %5113 = vtanh.f32 %v1882_v60 }
0x22d0   :  { %v5114_v61 = vpop.eup %5113 }
0x22d1   :  { %1885 = vrot.lane.b32.xlu1 %v5114_v61, %s5462_s23 }
0x2343   :  { %v1886_v63 = vpop.permute.xlu1 %1885 }
0x2344   :  { %v1888_v0 = vmul.f32 %v5112_v58, %v1886_v63 }
0x2346   :  { %1891 = vrot.lane.b32.xlu0 %v1888_v0, %s5459_s22 }
0x23b8   :  { %v1892_v2 = vpop.permute.xlu0 %1891 }
0x23b9   :  { %4462 = vmatmul.mubr.msk.f32.vlgmr.msra.gmra.mrb[12].mxu0 %vm1286_vm3, %v1892_v2 }
0x23ba   :  { %4483 = vmatprep.mubr.msk.f32.mxu0 %vm5461_vm2, %v5456_v1  ;;  %4783 = vmatpush3.bf16.msra.mxu0 %v4782_v49 }
0x23bb   :  { %4784 = vmatprep.subr.bf16.mxu0 %v5460_v54 }
0x23be   :  { %4786 = vmatpush3.bf16.msra.mxu0 %v4785_v56 }
0x23bf   :  { %4793 = vmatprep.subr.bf16.mxu0 %v5460_v54 }
0x248c   :  { %v1961_v5 = vpop.f32.mrb[12].mxu0 }
0x248d   :  { %v1965_v7 = vadd.f32 %v1961_v5, %v1889_v4  ;;  %v4463_v8 = vpop.f32.mrb[13].mxu0 }
0x248f   :  { %5115 = vtanh.f32 %v1965_v7  ;;  %v4228_v12 = vmul.f32 -1.442695, %v1965_v7 }
0x2491   :  { %5117 = vpow2.f32 %v4228_v12 }
0x2499   :  { %v5116_v9 = vpop.eup %5115 }
0x249a   :  { %1975 = vrot.lane.b32.xlu1 %v5116_v9, %s5462_s23 }
0x249b   :  { %v5118_v6 = vpop.eup %5117 }
0x249c   :  { %v1969_v13 = vadd.f32 1.0, %v5118_v6 }
0x249e   :  { %5119 = vrcp.f32 %v1969_v13 }
0x24a8   :  { %v5120_v14 = vpop.eup %5119 }
0x24a9   :  { %v1973_v19 = vmul.f32 %v5120_v14, %v1882_v60 }
0x250c   :  { %v1976_v15 = vpop.permute.xlu1 %1975 }
0x250d   :  { %v1978_v18 = vmul.f32 %v5120_v14, %v1976_v15 }
0x250f   :  { %1980 = vrot.lane.b32.xlu0 %v1978_v18, %s5462_s23 }
0x2581   :  { %v1981_v20 = vpop.permute.xlu0 %1980 }
0x2582   :  { %v1983_v21 = vadd.f32 %v1981_v20, %v1973_v19 }
0x2584   :  { %5121 = vtanh.f32 %v1983_v21 }
0x258e   :  { %v5122_v22 = vpop.eup %5121 }
0x258f   :  { %1986 = vrot.lane.b32.xlu1 %v5122_v22, %s5462_s23 }
0x2601   :  { %v1987_v25 = vpop.permute.xlu1 %1986 }
0x2602   :  { %v1989_v26 = vmul.f32 %v5120_v14, %v1987_v25 }
0x2604   :  { %1992 = vrot.lane.b32.xlu0 %v1989_v26, %s5459_s22 }
0x2676   :  { %v1993_v28 = vpop.permute.xlu0 %1992 }
0x2677   :  { %4473 = vmatmul.mubr.msk.f32.vlgmr.msra.gmra.mrb[18].mxu1 %vm1286_vm3, %v1993_v28 }
0x2678   :  { %4494 = vmatprep.mubr.msk.f32.mxu1 %vm5461_vm2, %v5456_v1  ;;  %4789 = vmatpush3.bf16.msra.mxu1 %v5957_v53 }
0x2679   :  { %4790 = vmatprep.subr.bf16.mxu1 %v5460_v54 }
0x267c   :  { %4792 = vmatpush3.bf16.msra.mxu1 %v5961_v57 }
0x267d   :  { %4799 = vmatprep.subr.bf16.mxu1 %v5460_v54 }
0x267f   :  { %4495 = vmatmul.mubr.f32.vlgmr.msra.gmra.mrb[20].mxu1 %v5456_v1 }
0x2680   :  { %4801 = vmatpush3.bf16.msra.mxu1 %v5957_v53  ;;  %4516 = vmatprep.mubr.msk.f32.mxu1 %vm5461_vm2, %v5456_v1 }
0x2681   :  { %4802 = vmatprep.subr.bf16.mxu1 %v5460_v54 }
0x2684   :  { %4804 = vmatpush3.bf16.msra.mxu1 %v5961_v57 }
0x2685   :  { %4811 = vmatprep.subr.bf16.mxu1 %v5460_v54 }
0x274a   :  { %v2062_v32 = vpop.f32.mrb[18].mxu1 }
0x274b   :  { %v2066_v33 = vadd.f32 %v2062_v32, %v1990_v29  ;;  %v4474_v34 = vpop.f32.mrb[19].mxu1 }
0x274d   :  { %5123 = vtanh.f32 %v2066_v33  ;;  %v4230_v36 = vmul.f32 -1.442695, %v2066_v33 }
0x274f   :  { %5125 = vpow2.f32 %v4230_v36 }
0x2752   :  { %v2244_v23 = vpop.f32.mrb[20].mxu1 }
0x2753   :  { %v4496_v58 = vpop.f32.mrb[21].mxu1 }
0x2757   :  { %v5124_v35 = vpop.eup %5123 }
0x2758   :  { %2076 = vrot.lane.b32.xlu1 %v5124_v35, %s5462_s23 }
0x2759   :  { %v5126_v37 = vpop.eup %5125 }
0x275a   :  { %v2070_v38 = vadd.f32 1.0, %v5126_v37 }
0x275c   :  { %5127 = vrcp.f32 %v2070_v38 }
0x2766   :  { %v5128_v39 = vpop.eup %5127 }
0x2767   :  { %v2074_v42 = vmul.f32 %v5128_v39, %v1983_v21 }
0x27ca   :  { %v2077_v40 = vpop.permute.xlu1 %2076 }
0x27cb   :  { %v2079_v41 = vmul.f32 %v5128_v39, %v2077_v40 }
0x27cd   :  { %2081 = vrot.lane.b32.xlu0 %v2079_v41, %s5462_s23 }
0x283f   :  { %v2082_v43 = vpop.permute.xlu0 %2081 }
0x2840   :  { %v2084_v44 = vadd.f32 %v2082_v43, %v2074_v42 }
0x2842   :  { %5129 = vtanh.f32 %v2084_v44 }
0x284c   :  { %v5130_v11 = vpop.eup %5129 }
0x284d   :  { %2087 = vrot.lane.b32.xlu1 %v5130_v11, %s5462_s23 }
0x28bf   :  { %v2088_v16 = vpop.permute.xlu1 %2087 }
0x28c0   :  { %v2090_v17 = vmul.f32 %v5128_v39, %v2088_v16 }
0x28c2   :  { %2092 = vrot.lane.b32.xlu0 %v2090_v17, %s5459_s22 }
0x2934   :  { %v2093_v62 = vpop.permute.xlu0 %2092 }
0x2935   :  { %4484 = vmatmul.mubr.msk.f32.vlgmr.msra.gmra.mrb[14].mxu0 %vm1286_vm3, %v2093_v62  ;;  %2096 = vst.msk [vmem:[#allocation19] sm:$0x1] %vm2095_vm4, %v2093_v62 }
0x2936   :  { %4795 = vmatpush3.bf16.msra.mxu0 %v5957_v53  ;;  %4505 = vmatprep.mubr.msk.f32.mxu0 %vm5461_vm2, %v5456_v1 }
0x2937   :  { %4796 = vmatprep.subr.bf16.mxu0 %v5460_v54 }
0x293a   :  { %4798 = vmatpush3.bf16.msra.mxu0 %v5961_v57 }
0x293b   :  { %4805 = vmatprep.subr.bf16.mxu0 %v5460_v54 }
0x2a08   :  { %v2170_v27 = vpop.f32.mrb[14].mxu0 }
0x2a09   :  { %v5987_v3 = vadd.f32 %v2170_v27, %v2101_v24  ;;  %v4485_v59 = vpop.f32.mrb[15].mxu0 }
0x2a0b   :  { %v2248_v60 = vadd.f32 %v2244_v23, %v5987_v3 }
0x2a0d   :  { %5131 = vtanh.f32 %v2248_v60  ;;  %v4232_v63 = vmul.f32 -1.442695, %v2248_v60 }
0x2a0f   :  { %5133 = vpow2.f32 %v4232_v63 }
0x2a17   :  { %v5132_v61 = vpop.eup %5131 }
0x2a18   :  { %2258 = vrot.lane.b32.xlu1 %v5132_v61, %s5462_s23 }
0x2a19   :  { %v5134_v0 = vpop.eup %5133 }
0x2a1a   :  { %v2252_v2 = vadd.f32 1.0, %v5134_v0 }
0x2a1c   :  { %5135 = vrcp.f32 %v2252_v2 }
0x2a26   :  { %v5136_v4 = vpop.eup %5135 }
0x2a27   :  { %v2256_v8 = vmul.f32 0.0, %v5136_v4 }
0x2a8a   :  { %v2259_v5 = vpop.permute.xlu1 %2258 }
0x2a8b   :  { %v2261_v7 = vmul.f32 %v5136_v4, %v2259_v5 }
0x2a8d   :  { %2263 = vrot.lane.b32.xlu0 %v2261_v7, %s5462_s23 }
0x2aff   :  { %v2264_v9 = vpop.permute.xlu0 %2263 }
0x2b00   :  { %v2266_v12 = vadd.f32 %v2264_v9, %v2256_v8 }
0x2b02   :  { %5137 = vtanh.f32 %v2266_v12 }
0x2b0c   :  { %v5138_v6 = vpop.eup %5137 }
0x2b0d   :  { %2269 = vrot.lane.b32.xlu1 %v5138_v6, %s5462_s23 }
0x2b7f   :  { %v2270_v13 = vpop.permute.xlu1 %2269 }
0x2b80   :  { %v2272_v14 = vmul.f32 %v5136_v4, %v2270_v13 }
0x2b82   :  { %2274 = vrot.lane.b32.xlu0 %v2272_v14, %s5459_s22 }
0x2bf4   :  { %v2275_v15 = vpop.permute.xlu0 %2274 }
0x2bf5   :  { %2277 = vst.msk [vmem:[#allocation5] sm:$0x1] %vm2095_vm4, %v2275_v15  ;;  %4506 = vmatmul.mubr.msk.f32.vlgmr.msra.gmra.mrb[16].mxu0 %vm1286_vm3, %v2275_v15 }
0x2bf6   :  { %4807 = vmatpush3.bf16.msra.mxu0 %v5957_v53  ;;  %4527 = vmatprep.mubr.msk.f32.mxu0 %vm5461_vm2, %v5456_v1 }
0x2bf7   :  { %4808 = vmatprep.subr.bf16.mxu0 %v5460_v54 }
0x2bfa   :  { %4810 = vmatpush3.bf16.msra.mxu0 %v5961_v57 }
0x2bfb   :  { %4817 = vmatprep.subr.bf16.mxu0 %v5460_v54 }
0x2cc8   :  { %v2346_v18 = vpop.f32.mrb[16].mxu0 }
0x2cc9   :  { %v2350_v19 = vadd.f32 %v2346_v18, %v5987_v3  ;;  %v4507_v20 = vpop.f32.mrb[17].mxu0 }
0x2ccb   :  { %5139 = vtanh.f32 %v2350_v19  ;;  %v4234_v22 = vmul.f32 -1.442695, %v2350_v19 }
0x2ccd   :  { %5141 = vpow2.f32 %v4234_v22 }
0x2cd5   :  { %v5140_v21 = vpop.eup %5139 }
0x2cd6   :  { %2360 = vrot.lane.b32.xlu1 %v5140_v21, %s5462_s23 }
0x2cd7   :  { %v5142_v25 = vpop.eup %5141 }
0x2cd8   :  { %v2354_v26 = vadd.f32 1.0, %v5142_v25 }
0x2cda   :  { %5143 = vrcp.f32 %v2354_v26 }
0x2ce4   :  { %v5144_v28 = vpop.eup %5143 }
0x2ce5   :  { %v2358_v33 = vmul.f32 %v5144_v28, %v2266_v12 }
0x2d48   :  { %v2361_v29 = vpop.permute.xlu1 %2360 }
0x2d49   :  { %v2363_v32 = vmul.f32 %v5144_v28, %v2361_v29 }
0x2d4b   :  { %2365 = vrot.lane.b32.xlu0 %v2363_v32, %s5462_s23 }
0x2dbd   :  { %v2366_v34 = vpop.permute.xlu0 %2365 }
0x2dbe   :  { %v2368_v35 = vadd.f32 %v2366_v34, %v2358_v33 }
0x2dc0   :  { %5145 = vtanh.f32 %v2368_v35 }
0x2dca   :  { %v5146_v36 = vpop.eup %5145 }
0x2dcb   :  { %2371 = vrot.lane.b32.xlu1 %v5146_v36, %s5462_s23 }
0x2e3d   :  { %v2372_v37 = vpop.permute.xlu1 %2371 }
0x2e3e   :  { %v2374_v38 = vmul.f32 %v5144_v28, %v2372_v37 }
0x2e40   :  { %2376 = vrot.lane.b32.xlu0 %v2374_v38, %s5459_s22 }
0x2eb2   :  { %v2377_v39 = vpop.permute.xlu0 %2376 }
0x2eb3   :  { %2379 = vst.msk [vmem:[#allocation5 + $0x1] sm:$0x1] %vm2095_vm4, %v2377_v39  ;;  %4517 = vmatmul.mubr.msk.f32.vlgmr.msra.gmra.mrb[22].mxu1 %vm1286_vm3, %v2377_v39 }
0x2eb4   :  { %4813 = vmatpush3.bf16.msra.mxu1 %v5957_v53  ;;  %4538 = vmatprep.mubr.msk.f32.mxu1 %vm5461_vm2, %v5456_v1 }
0x2eb5   :  { %4814 = vmatprep.subr.bf16.mxu1 %v5460_v54 }
0x2eb8   :  { %4816 = vmatpush3.bf16.msra.mxu1 %v5961_v57 }
0x2eb9   :  { %4823 = vmatprep.subr.bf16.mxu1 %v5460_v54 }
0x2f86   :  { %v2448_v40 = vpop.f32.mrb[22].mxu1 }
0x2f87   :  { %v2452_v41 = vadd.f32 %v2448_v40, %v5987_v3  ;;  %v4518_v42 = vpop.f32.mrb[23].mxu1 }
0x2f89   :  { %5147 = vtanh.f32 %v2452_v41  ;;  %v4236_v44 = vmul.f32 -1.442695, %v2452_v41 }
0x2f8b   :  { %5149 = vpow2.f32 %v4236_v44 }
0x2f93   :  { %v5148_v43 = vpop.eup %5147 }
0x2f94   :  { %2462 = vrot.lane.b32.xlu1 %v5148_v43, %s5462_s23 }
0x2f95   :  { %v5150_v45 = vpop.eup %5149 }
0x2f96   :  { %v2456_v47 = vadd.f32 1.0, %v5150_v45 }
0x2f98   :  { %5151 = vrcp.f32 %v2456_v47 }
0x2fa2   :  { %v5152_v48 = vpop.eup %5151 }
0x2fa3   :  { %v2460_v51 = vmul.f32 %v5152_v48, %v2368_v35 }
0x3006   :  { %v2463_v49 = vpop.permute.xlu1 %2462 }
0x3007   :  { %v2465_v50 = vmul.f32 %v5152_v48, %v2463_v49 }
0x3009   :  { %2467 = vrot.lane.b32.xlu0 %v2465_v50, %s5462_s23 }
0x307b   :  { %v2468_v52 = vpop.permute.xlu0 %2467 }
0x307c   :  { %v2470_v55 = vadd.f32 %v2468_v52, %v2460_v51 }
0x307e   :  { %5153 = vtanh.f32 %v2470_v55 }
0x3088   :  { %v5154_v10 = vpop.eup %5153 }
0x3089   :  { %2473 = vrot.lane.b32.xlu1 %v5154_v10, %s5462_s23 }
0x30fb   :  { %v2474_v56 = vpop.permute.xlu1 %2473 }
0x30fc   :  { %v2476_v11 = vmul.f32 %v5152_v48, %v2474_v56 }
0x30fe   :  { %2478 = vrot.lane.b32.xlu0 %v2476_v11, %s5459_s22 }
0x3170   :  { %v2479_v16 = vpop.permute.xlu0 %2478 }
0x3171   :  { %2481 = vst.msk [vmem:[#allocation5 + $0x2] sm:$0x1] %vm2095_vm4, %v2479_v16  ;;  %4528 = vmatmul.mubr.msk.f32.vlgmr.msra.gmra.mrb[18].mxu0 %vm1286_vm3, %v2479_v16 }
0x3172   :  { %4819 = vmatpush3.bf16.msra.mxu0 %v5957_v53  ;;  %4549 = vmatprep.mubr.msk.f32.mxu0 %vm5461_vm2, %v5456_v1 }
0x3173   :  { %4820 = vmatprep.subr.bf16.mxu0 %v5460_v54 }
0x3176   :  { %4822 = vmatpush3.bf16.msra.mxu0 %v5961_v57 }
0x3177   :  { %4829 = vmatprep.subr.bf16.mxu0 %v5460_v54 }
0x3244   :  { %v2550_v17 = vpop.f32.mrb[18].mxu0 }
0x3245   :  { %v2554_v62 = vadd.f32 %v2550_v17, %v5987_v3  ;;  %v4529_v23 = vpop.f32.mrb[19].mxu0 }
0x3247   :  { %5155 = vtanh.f32 %v2554_v62  ;;  %v4238_v24 = vmul.f32 -1.442695, %v2554_v62 }
0x3249   :  { %5157 = vpow2.f32 %v4238_v24 }
0x3251   :  { %v5156_v58 = vpop.eup %5155 }
0x3252   :  { %2564 = vrot.lane.b32.xlu1 %v5156_v58, %s5462_s23 }
0x3253   :  { %v5158_v27 = vpop.eup %5157 }
0x3254   :  { %v2558_v59 = vadd.f32 1.0, %v5158_v27 }
0x3256   :  { %5159 = vrcp.f32 %v2558_v59 }
0x3260   :  { %v5160_v60 = vpop.eup %5159 }
0x3261   :  { %v2562_v0 = vmul.f32 %v5160_v60, %v2470_v55 }
0x32c4   :  { %v2565_v61 = vpop.permute.xlu1 %2564 }
0x32c5   :  { %v2567_v63 = vmul.f32 %v5160_v60, %v2565_v61 }
0x32c7   :  { %2569 = vrot.lane.b32.xlu0 %v2567_v63, %s5462_s23 }
0x3339   :  { %v2570_v2 = vpop.permute.xlu0 %2569 }
0x333a   :  { %v2572_v4 = vadd.f32 %v2570_v2, %v2562_v0 }
0x333c   :  { %5161 = vtanh.f32 %v2572_v4 }
0x3346   :  { %v5162_v5 = vpop.eup %5161 }
0x3347   :  { %2575 = vrot.lane.b32.xlu1 %v5162_v5, %s5462_s23 }
0x33b9   :  { %v2576_v7 = vpop.permute.xlu1 %2575 }
0x33ba   :  { %v2578_v8 = vmul.f32 %v5160_v60, %v2576_v7 }
0x33bc   :  { %2580 = vrot.lane.b32.xlu0 %v2578_v8, %s5459_s22 }
0x342e   :  { %v2581_v9 = vpop.permute.xlu0 %2580 }
0x342f   :  { %2583 = vst.msk [vmem:[#allocation5 + $0x3] sm:$0x1] %vm2095_vm4, %v2581_v9  ;;  %4539 = vmatmul.mubr.msk.f32.vlgmr.msra.gmra.mrb[24].mxu1 %vm1286_vm3, %v2581_v9 }
0x3430   :  { %4825 = vmatpush3.bf16.msra.mxu1 %v5957_v53  ;;  %4560 = vmatprep.mubr.msk.f32.mxu1 %vm5461_vm2, %v5456_v1 }
0x3431   :  { %4826 = vmatprep.subr.bf16.mxu1 %v5460_v54 }
0x3434   :  { %4828 = vmatpush3.bf16.msra.mxu1 %v5961_v57 }
0x3502   :  { %v2652_v12 = vpop.f32.mrb[24].mxu1 }
0x3503   :  { %v2656_v6 = vadd.f32 %v2652_v12, %v5987_v3  ;;  %v4540_v13 = vpop.f32.mrb[25].mxu1 }
0x3505   :  { %5163 = vtanh.f32 %v2656_v6  ;;  %v4240_v15 = vmul.f32 -1.442695, %v2656_v6 }
0x3507   :  { %5165 = vpow2.f32 %v4240_v15 }
0x350f   :  { %v5164_v14 = vpop.eup %5163 }
0x3510   :  { %2666 = vrot.lane.b32.xlu1 %v5164_v14, %s5462_s23 }
0x3511   :  { %v5166_v18 = vpop.eup %5165 }
0x3512   :  { %v2660_v19 = vadd.f32 1.0, %v5166_v18 }
0x3514   :  { %5167 = vrcp.f32 %v2660_v19  ;;  %v3092_v19 = vld [vmem:[#allocation18 + $0x18] sm:$0xff] }
0x351e   :  { %v5168_v20 = vpop.eup %5167 }
0x351f   :  { %v2664_v25 = vmul.f32 %v5168_v20, %v2572_v4 }
0x3582   :  { %v2667_v21 = vpop.permute.xlu1 %2666 }
0x3583   :  { %v2669_v22 = vmul.f32 %v5168_v20, %v2667_v21 }
0x3585   :  { %2671 = vrot.lane.b32.xlu0 %v2669_v22, %s5462_s23  ;;  %v3091_v22 = vld [vmem:[#allocation18 + $0x10] sm:$0xff] }
0x35f7   :  { %v2672_v26 = vpop.permute.xlu0 %2671 }
0x35f8   :  { %v2674_v28 = vadd.f32 %v2672_v26, %v2664_v25  ;;  %v3094_v25 = vld [vmem:[#allocation18 + $0x28] sm:$0xff]  ;;  %v3096_v26 = vld [vmem:[#allocation18 + $0x38] sm:$0xff] }
0x35fa   :  { %5169 = vtanh.f32 %v2674_v28 }
0x3604   :  { %v5170_v29 = vpop.eup %5169 }
0x3605   :  { %2677 = vrot.lane.b32.xlu1 %v5170_v29, %s5462_s23  ;;  %v6075_v29 = vpack.c.bf16 %v3096_v26, %v3094_v25 }
0x3677   :  { %v2678_v32 = vpop.permute.xlu1 %2677 }
0x3678   :  { %v2680_v33 = vmul.f32 %v5168_v20, %v2678_v32  ;;  %v3089_v20 = vld [vmem:[#allocation18] sm:$0xff] }
0x367a   :  { %2682 = vrot.lane.b32.xlu0 %v2680_v33, %s5459_s22  ;;  %v2994_v33 = vld [vmem:[#allocation16 + $0x8] sm:$0xff] }
0x36ec   :  { %v2683_v34 = vpop.permute.xlu0 %2682 }
0x36ed   :  { %2685 = vst.msk [vmem:[#allocation5 + $0x4] sm:$0x1] %vm2095_vm4, %v2683_v34  ;;  %4550 = vmatmul.mubr.msk.f32.vlgmr.msra.gmra.mrb[20].mxu0 %vm1286_vm3, %v2683_v34  ;;  %v2996_v34 = vld [vmem:[#allocation16 + $0x18] sm:$0xff] }
0x36ee   :  { %4831 = vmatpush3.bf16.msra.mxu0 %v5957_v53  ;;  %4571 = vmatprep.mubr.msk.f32.mxu0 %vm5461_vm2, %v5456_v1 }
0x36ef   :  { %4832 = vmatprep.subr.bf16.mxu0 %v5460_v54 }
0x36f2   :  { %4834 = vmatpush3.bf16.msra.mxu0 %v5961_v57 }
0x37c0   :  { %v2754_v35 = vpop.f32.mrb[20].mxu0 }
0x37c1   :  { %v2758_v36 = vadd.f32 %v2754_v35, %v5987_v3  ;;  %v4551_v37 = vpop.f32.mrb[21].mxu0  ;;  %v3093_v35 = vld [vmem:[#allocation18 + $0x20] sm:$0xff] }
0x37c2   :  { %v3095_v37 = vld [vmem:[#allocation18 + $0x30] sm:$0xff] }
0x37c3   :  { %5171 = vtanh.f32 %v2758_v36  ;;  %v4242_v39 = vmul.f32 -1.442695, %v2758_v36  ;;  %v4835_v36 = vpack.c.bf16 %v2996_v34, %v2994_v33 }
0x37c5   :  { %5173 = vpow2.f32 %v4242_v39  ;;  %v2995_v39 = vld [vmem:[#allocation16 + $0x10] sm:$0xff]  ;;  %4836 = vmatprep.subr.bf16.mxu1 %v4835_v36 }
0x37cd   :  { %v5172_v38 = vpop.eup %5171 }
0x37ce   :  { %2768 = vrot.lane.b32.xlu1 %v5172_v38, %s5462_s23  ;;  %v2993_v38 = vld [vmem:[#allocation16] sm:$0xff] }
0x37cf   :  { %v5174_v40 = vpop.eup %5173 }
0x37d0   :  { %v2762_v41 = vadd.f32 1.0, %v5174_v40  ;;  %v6081_v40 = vpack.c.bf16 %v3095_v37, %v3093_v35 }
0x37d2   :  { %5175 = vrcp.f32 %v2762_v41  ;;  %v4837_v41 = vpack.c.bf16 %v2995_v39, %v2993_v38 }
0x37dc   :  { %v5176_v53 = vpop.eup %5175 }
0x37dd   :  { %v2766_v44 = vmul.f32 %v5176_v53, %v2674_v28  ;;  %v6073_v28 = vpack.c.bf16 %v3091_v22, %v3089_v20 }
0x3840   :  { %v2769_v42 = vpop.permute.xlu1 %2768 }
0x3841   :  { %v2771_v43 = vmul.f32 %v5176_v53, %v2769_v42  ;;  %v3100_v42 = vld [vmem:[#allocation18 + $0x58] sm:$0xff] }
0x3843   :  { %2773 = vrot.lane.b32.xlu0 %v2771_v43, %s5462_s23  ;;  %v2998_v43 = vld [vmem:[#allocation16 + $0x28] sm:$0xff] }
0x38b5   :  { %v2774_v57 = vpop.permute.xlu0 %2773 }
0x38b6   :  { %v2776_v45 = vadd.f32 %v2774_v57, %v2766_v44  ;;  %v3000_v57 = vld [vmem:[#allocation16 + $0x38] sm:$0xff] }
0x38b8   :  { %5177 = vtanh.f32 %v2776_v45 }
0x38c2   :  { %v5178_v47 = vpop.eup %5177 }
0x38c3   :  { %2779 = vrot.lane.b32.xlu1 %v5178_v47, %s5462_s23  ;;  %v3099_v47 = vld [vmem:[#allocation18 + $0x50] sm:$0xff] }
0x3935   :  { %v2780_v48 = vpop.permute.xlu1 %2779 }
0x3936   :  { %v2782_v49 = vmul.f32 %v5176_v53, %v2780_v48  ;;  %v3098_v53 = vld [vmem:[#allocation18 + $0x48] sm:$0xff]  ;;  %v4839_v48 = vpack.c.bf16 %v3000_v57, %v2998_v43 }
0x3937   :  { %v6083_v44 = vpack.c.bf16 %v3100_v42, %v3098_v53 }
0x3938   :  { %2784 = vrot.lane.b32.xlu0 %v2782_v49, %s5459_s22 }
0x39aa   :  { %v2785_v50 = vpop.permute.xlu0 %2784 }
0x39ab   :  { %2787 = vst.msk [vmem:[#allocation5 + $0x5] sm:$0x1] %vm2095_vm4, %v2785_v50  ;;  %4561 = vmatmul.mubr.msk.f32.vlgmr.msra.gmra.mrb[26].mxu1 %vm1286_vm3, %v2785_v50  ;;  %v2997_v50 = vld [vmem:[#allocation16 + $0x20] sm:$0xff] }
0x39ac   :  { %3080 = vmatprep.mubr.f32.mxu1 %v5456_v1  ;;  %4838 = vmatpush1.bf16.msra.mxu1 %v4837_v41 }
0x39ad   :  { %4840 = vmatprep.subr.bf16.mxu1 %v4839_v48 }
0x3a7e   :  { %v2856_v51 = vpop.f32.mrb[26].mxu1 }
0x3a7f   :  { %v2860_v52 = vadd.f32 %v2856_v51, %v5987_v3  ;;  %v4562_v55 = vpop.f32.mrb[27].mxu1  ;;  %v2999_v51 = vld [vmem:[#allocation16 + $0x30] sm:$0xff] }
0x3a80   :  { %v4841_v55 = vpack.c.bf16 %v2999_v51, %v2997_v50 }
0x3a81   :  { %5179 = vtanh.f32 %v2860_v52  ;;  %v4244_v56 = vmul.f32 -1.442695, %v2860_v52  ;;  %v3102_v52 = vld [vmem:[#allocation18 + $0x68] sm:$0xff] }
0x3a82   :  { %4842 = vmatpush1.bf16.msra.mxu1 %v4841_v55 }
0x3a83   :  { %5181 = vpow2.f32 %v4244_v56 }
0x3a8b   :  { %v5180_v10 = vpop.eup %5179 }
0x3a8c   :  { %2870 = vrot.lane.b32.xlu1 %v5180_v10, %s5462_s23  ;;  %v3104_v10 = vld [vmem:[#allocation18 + $0x78] sm:$0xff] }
0x3a8d   :  { %v5182_v11 = vpop.eup %5181  ;;  %v6089_v56 = vpack.c.bf16 %v3104_v10, %v3102_v52 }
0x3a8e   :  { %v2864_v16 = vadd.f32 1.0, %v5182_v11  ;;  %v3101_v11 = vld [vmem:[#allocation18 + $0x60] sm:$0xff] }
0x3a90   :  { %5183 = vrcp.f32 %v2864_v16  ;;  %v3103_v16 = vld [vmem:[#allocation18 + $0x70] sm:$0xff] }
0x3a9a   :  { %v5184_v17 = vpop.eup %5183 }
0x3a9b   :  { %v2868_v58 = vmul.f32 %v5184_v17, %v2776_v45  ;;  %v3097_v45 = vld [vmem:[#allocation18 + $0x40] sm:$0xff] }
0x3a9c   :  { %v6086_v49 = vpack.c.bf16 %v3099_v47, %v3097_v45 }
0x3afe   :  { %v2871_v62 = vpop.permute.xlu1 %2870 }
0x3aff   :  { %v2873_v23 = vmul.f32 %v5184_v17, %v2871_v62 }
0x3b01   :  { %2875 = vrot.lane.b32.xlu0 %v2873_v23, %s5462_s23 }
0x3b73   :  { %v2876_v24 = vpop.permute.xlu0 %2875 }
0x3b74   :  { %v2878_v27 = vadd.f32 %v2876_v24, %v2868_v58 }
0x3b76   :  { %5185 = vtanh.f32 %v2878_v27 }
0x3b80   :  { %v5186_v59 = vpop.eup %5185 }
0x3b81   :  { %2881 = vrot.lane.b32.xlu1 %v5186_v59, %s5462_s23 }
0x3bf3   :  { %v2882_v60 = vpop.permute.xlu1 %2881 }
0x3bf4   :  { %v2884_v61 = vmul.f32 %v5184_v17, %v2882_v60  ;;  %v6093_v17 = vpack.c.bf16 %v3103_v16, %v3101_v11 }
0x3bf6   :  { %2886 = vrot.lane.b32.xlu0 %v2884_v61, %s5459_s22  ;;  %v3001_v61 = vld [vmem:[%s6281_s12] sm:$0x3] }
0x3c68   :  { %v2887_v63 = vpop.permute.xlu0 %2886 }
0x3c69   :  { %2889 = vst.msk [vmem:[#allocation5 + $0x6] sm:$0x1] %vm2095_vm4, %v2887_v63  ;;  %4572 = vmatmul.mubr.msk.f32.vlgmr.msra.gmra.mrb[22].mxu0 %vm1286_vm3, %v2887_v63  ;;  %v3006_v63 = vrot.slane %v3001_v61, %v5707_v30 }
0x3c6a   :  { %3170 = vmatprep.mubr.f32.mxu0 %v5456_v1 }
0x3d3c   :  { %v2958_v0 = vpop.f32.mrb[22].mxu0 }
0x3d3d   :  { %v2962_v2 = vadd.f32 %v2958_v0, %v5987_v3  ;;  %v4573_v4 = vpop.f32.mrb[23].mxu0  ;;  %v3090_v3 = vld [vmem:[#allocation18 + $0x8] sm:$0xff]  ;;  %v3010_v0 = vrot.slane %v3001_v61, %v5709_v31 }
0x3d3e   :  { %v6071_v21 = vpack.c.bf16 %v3092_v19, %v3090_v3 }
0x3d3f   :  { %5187 = vtanh.f32 %v2962_v2  ;;  %v4246_v7 = vmul.f32 -1.442695, %v2962_v2 }
0x3d40   :  { %4844 = vmatprep.subr.bf16.mxu0 %v6071_v21  ;;  %4860 = vmatprep.subr.bf16.mxu1 %v6071_v21 }
0x3d41   :  { %5189 = vpow2.f32 %v4246_v7  ;;  %4846 = vmatpush1.bf16.msra.mxu0 %v6073_v28 }
0x3d42   :  { %4848 = vmatprep.subr.bf16.mxu0 %v6075_v29 }
0x3d45   :  { %4850 = vmatpush1.bf16.msra.mxu0 %v6081_v40 }
0x3d46   :  { %4852 = vmatprep.subr.bf16.mxu0 %v6083_v44 }
0x3d49   :  { %v5188_v5 = vpop.eup %5187  ;;  %4854 = vmatpush1.bf16.msra.mxu0 %v6086_v49 }
0x3d4a   :  { %2972 = vrot.lane.b32.xlu1 %v5188_v5, %s5462_s23  ;;  %4856 = vmatprep.subr.bf16.mxu0 %v6089_v56 }
0x3d4b   :  { %v5190_v8 = vpop.eup %5189 }
0x3d4c   :  { %v2966_v9 = vadd.f32 1.0, %v5190_v8 }
0x3d4d   :  { %4858 = vmatpush1.bf16.msra.mxu0 %v6093_v17 }
0x3d4e   :  { %5191 = vrcp.f32 %v2966_v9  ;;  %4876 = vmatprep.subr.bf16.mxu0 %v6071_v21 }
0x3d50   :  { %3171 = vmatmul.mubr.f32.vlgmr.msra.gmra.mrb[24].mxu0 %v5456_v1 }
0x3d51   :  { %4878 = vmatpush1.bf16.msra.mxu0 %v6073_v28  ;;  %3416 = vmatprep.mubr.f32.mxu0 %v5456_v1 }
0x3d52   :  { %4880 = vmatprep.subr.bf16.mxu0 %v6075_v29 }
0x3d55   :  { %4882 = vmatpush1.bf16.msra.mxu0 %v6081_v40 }
0x3d56   :  { %4884 = vmatprep.subr.bf16.mxu0 %v6083_v44 }
0x3d58   :  { %v5192_v12 = vpop.eup %5191 }
0x3d59   :  { %v2970_v14 = vmul.f32 %v5192_v12, %v2878_v27  ;;  %4886 = vmatpush1.bf16.msra.mxu0 %v6086_v49 }
0x3d5a   :  { %4888 = vmatprep.subr.bf16.mxu0 %v6089_v56 }
0x3d5d   :  { %4890 = vmatpush1.bf16.msra.mxu0 %v6093_v17 }
0x3d5e   :  { %4908 = vmatprep.subr.bf16.mxu0 %v6071_v21 }
0x3dbc   :  { %v2973_v6 = vpop.permute.xlu1 %2972 }
0x3dbd   :  { %v2975_v13 = vmul.f32 %v5192_v12, %v2973_v6 }
0x3dbf   :  { %2977 = vrot.lane.b32.xlu0 %v2975_v13, %s5462_s23 }
0x3e23   :  { %v3172_v27 = vpop.f32.mrb[24].mxu0 }
0x3e24   :  { %v3174_v59 = vpop.f32.mrb[25].mxu0 }
0x3e25   :  { %v3179_v60 = vcombine.low %v3172_v27, %v3174_v59 }
0x3e27   :  { %v3186_v8 = vrot.slane %v3179_v60, %v5715_v46 }
0x3e29   :  { %v3193_v9 = vrot.slane %v3186_v8, %v5715_v46 }
0x3e31   :  { %v2978_v15 = vpop.permute.xlu0 %2977 }
0x3e32   :  { %v2980_v18 = vadd.f32 %v2978_v15, %v2970_v14 }
0x3e34   :  { %5193 = vtanh.f32 %v2980_v18 }
0x3e3e   :  { %v5194_v32 = vpop.eup %5193 }
0x3e3f   :  { %2983 = vrot.lane.b32.xlu1 %v5194_v32, %s5462_s23 }
0x3eb1   :  { %v2984_v62 = vpop.permute.xlu1 %2983 }
0x3eb2   :  { %v2986_v23 = vmul.f32 %v5192_v12, %v2984_v62 }
0x3eb4   :  { %2988 = vrot.lane.b32.xlu0 %v2986_v23, %s5459_s22 }
0x3f26   :  { %v2989_v58 = vpop.permute.xlu0 %2988 }
0x3f27   :  { %2991 = vst.msk [vmem:[#allocation5 + $0x7] sm:$0x1] %vm2095_vm4, %v2989_v58 }
0x3f2e   :  { %v2992_v24 = vld [vmem:[#allocation5] sm:$0xff] }
0x3f2f   :  { %4247 = vmatmul.mubr.msk.f32.vlgmr.msra.gmra.mrb[28].mxu1 %vm1286_vm3, %v2992_v24 }
0x3f30   :  { %4862 = vmatpush1.bf16.msra.mxu1 %v6073_v28  ;;  %3293 = vmatprep.mubr.f32.mxu1 %v5456_v1 }
0x3f31   :  { %4864 = vmatprep.subr.bf16.mxu1 %v6075_v29 }
0x3f34   :  { %4866 = vmatpush1.bf16.msra.mxu1 %v6081_v40 }
0x3f35   :  { %4868 = vmatprep.subr.bf16.mxu1 %v6083_v44 }
0x3f38   :  { %4870 = vmatpush1.bf16.msra.mxu1 %v6086_v49 }
0x3f39   :  { %4872 = vmatprep.subr.bf16.mxu1 %v6089_v56 }
0x3f3c   :  { %4874 = vmatpush1.bf16.msra.mxu1 %v6093_v17 }
0x3f3d   :  { %4892 = vmatprep.subr.bf16.mxu1 %v6071_v21 }
0x4002   :  { %v3082_v2 = vpop.f32.mrb[28].mxu1 }
0x4003   :  { %v3083_v4 = vadd.f32 %v3082_v2, %v3006_v63  ;;  %v3084_v5 = vpop.f32.mrb[29].mxu1 }
0x4004   :  { %v3085_v7 = vadd.f32 %v3084_v5, %v3010_v0 }
0x4005   :  { %3087 = vst [vmem:[#allocation2] sm:$0xff] %v3083_v4 }
0x4006   :  { %3088 = vst [vmem:[#allocation2 + $0x8] sm:$0xff] %v3085_v7 }
0x400d   :  { %v3105_v12 = vld [vmem:[#allocation2] ss:$8 sm:$0x3]  ;;  %v3225_v41 = vld [vmem:[#allocation2 + $0x1] ss:$8 sm:$0x3] }
0x400e   :  { %v3195_v6 = vadd.f32 %v3193_v9, %v3105_v12  ;;  %v3348_v61 = vld [vmem:[#allocation2 + $0x2] ss:$8 sm:$0x3] }
0x4010   :  { %3203 = vrot.lane.b32.xlu1 %v3195_v6, %s5459_s22  ;;  %v4248_v13 = vmul.f32 -1.442695, %v3195_v6 }
0x4012   :  { %5195 = vpow2.f32 %v4248_v13 }
0x401c   :  { %v5196_v14 = vpop.eup %5195 }
0x401d   :  { %v3199_v30 = vadd.f32 1.0, %v5196_v14 }
0x401f   :  { %5197 = vrcp.f32 %v3199_v30 }
0x4029   :  { %v5198_v18 = vpop.eup %5197 }
0x402a   :  { %v3208_v20 = vmul.f32 0.0, %v5198_v18  ;;  %v3217_v32 = vrot.slane %v5198_v18, 1 }
0x4082   :  { %v3204_v15 = vpop.permute.xlu1 %3203 }
0x4083   :  { %v3205_v31 = vrot.slane %v3204_v15, 1 }
0x4085   :  { %5199 = vtanh.f32 %v3205_v31 }
0x408f   :  { %v5200_v3 = vpop.eup %5199 }
0x4090   :  { %v3209_v19 = vmul.f32 %v5200_v3, %v5198_v18 }
0x4092   :  { %3211 = vrot.lane.b32.xlu0 %v3209_v19, %s5459_s22 }
0x4104   :  { %v3212_v22 = vpop.permute.xlu0 %3211 }
0x4105   :  { %v3214_v25 = vadd.f32 %v3212_v22, %v3208_v20 }
0x4107   :  { %5201 = vtanh.f32 %v3214_v25 }
0x4111   :  { %v5202_v26 = vpop.eup %5201 }
0x4112   :  { %3220 = vrot.lane.b32.xlu1 %v5202_v26, %s5459_s22  ;;  %v3471_v26 = vld [vmem:[#allocation2 + $0x3] ss:$8 sm:$0x3] }
0x4184   :  { %v3221_v33 = vpop.permute.xlu1 %3220 }
0x4185   :  { %v3223_v34 = vmul.f32 %v3221_v33, %v3217_v32 }
0x4187   :  { %3224 = vst.msk [vmem:[#allocation4] sm:$0x1] %vm321_vm0, %v3223_v34  ;;  %4249 = vmatmul.mubr.msk.f32.vlgmr.msra.gmra.mrb[30].mxu1 %vm199_vm1, %v3223_v34 }
0x4188   :  { %4894 = vmatpush1.bf16.msra.mxu1 %v6073_v28  ;;  %3539 = vmatprep.mubr.f32.mxu1 %v5456_v1 }
0x4189   :  { %4896 = vmatprep.subr.bf16.mxu1 %v6075_v29 }
0x418c   :  { %4898 = vmatpush1.bf16.msra.mxu1 %v6081_v40 }
0x418d   :  { %4900 = vmatprep.subr.bf16.mxu1 %v6083_v44 }
0x4190   :  { %4902 = vmatpush1.bf16.msra.mxu1 %v6086_v49 }
0x4191   :  { %4904 = vmatprep.subr.bf16.mxu1 %v6089_v56 }
0x4194   :  { %4906 = vmatpush1.bf16.msra.mxu1 %v6093_v17 }
0x4195   :  { %4924 = vmatprep.subr.bf16.mxu1 %v6071_v21 }
0x425a   :  { %v3295_v35 = vpop.f32.mrb[30].mxu1 }
0x425b   :  { %v3297_v36 = vpop.f32.mrb[31].mxu1 }
0x425c   :  { %v3302_v37 = vcombine.low %v3295_v35, %v3297_v36 }
0x425e   :  { %v3309_v38 = vrot.slane %v3302_v37, %v5715_v46 }
0x4260   :  { %v3316_v39 = vrot.slane %v3309_v38, %v5715_v46 }
0x4262   :  { %v3318_v53 = vadd.f32 %v3316_v39, %v3225_v41 }
0x4264   :  { %3326 = vrot.lane.b32.xlu0 %v3318_v53, %s5459_s22  ;;  %v4250_v42 = vmul.f32 -1.442695, %v3318_v53 }
0x4266   :  { %5203 = vpow2.f32 %v4250_v42 }
0x4270   :  { %v5204_v43 = vpop.eup %5203 }
0x4271   :  { %v3322_v57 = vadd.f32 1.0, %v5204_v43 }
0x4273   :  { %5205 = vrcp.f32 %v3322_v57 }
0x427d   :  { %v5206_v48 = vpop.eup %5205 }
0x427e   :  { %v3331_v52 = vmul.f32 %v5206_v48, %v3214_v25  ;;  %v3340_v16 = vrot.slane %v5206_v48, 1 }
0x42d6   :  { %v3327_v45 = vpop.permute.xlu0 %3326 }
0x42d7   :  { %v3328_v47 = vrot.slane %v3327_v45, 1 }
0x42d9   :  { %5207 = vtanh.f32 %v3328_v47 }
0x42e3   :  { %v5208_v50 = vpop.eup %5207 }
0x42e4   :  { %v3332_v51 = vmul.f32 %v5208_v50, %v5206_v48 }
0x42e6   :  { %3334 = vrot.lane.b32.xlu1 %v3332_v51, %s5459_s22 }
0x4358   :  { %v3335_v55 = vpop.permute.xlu1 %3334 }
0x4359   :  { %v3337_v10 = vadd.f32 %v3335_v55, %v3331_v52 }
0x435b   :  { %5209 = vtanh.f32 %v3337_v10 }
0x4365   :  { %v5210_v11 = vpop.eup %5209 }
0x4366   :  { %3343 = vrot.lane.b32.xlu0 %v5210_v11, %s5459_s22 }
0x43d8   :  { %v3344_v62 = vpop.permute.xlu0 %3343 }
0x43d9   :  { %v3346_v23 = vmul.f32 %v3344_v62, %v3340_v16 }
0x43db   :  { %3347 = vst.msk [vmem:[#allocation4 + $0x1] sm:$0x1] %vm321_vm0, %v3346_v23  ;;  %4251 = vmatmul.mubr.msk.f32.vlgmr.msra.gmra.mrb[26].mxu0 %vm199_vm1, %v3346_v23 }
0x43dc   :  { %4910 = vmatpush1.bf16.msra.mxu0 %v6073_v28  ;;  %3662 = vmatprep.mubr.f32.mxu0 %v5456_v1 }
0x43dd   :  { %4912 = vmatprep.subr.bf16.mxu0 %v6075_v29 }
0x43e0   :  { %4914 = vmatpush1.bf16.msra.mxu0 %v6081_v40 }
0x43e1   :  { %4916 = vmatprep.subr.bf16.mxu0 %v6083_v44 }
0x43e4   :  { %4918 = vmatpush1.bf16.msra.mxu0 %v6086_v49 }
0x43e5   :  { %4920 = vmatprep.subr.bf16.mxu0 %v6089_v56 }
0x43e8   :  { %4922 = vmatpush1.bf16.msra.mxu0 %v6093_v17 }
0x43e9   :  { %4940 = vmatprep.subr.bf16.mxu0 %v6071_v21 }
0x44ae   :  { %v3418_v58 = vpop.f32.mrb[26].mxu0 }
0x44af   :  { %v3420_v24 = vpop.f32.mrb[27].mxu0 }
0x44b0   :  { %v3425_v27 = vcombine.low %v3418_v58, %v3420_v24 }
0x44b2   :  { %v3432_v59 = vrot.slane %v3425_v27, %v5715_v46 }
0x44b4   :  { %v3439_v60 = vrot.slane %v3432_v59, %v5715_v46 }
0x44b6   :  { %v3441_v63 = vadd.f32 %v3439_v60, %v3348_v61 }
0x44b8   :  { %3449 = vrot.lane.b32.xlu1 %v3441_v63, %s5459_s22  ;;  %v4252_v0 = vmul.f32 -1.442695, %v3441_v63 }
0x44ba   :  { %5211 = vpow2.f32 %v4252_v0 }
0x44c4   :  { %v5212_v2 = vpop.eup %5211 }
0x44c5   :  { %v3445_v4 = vadd.f32 1.0, %v5212_v2 }
0x44c7   :  { %5213 = vrcp.f32 %v3445_v4 }
0x44d1   :  { %v5214_v8 = vpop.eup %5213 }
0x44d2   :  { %v3454_v6 = vmul.f32 %v5214_v8, %v3337_v10  ;;  %v3463_v15 = vrot.slane %v5214_v8, 1  ;;  %v3594_v10 = vld [vmem:[#allocation2 + $0x4] ss:$8 sm:$0x3] }
0x452a   :  { %v3450_v5 = vpop.permute.xlu1 %3449 }
0x452b   :  { %v3451_v7 = vrot.slane %v3450_v5, 1 }
0x452d   :  { %5215 = vtanh.f32 %v3451_v7 }
0x4537   :  { %v5216_v9 = vpop.eup %5215 }
0x4538   :  { %v3455_v12 = vmul.f32 %v5216_v9, %v5214_v8 }
0x453a   :  { %3457 = vrot.lane.b32.xlu0 %v3455_v12, %s5459_s22 }
0x45ac   :  { %v3458_v13 = vpop.permute.xlu0 %3457 }
0x45ad   :  { %v3460_v14 = vadd.f32 %v3458_v13, %v3454_v6  ;;  %v3717_v13 = vld [vmem:[#allocation2 + $0x5] ss:$8 sm:$0x3] }
0x45af   :  { %5217 = vtanh.f32 %v3460_v14 }
0x45b9   :  { %v5218_v30 = vpop.eup %5217 }
0x45ba   :  { %3466 = vrot.lane.b32.xlu1 %v5218_v30, %s5459_s22 }
0x462c   :  { %v3467_v31 = vpop.permute.xlu1 %3466 }
0x462d   :  { %v3469_v18 = vmul.f32 %v3467_v31, %v3463_v15 }
0x462f   :  { %3470 = vst.msk [vmem:[#allocation4 + $0x2] sm:$0x1] %vm321_vm0, %v3469_v18  ;;  %4253 = vmatmul.mubr.msk.f32.vlgmr.msra.gmra.mrb[32].mxu1 %vm199_vm1, %v3469_v18 }
0x4630   :  { %4926 = vmatpush1.bf16.msra.mxu1 %v6073_v28  ;;  %3785 = vmatprep.mubr.f32.mxu1 %v5456_v1 }
0x4631   :  { %4928 = vmatprep.subr.bf16.mxu1 %v6075_v29 }
0x4634   :  { %4930 = vmatpush1.bf16.msra.mxu1 %v6081_v40 }
0x4635   :  { %4932 = vmatprep.subr.bf16.mxu1 %v6083_v44 }
0x4638   :  { %4934 = vmatpush1.bf16.msra.mxu1 %v6086_v49 }
0x4639   :  { %4936 = vmatprep.subr.bf16.mxu1 %v6089_v56 }
0x463c   :  { %4938 = vmatpush1.bf16.msra.mxu1 %v6093_v17 }
0x463d   :  { %4956 = vmatprep.subr.bf16.mxu1 %v6071_v21 }
0x4702   :  { %v3541_v3 = vpop.f32.mrb[32].mxu1 }
0x4703   :  { %v3543_v19 = vpop.f32.mrb[33].mxu1 }
0x4704   :  { %v3548_v20 = vcombine.low %v3541_v3, %v3543_v19 }
0x4706   :  { %v3555_v22 = vrot.slane %v3548_v20, %v5715_v46 }
0x4708   :  { %v3562_v25 = vrot.slane %v3555_v22, %v5715_v46 }
0x470a   :  { %v3564_v32 = vadd.f32 %v3562_v25, %v3471_v26 }
0x470c   :  { %3572 = vrot.lane.b32.xlu0 %v3564_v32, %s5459_s22  ;;  %v4254_v33 = vmul.f32 -1.442695, %v3564_v32 }
0x470e   :  { %5219 = vpow2.f32 %v4254_v33 }
0x4718   :  { %v5220_v34 = vpop.eup %5219 }
0x4719   :  { %v3568_v35 = vadd.f32 1.0, %v5220_v34 }
0x471b   :  { %5221 = vrcp.f32 %v3568_v35 }
0x4725   :  { %v5222_v21 = vpop.eup %5221 }
0x4726   :  { %v3577_v41 = vmul.f32 %v5222_v21, %v3460_v14  ;;  %v3586_v57 = vrot.slane %v5222_v21, 1 }
0x477e   :  { %v3573_v36 = vpop.permute.xlu0 %3572 }
0x477f   :  { %v3574_v37 = vrot.slane %v3573_v36, 1  ;;  %v3840_v36 = vld [vmem:[#allocation2 + $0x6] ss:$8 sm:$0x3] }
0x4781   :  { %5223 = vtanh.f32 %v3574_v37 }
0x478b   :  { %v5224_v38 = vpop.eup %5223 }
0x478c   :  { %v3578_v39 = vmul.f32 %v5224_v38, %v5222_v21 }
0x478e   :  { %3580 = vrot.lane.b32.xlu1 %v3578_v39, %s5459_s22 }
0x4800   :  { %v3581_v53 = vpop.permute.xlu1 %3580 }
0x4801   :  { %v3583_v42 = vadd.f32 %v3581_v53, %v3577_v41 }
0x4803   :  { %5225 = vtanh.f32 %v3583_v42 }
0x480d   :  { %v5226_v43 = vpop.eup %5225 }
0x480e   :  { %3589 = vrot.lane.b32.xlu0 %v5226_v43, %s5459_s22 }
0x4880   :  { %v3590_v45 = vpop.permute.xlu0 %3589 }
0x4881   :  { %v3592_v47 = vmul.f32 %v3590_v45, %v3586_v57 }
0x4883   :  { %3593 = vst.msk [vmem:[#allocation4 + $0x3] sm:$0x1] %vm321_vm0, %v3592_v47  ;;  %4255 = vmatmul.mubr.msk.f32.vlgmr.msra.gmra.mrb[28].mxu0 %vm199_vm1, %v3592_v47 }
0x4884   :  { %4942 = vmatpush1.bf16.msra.mxu0 %v6073_v28  ;;  %3908 = vmatprep.mubr.f32.mxu0 %v5456_v1 }
0x4885   :  { %4944 = vmatprep.subr.bf16.mxu0 %v6075_v29 }
0x4888   :  { %4946 = vmatpush1.bf16.msra.mxu0 %v6081_v40 }
0x4889   :  { %4948 = vmatprep.subr.bf16.mxu0 %v6083_v44 }
0x488c   :  { %4950 = vmatpush1.bf16.msra.mxu0 %v6086_v49 }
0x488d   :  { %4952 = vmatprep.subr.bf16.mxu0 %v6089_v56 }
0x4890   :  { %4954 = vmatpush1.bf16.msra.mxu0 %v6093_v17 }
0x4891   :  { %4971 = vmatprep.subr.bf16.mxu0 %v5460_v54 }
0x4956   :  { %v3664_v48 = vpop.f32.mrb[28].mxu0 }
0x4957   :  { %v3666_v50 = vpop.f32.mrb[29].mxu0 }
0x4958   :  { %v3671_v51 = vcombine.low %v3664_v48, %v3666_v50 }
0x495a   :  { %v3678_v52 = vrot.slane %v3671_v51, %v5715_v46 }
0x495c   :  { %v3685_v55 = vrot.slane %v3678_v52, %v5715_v46 }
0x495e   :  { %v3687_v11 = vadd.f32 %v3685_v55, %v3594_v10 }
0x4960   :  { %3695 = vrot.lane.b32.xlu1 %v3687_v11, %s5459_s22  ;;  %v4256_v16 = vmul.f32 -1.442695, %v3687_v11 }
0x4962   :  { %5227 = vpow2.f32 %v4256_v16 }
0x496c   :  { %v5228_v62 = vpop.eup %5227 }
0x496d   :  { %v3691_v23 = vadd.f32 1.0, %v5228_v62 }
0x496f   :  { %5229 = vrcp.f32 %v3691_v23  ;;  %v3963_v23 = vld [vmem:[#allocation2 + $0x7] ss:$8 sm:$0x3] }
0x4979   :  { %v5230_v27 = vpop.eup %5229 }
0x497a   :  { %v3700_v61 = vmul.f32 %v5230_v27, %v3583_v42  ;;  %v3709_v4 = vrot.slane %v5230_v27, 1 }
0x49d2   :  { %v3696_v58 = vpop.permute.xlu1 %3695 }
0x49d3   :  { %v3697_v24 = vrot.slane %v3696_v58, 1 }
0x49d5   :  { %5231 = vtanh.f32 %v3697_v24 }
0x49df   :  { %v5232_v59 = vpop.eup %5231 }
0x49e0   :  { %v3701_v60 = vmul.f32 %v5232_v59, %v5230_v27 }
0x49e2   :  { %3703 = vrot.lane.b32.xlu0 %v3701_v60, %s5459_s22 }
0x4a54   :  { %v3704_v63 = vpop.permute.xlu0 %3703 }
0x4a55   :  { %v3706_v0 = vadd.f32 %v3704_v63, %v3700_v61 }
0x4a57   :  { %5233 = vtanh.f32 %v3706_v0 }
0x4a61   :  { %v5234_v2 = vpop.eup %5233 }
0x4a62   :  { %3712 = vrot.lane.b32.xlu1 %v5234_v2, %s5459_s22 }
0x4ad4   :  { %v3713_v5 = vpop.permute.xlu1 %3712 }
0x4ad5   :  { %v3715_v7 = vmul.f32 %v3713_v5, %v3709_v4  ;;  %v4088_v4 = vld [vmem:[%s6282_s13 + $0x8] sm:$0xff]  ;;  %v4089_v5 = vld [vmem:[%s6282_s13 + $0x10] sm:$0xff] }
0x4ad7   :  { %3716 = vst.msk [vmem:[#allocation4 + $0x4] sm:$0x1] %vm321_vm0, %v3715_v7  ;;  %4257 = vmatmul.mubr.msk.f32.vlgmr.msra.gmra.mrb[34].mxu1 %vm199_vm1, %v3715_v7 }
0x4ad8   :  { %4958 = vmatpush1.bf16.msra.mxu1 %v6073_v28  ;;  %4031 = vmatprep.mubr.f32.mxu1 %v5456_v1 }
0x4ad9   :  { %4960 = vmatprep.subr.bf16.mxu1 %v6075_v29 }
0x4adc   :  { %4962 = vmatpush1.bf16.msra.mxu1 %v6081_v40 }
0x4add   :  { %4964 = vmatprep.subr.bf16.mxu1 %v6083_v44 }
0x4ae0   :  { %4966 = vmatpush1.bf16.msra.mxu1 %v6086_v49 }
0x4ae1   :  { %4968 = vmatprep.subr.bf16.mxu1 %v6089_v56 }
0x4ae4   :  { %4970 = vmatpush1.bf16.msra.mxu1 %v6093_v17 }
0x4baa   :  { %v3787_v8 = vpop.f32.mrb[34].mxu1 }
0x4bab   :  { %v3789_v9 = vpop.f32.mrb[35].mxu1 }
0x4bac   :  { %v3794_v12 = vcombine.low %v3787_v8, %v3789_v9  ;;  %v4090_v8 = vld [vmem:[%s6282_s13 + $0x18] sm:$0xff] }
0x4bad   :  { %v4975_v9 = vpack.c.bf16 %v4090_v8, %v4089_v5 }
0x4bae   :  { %v3801_v6 = vrot.slane %v3794_v12, %v5715_v46 }
0x4bb0   :  { %v3808_v28 = vrot.slane %v3801_v6, %v5715_v46 }
0x4bb2   :  { %v3810_v14 = vadd.f32 %v3808_v28, %v3717_v13  ;;  %v4091_v13 = vld [vmem:[%s6282_s13 + $0x20] sm:$0xff] }
0x4bb4   :  { %3818 = vrot.lane.b32.xlu0 %v3810_v14, %s5459_s22  ;;  %v4258_v29 = vmul.f32 -1.442695, %v3810_v14  ;;  %v4092_v14 = vld [vmem:[%s6282_s13 + $0x28] sm:$0xff] }
0x4bb6   :  { %5235 = vpow2.f32 %v4258_v29  ;;  %v4093_v29 = vld [vmem:[%s6282_s13 + $0x30] sm:$0xff] }
0x4bc0   :  { %v5236_v40 = vpop.eup %5235 }
0x4bc1   :  { %v3814_v44 = vadd.f32 1.0, %v5236_v40  ;;  %v4978_v40 = vpack.c.bf16 %v4092_v14, %v4091_v13 }
0x4bc3   :  { %5237 = vrcp.f32 %v3814_v44  ;;  %v4094_v44 = vld [vmem:[%s6282_s13 + $0x38] sm:$0xff] }
0x4bcd   :  { %v5238_v56 = vpop.eup %5237 }
0x4bce   :  { %v3823_v31 = vmul.f32 %v5238_v56, %v3706_v0  ;;  %v3832_v20 = vrot.slane %v5238_v56, 1 }
0x4c26   :  { %v3819_v49 = vpop.permute.xlu0 %3818 }
0x4c27   :  { %v3820_v30 = vrot.slane %v3819_v49, 1  ;;  %v4981_v49 = vpack.c.bf16 %v4094_v44, %v4093_v29 }
0x4c29   :  { %5239 = vtanh.f32 %v3820_v30 }
0x4c33   :  { %v5240_v17 = vpop.eup %5239 }
0x4c34   :  { %v3824_v15 = vmul.f32 %v5240_v17, %v5238_v56 }
0x4c36   :  { %3826 = vrot.lane.b32.xlu1 %v3824_v15, %s5459_s22 }
0x4ca8   :  { %v3827_v18 = vpop.permute.xlu1 %3826 }
0x4ca9   :  { %v3829_v3 = vadd.f32 %v3827_v18, %v3823_v31 }
0x4cab   :  { %5241 = vtanh.f32 %v3829_v3 }
0x4cb5   :  { %v5242_v19 = vpop.eup %5241 }
0x4cb6   :  { %3835 = vrot.lane.b32.xlu0 %v5242_v19, %s5459_s22 }
0x4d28   :  { %v3836_v22 = vpop.permute.xlu0 %3835 }
0x4d29   :  { %v3838_v25 = vmul.f32 %v3836_v22, %v3832_v20 }
0x4d2b   :  { %3839 = vst.msk [vmem:[#allocation4 + $0x5] sm:$0x1] %vm321_vm0, %v3838_v25  ;;  %4259 = vmatmul.mubr.msk.f32.vlgmr.msra.gmra.mrb[30].mxu0 %vm199_vm1, %v3838_v25 }
0x4d2c   :  { %4590 = vmatprep.mubr.msk.f32.mxu0 %vm5461_vm2, %v5456_v1 }
0x4dfe   :  { %v3910_v26 = vpop.f32.mrb[30].mxu0 }
0x4dff   :  { %v3912_v32 = vpop.f32.mrb[31].mxu0 }
0x4e00   :  { %v3917_v33 = vcombine.low %v3910_v26, %v3912_v32 }
0x4e02   :  { %v3924_v34 = vrot.slane %v3917_v33, %v5715_v46 }
0x4e04   :  { %v3931_v35 = vrot.slane %v3924_v34, %v5715_v46 }
0x4e06   :  { %v3933_v37 = vadd.f32 %v3931_v35, %v3840_v36 }
0x4e08   :  { %3941 = vrot.lane.b32.xlu1 %v3933_v37, %s5459_s22  ;;  %v4260_v21 = vmul.f32 -1.442695, %v3933_v37 }
0x4e0a   :  { %5243 = vpow2.f32 %v4260_v21 }
0x4e14   :  { %v5244_v38 = vpop.eup %5243 }
0x4e15   :  { %v3937_v39 = vadd.f32 1.0, %v5244_v38 }
0x4e17   :  { %5245 = vrcp.f32 %v3937_v39 }
0x4e21   :  { %v5246_v1 = vpop.eup %5245 }
0x4e22   :  { %v3946_v57 = vmul.f32 %v5246_v1, %v3829_v3  ;;  %v3955_v50 = vrot.slane %v5246_v1, 1 }
0x4e7a   :  { %v3942_v41 = vpop.permute.xlu1 %3941 }
0x4e7b   :  { %v3943_v53 = vrot.slane %v3942_v41, 1 }
0x4e7d   :  { %5247 = vtanh.f32 %v3943_v53 }
0x4e87   :  { %v5248_v42 = vpop.eup %5247 }
0x4e88   :  { %v3947_v43 = vmul.f32 %v5248_v42, %v5246_v1 }
0x4e8a   :  { %3949 = vrot.lane.b32.xlu0 %v3947_v43, %s5459_s22 }
0x4efc   :  { %v3950_v45 = vpop.permute.xlu0 %3949 }
0x4efd   :  { %v3952_v47 = vadd.f32 %v3950_v45, %v3946_v57 }
0x4eff   :  { %5249 = vtanh.f32 %v3952_v47 }
0x4f09   :  { %v5250_v48 = vpop.eup %5249 }
0x4f0a   :  { %3958 = vrot.lane.b32.xlu1 %v5250_v48, %s5459_s22 }
0x4f7c   :  { %v3959_v51 = vpop.permute.xlu1 %3958 }
0x4f7d   :  { %v3961_v52 = vmul.f32 %v3959_v51, %v3955_v50 }
0x4f7f   :  { %3962 = vst.msk [vmem:[#allocation4 + $0x6] sm:$0x1] %vm321_vm0, %v3961_v52  ;;  %4261 = vmatmul.mubr.msk.f32.vlgmr.msra.gmra.mrb[36].mxu1 %vm199_vm1, %v3961_v52 }
0x5052   :  { %v4033_v55 = vpop.f32.mrb[36].mxu1 }
0x5053   :  { %v4035_v10 = vpop.f32.mrb[37].mxu1 }
0x5054   :  { %v4040_v11 = vcombine.low %v4033_v55, %v4035_v10 }
0x5056   :  { %v4047_v16 = vrot.slane %v4040_v11, %v5715_v46 }
0x5058   :  { %v4054_v62 = vrot.slane %v4047_v16, %v5715_v46  ;;  %v4087_v46 = vld [vmem:[%s6282_s13] sm:$0xff]  ;;  %s5413_s13 = scalar_lea.vmem %s4186_s18, 16 }
0x5059   :  { %v4972_v7 = vpack.c.bf16 %v4088_v4, %v4087_v46  ;;  %p5414_p0 = scmp.ne.s32.totalorder %s4186_s18, %s5413_s13  ;;  %p5419_p2 = scmp.lt.s32.totalorder %s5417_s24, %s5413_s13 }
0x505a   :  { %v4056_v58 = vadd.f32 %v4054_v62, %v3963_v23 }
0x505b   :  { %4973 = vmatpush3.bf16.msra.mxu0 %v4972_v7  ;;  %p5420_p3 = por %p5419_p2, %p5418_p1 }
0x505c   :  { %4064 = vrot.lane.b32.xlu0 %v4056_v58, %s5459_s22  ;;  %v4262_v24 = vmul.f32 -1.442695, %v4056_v58  ;;  %4974 = vmatprep.subr.bf16.mxu0 %v5460_v54 }
0x505d   :  { %p5421_p4 = pnand %p5420_p3, %p5414_p0 }
0x505e   :  { %5251 = vpow2.f32 %v4262_v24 }
0x505f   :  { %4976 = vmatpush3.bf16.msra.mxu0 %v4975_v9 }
0x5060   :  { %4977 = vmatprep.subr.bf16.mxu0 %v5460_v54 }
0x5063   :  { %4979 = vmatpush3.bf16.msra.mxu0 %v4978_v40 }
0x5064   :  { %4980 = vmatprep.subr.bf16.mxu0 %v5460_v54 }
0x5067   :  { %4982 = vmatpush3.bf16.msra.mxu0 %v4981_v49 }
0x5068   :  { %v5252_v27 = vpop.eup %5251 }
0x5069   :  { %v4060_v59 = vadd.f32 1.0, %v5252_v27 }
0x506b   :  { %5253 = vrcp.f32 %v4060_v59 }
0x5075   :  { %v5254_v63 = vpop.eup %5253 }
0x5076   :  { %v4069_v12 = vmul.f32 %v5254_v63, %v3952_v47  ;;  %v4078_v56 = vrot.slane %v5254_v63, 1 }
0x50ce   :  { %v4065_v60 = vpop.permute.xlu0 %4064 }
0x50cf   :  { %v4066_v61 = vrot.slane %v4065_v60, 1 }
0x50d1   :  { %5255 = vtanh.f32 %v4066_v61 }
0x50db   :  { %v5256_v0 = vpop.eup %5255 }
0x50dc   :  { %v4070_v2 = vmul.f32 %v5256_v0, %v5254_v63 }
0x50de   :  { %4072 = vrot.lane.b32.xlu1 %v4070_v2, %s5459_s22 }
0x5150   :  { %v4073_v6 = vpop.permute.xlu1 %4072 }
0x5151   :  { %v4075_v28 = vadd.f32 %v4073_v6, %v4069_v12 }
0x5153   :  { %5257 = vtanh.f32 %v4075_v28 }
0x515d   :  { %v5258_v30 = vpop.eup %5257 }
0x515e   :  { %4081 = vrot.lane.b32.xlu0 %v5258_v30, %s5459_s22 }
0x51d0   :  { %v4082_v17 = vpop.permute.xlu0 %4081 }
0x51d1   :  { %v4084_v15 = vmul.f32 %v4082_v17, %v4078_v56 }
0x51d3   :  { %4085 = vst.msk [vmem:[#allocation4 + $0x7] sm:$0x1] %vm321_vm0, %v4084_v15 }
0x51da   :  { %v4086_v31 = vld [vmem:[#allocation4] sm:$0xff] }
0x51db   :  { %4591 = vmatmul.mubr.msk.f32.vlgmr.msra.gmra.mrb[32].mxu0 %vm199_vm1, %v4086_v31 }
0x51dc   :  { %5424 = shalt.err (!%p5421_p4)
}
0x51dd   :  { %s5425_s5 = scalar_lea.hbm %s6285_s16, 16 }
0x51de   :  { %p5426_p5 = scmp.ne.s32.totalorder %s6285_s16, %s5425_s5  ;;  %p5429_p6 = scmp.lt.u32.totalorder %s5425_s5, %s6285_s16 }
0x51e0   :  { %p5431_p7 = pnand %p5429_p6, %p5426_p5 }
0x51e2   :  { %5434 = shalt.err (!%p5431_p7)
}
0x51e3   :  { %4188 = dma.vmem_to_hbm [thread:$0]  %s4186_s18, 16, %s6285_s16, [#allocation9]   ;;  %v4263_v54 = vld [vmem:[#allocation6] ss:$0 sm:$0xff]  ;;  %vm4175_vm5 = vcmask 7168  }
0x52ae   :  { %v4171_v18 = vpop.f32.mrb[32].mxu0 }
0x52af   :  { %v4172_v3 = vadd.f32 %v4263_v54, %v4171_v18  ;;  %v4592_v19 = vpop.f32.mrb[33].mxu0 }
0x52b1   :  { %4176 = vst.msk [vmem:[%s6284_s15] sm:$0xff] %vm4175_vm5, %v4172_v3 }
0x52b2   :  { %5443 = dma.done.wait [#allocation9], 16  }
0x52b3   :  { %5444 = vsyncadd [#allocation9], 4294967280 }
0x52b4   :  { %4194 = vsyncpa [#allocation8], 1 }
0x52b5   :  { %4195 = vsyncpa [#allocation11], 1 }
0x52b6   :  { %4196 = vsyncpa [#allocation14], 1 }
0x52b7   :  { %4197 = vsyncpa [#allocation17], 1 }
0x52b8   :  { %4198 = vsyncpa [#allocation9], 1 }

</bundles_post_ra>
